<compile_context>
chip_gen: v7x
topology: tpu7x:2x2x1
jax: 0.10.0
libtpu: 0.0.40
codegen_flags: <defaults>
</compile_context>

<pallas_src>
import functools

import numpy as np

import jax
import jax.numpy as jnp
from jax import lax
from jax.experimental import pallas as pl
from jax.experimental.pallas import tpu as pltpu

NUM_CLASSES = 7
BN_EPS = 1e-5
FC3_PAD = 128   # lane-dense output width for the last FC (sliced back to NUM_CLASSES on host)


# ----------------------------------------------------------------------------
# Pallas kernels
# ----------------------------------------------------------------------------
def _conv_block_kernel(x_ref, w_ref, s_ref, b_ref, sel_ref, o_ref, *, H, W):
    """Fused 3x3 conv (pad=1) + folded-BN affine + ReLU + 2x2 maxpool, one batch element.

    x_ref   : [1, (H+2)*(W+2), Cin]  zero-padded input, spatially flattened, bf16
    w_ref   : [9, Cin, Cout]         conv weights, k = dy*3+dx, bf16
    s_ref   : [1, Cout]              folded-BN scale, f32
    b_ref   : [1, Cout]              folded-BN bias (conv bias included), f32
    sel_ref : [4, P, L]              one-hot pool selectors (P = H/2 * W/2), bf16
    o_ref   : [1, P, Cout]           pooled output, bf16
    """
    Wp = W + 2
    L = (H - 1) * Wp + W   # flattened conv rows r = y*Wp + x ; rows with x >= W are ignored

    # 3x3 conv as 9 accumulated MXU matmuls on shifted unit-stride views of the
    # flattened padded input (implicit im2col).
    acc = None
    for dy in range(3):
        for dx in range(3):
            off = dy * Wp + dx
            xs = x_ref[0, off:off + L, :]                        # [L, Cin] bf16
            part = jnp.dot(xs, w_ref[dy * 3 + dx],
                           preferred_element_type=jnp.float32)   # [L, Cout] f32
            acc = part if acc is None else acc + part

    # Folded BatchNorm affine + ReLU (f32 epilogue; v5e VPU has no bf16 path).
    y = jnp.maximum(acc * s_ref[...] + b_ref[...], 0.0).astype(jnp.bfloat16)

    # 2x2 / stride-2 maxpool: each selector gathers one of the 4 window positions per
    # pooled pixel via a one-hot [P, L] matmul, then elementwise max of the 4 results.
    pooled = None
    for k in range(4):
        sub = jnp.dot(sel_ref[k], y, preferred_element_type=jnp.float32)  # [P, Cout]
        pooled = sub if pooled is None else jnp.maximum(pooled, sub)

    o_ref[0, :, :] = pooled.astype(o_ref.dtype)


def _fc_fused_kernel(x_ref, w1_ref, b1_ref, w2_ref, b2_ref, w3_ref, b3_ref, o_ref):
    """fc1 -> ReLU -> fc2 -> ReLU -> fc3 in one launch, all weights VMEM-resident.
    (dropout1/dropout2 are identity at inference.)"""
    h = jnp.dot(x_ref[...], w1_ref[...], preferred_element_type=jnp.float32) + b1_ref[...]
    h = jnp.maximum(h, 0.0).astype(jnp.bfloat16)
    h = jnp.dot(h, w2_ref[...], preferred_element_type=jnp.float32) + b2_ref[...]
    h = jnp.maximum(h, 0.0).astype(jnp.bfloat16)
    o_ref[...] = jnp.dot(h, w3_ref[...], preferred_element_type=jnp.float32) + b3_ref[...]


# ----------------------------------------------------------------------------
# Pallas wrappers
# ----------------------------------------------------------------------------
def _full_spec(shape):
    # Single-block spec: block shape equals full array dims (exempt from the (8,128) rule).
    return pl.BlockSpec(shape, lambda i: (0,) * len(shape))


def conv_block(x_nhwc, p, sel):
    """One fused conv block. x_nhwc: [N, H, W, Cin] bf16 -> [N, H/2, W/2, Cout] bf16."""
    N, H, W, Cin = x_nhwc.shape
    Cout = p["w9"].shape[-1]
    Hp, Wp = H + 2, W + 2
    Ho, Wo = H // 2, W // 2
    P = Ho * Wo
    L = (H - 1) * Wp + W

    xp = jnp.pad(x_nhwc, ((0, 0), (1, 1), (1, 1), (0, 0))).reshape(N, Hp * Wp, Cin)

    out = pl.pallas_call(
        functools.partial(_conv_block_kernel, H=H, W=W),
        out_shape=jax.ShapeDtypeStruct((N, P, Cout), jnp.bfloat16),
        grid=(N,),
        in_specs=[
            pl.BlockSpec((1, Hp * Wp, Cin), lambda n: (n, 0, 0)),
            pl.BlockSpec((9, Cin, Cout), lambda n: (0, 0, 0)),
            pl.BlockSpec((1, Cout), lambda n: (0, 0)),
            pl.BlockSpec((1, Cout), lambda n: (0, 0)),
            pl.BlockSpec((4, P, L), lambda n: (0, 0, 0)),
        ],
        out_specs=pl.BlockSpec((1, P, Cout), lambda n: (n, 0, 0)),
        compiler_params=pltpu.CompilerParams(
            dimension_semantics=("parallel",)),   # batch split across cores (v7x megacore)
    )(xp, p["w9"], p["scale"], p["bias"], sel)
    return out.reshape(N, Ho, Wo, Cout)


def fc_fused(x, fc1, fc2, fc3):
    N = x.shape[0]
    Fpad = fc3["w"].shape[1]
    args = (x, fc1["w"], fc1["b"], fc2["w"], fc2["b"], fc3["w"], fc3["b"])
    return pl.pallas_call(
        _fc_fused_kernel,
        out_shape=jax.ShapeDtypeStruct((N, Fpad), jnp.float32),
        grid=(1,),
        in_specs=[_full_spec(a.shape) for a in args],
        out_specs=_full_spec((N, Fpad)),
    )(*args)


# ----------------------------------------------------------------------------
# Constant pooling selectors (host-precomputed, passed as kernel inputs)
# ----------------------------------------------------------------------------
def make_pool_selectors(H, W):
    """sel[k, p, r] = 1 where r = (2*yo+ry)*(W+2) + (2*xo+rx), p = yo*(W/2)+xo, k = ry*2+rx."""
    Wp = W + 2
    L = (H - 1) * Wp + W
    Ho, Wo = H // 2, W // 2
    P = Ho * Wo
    p = np.arange(P)
    yo, xo = p // Wo, p % Wo
    sel = np.zeros((4, P, L), np.float32)
    for k, (ry, rx) in enumerate([(0, 0), (0, 1), (1, 0), (1, 1)]):
        sel[k, p, (2 * yo + ry) * Wp + (2 * xo + rx)] = 1.0
    return jnp.asarray(sel, dtype=jnp.bfloat16)


# ----------------------------------------------------------------------------
# Parameters (synthetic "PyTorch layout" init; BN running stats folded at prep time)
# ----------------------------------------------------------------------------
def _fold_bn(conv_bias, gamma, beta, mean, var):
    scale = gamma / jnp.sqrt(var + BN_EPS)
    bias = (conv_bias - mean) * scale + beta
    return scale, bias


def init_params(key, in_ch=2, hw=16, num_classes=NUM_CLASSES):
    keys = jax.random.split(key, 6)

    def conv_params(k, cin, cout):
        k1, k2, k3, k4, k5, k6 = jax.random.split(k, 6)
        return {
            "w": jax.random.normal(k1, (3, 3, cin, cout), jnp.float32) * 0.05,   # HWIO
            "cb": jax.random.normal(k2, (cout,), jnp.float32) * 0.05,
            "gamma": 1.0 + 0.1 * jax.random.normal(k3, (cout,), jnp.float32),
            "beta": 0.1 * jax.random.normal(k4, (cout,), jnp.float32),
            "mean": 0.1 * jax.random.normal(k5, (cout,), jnp.float32),
            "var": 0.5 + jax.random.uniform(k6, (cout,), jnp.float32),
        }

    def fc_params(k, fin, fout):
        k1, k2 = jax.random.split(k)
        return {"w": jax.random.normal(k1, (fin, fout), jnp.float32) * 0.05,
                "b": jax.random.normal(k2, (fout,), jnp.float32) * 0.05}

    fc_in = 128 * (hw // 8) * (hw // 8)   # `input_shape is not None` branch of CNNModel
    return {
        "conv1": conv_params(keys[0], in_ch, 32),
        "conv2": conv_params(keys[1], 32, 64),
        "conv3": conv_params(keys[2], 64, 128),
        "fc1": fc_params(keys[3], fc_in, 256),    # rows in PyTorch NCHW x.view(N,-1) order
        "fc2": fc_params(keys[4], 256, 128),
        "fc3": fc_params(keys[5], 128, num_classes),
    }


def prepare_params(raw, hw=16):
    """Fold BN, cast matmul operands to bf16, reshape conv weights to [9,Cin,Cout], fold the
    NHWC flatten permutation into fc1's rows, pad fc3 to 128 lanes, precompute selectors."""
    prep = {}
    for name in ("conv1", "conv2", "conv3"):
        p = raw[name]
        cin, cout = p["w"].shape[2], p["w"].shape[3]
        scale, bias = _fold_bn(p["cb"], p["gamma"], p["beta"], p["mean"], p["var"])
        prep[name] = {
            "w9": p["w"].reshape(9, cin, cout).astype(jnp.bfloat16),
            "scale": scale.reshape(1, cout).astype(jnp.float32),
            "bias": bias.reshape(1, cout).astype(jnp.float32),
        }

    # fc1: PyTorch rows are indexed c*P3 + p (NCHW flatten); our path flattens NHWC
    # (index p*C3 + c) -> permute rows once here, zero runtime cost.
    H3 = W3 = hw // 8
    P3, C3 = H3 * W3, 128
    w1 = raw["fc1"]["w"]                                           # [C3*P3, 256]
    w1_nhwc = w1.reshape(C3, P3, -1).transpose(1, 0, 2).reshape(P3 * C3, -1)
    prep["fc1"] = {"w": w1_nhwc.astype(jnp.bfloat16),
                   "b": raw["fc1"]["b"].reshape(1, -1).astype(jnp.float32)}
    prep["fc2"] = {"w": raw["fc2"]["w"].astype(jnp.bfloat16),
                   "b": raw["fc2"]["b"].reshape(1, -1).astype(jnp.float32)}

    # fc3: pad the 7-wide output to 128 lanes for dense stores; sliced back on host.
    w3, b3 = raw["fc3"]["w"], raw["fc3"]["b"]
    w3p = jnp.zeros((w3.shape[0], FC3_PAD), jnp.float32).at[:, :w3.shape[1]].set(w3)
    b3p = jnp.zeros((1, FC3_PAD), jnp.float32).at[0, :b3.shape[0]].set(b3)
    prep["fc3"] = {"w": w3p.astype(jnp.bfloat16), "b": b3p}

    prep["sel1"] = make_pool_selectors(hw, hw)
    prep["sel2"] = make_pool_selectors(hw // 2, hw // 2)
    prep["sel3"] = make_pool_selectors(hw // 4, hw // 4)
    return prep


# ----------------------------------------------------------------------------
# Forward pass (inference / eval mode: BN uses folded running stats, dropout = identity)
# ----------------------------------------------------------------------------
@jax.jit
def cnn_forward(prep, x_nchw):
    x = jnp.transpose(x_nchw, (0, 2, 3, 1)).astype(jnp.bfloat16)   # NCHW -> NHWC
    x = conv_block(x, prep["conv1"], prep["sel1"])
    x = conv_block(x, prep["conv2"], prep["sel2"])
    x = conv_block(x, prep["conv3"], prep["sel3"])
    N = x.shape[0]
    x = x.reshape(N, -1)   # NHWC flatten; PyTorch view order already folded into fc1 weights
    out = fc_fused(x, prep["fc1"], prep["fc2"], prep["fc3"])
    return out[:, :NUM_CLASSES]


# ----------------------------------------------------------------------------
# Pure-XLA reference (mirrors CNNModel.forward in eval mode, same bf16 rounding points)
# ----------------------------------------------------------------------------
def reference_forward(raw, x_nchw):
    x = jnp.transpose(x_nchw, (0, 2, 3, 1)).astype(jnp.bfloat16)
    for name in ("conv1", "conv2", "conv3"):
        p = raw[name]
        scale, bias = _fold_bn(p["cb"], p["gamma"], p["beta"], p["mean"], p["var"])
        y = lax.conv_general_dilated(
            x, p["w"].astype(jnp.bfloat16), window_strides=(1, 1), padding="SAME",
            dimension_numbers=("NHWC", "HWIO", "NHWC"),
            preferred_element_type=jnp.float32)
        y = jnp.maximum(y * scale + bias, 0.0).astype(jnp.bfloat16)
        x = lax.reduce_window(y, jnp.array(0.0, y.dtype), lax.max,
                              (1, 2, 2, 1), (1, 2, 2, 1), "VALID")
    N = x.shape[0]
    xt = jnp.transpose(x, (0, 3, 1, 2)).reshape(N, -1)             # PyTorch x.view(N, -1)
    h = jnp.dot(xt, raw["fc1"]["w"].astype(jnp.bfloat16),
                preferred_element_type=jnp.float32) + raw["fc1"]["b"]
    h = jnp.maximum(h, 0.0).astype(jnp.bfloat16)
    h = jnp.dot(h, raw["fc2"]["w"].astype(jnp.bfloat16),
                preferred_element_type=jnp.float32) + raw["fc2"]["b"]
    h = jnp.maximum(h, 0.0).astype(jnp.bfloat16)
    return jnp.dot(h, raw["fc3"]["w"].astype(jnp.bfloat16),
                   preferred_element_type=jnp.float32) + raw["fc3"]["b"]


if __name__ == "__main__":
    key = jax.random.PRNGKey(0)
    k_x, k_p = jax.random.split(key)
    # batch=2, in_channels=2 (conv1 expects 2), spatial 16x16 -> fc_input_size = 128*2*2 = 512
    x = jax.random.normal(k_x, (2, 2, 16, 16), dtype=jnp.float32)
    raw = init_params(k_p, in_ch=2, hw=16, num_classes=NUM_CLASSES)
    prep = prepare_params(raw, hw=16)

    out = jax.block_until_ready(cnn_forward(prep, x))
    assert out.shape == (2, NUM_CLASSES), out.shape
    assert bool(jnp.all(jnp.isfinite(out)))

    # Numerical cross-check against the pure-XLA reference (same bf16 rounding points).
    ref = jax.block_until_ready(reference_forward(raw, x))
    err = float(jnp.max(jnp.abs(out - ref)))
    assert err < 3e-2, f"kernel vs reference mismatch: max abs err = {err}"
    print("KERNEL_OK")
</pallas_src>

<mosaic_0001>
module attributes {stable_mosaic.version = 11 : i64} {
  func.func @_conv_block_kernel(%arg0: i32, %arg1: memref<1x324x2xbf16, #tpu.memory_space<vmem>>, %arg2: memref<9x2x32xbf16, #tpu.memory_space<vmem>>, %arg3: memref<1x32xf32, #tpu.memory_space<vmem>>, %arg4: memref<1x32xf32, #tpu.memory_space<vmem>>, %arg5: memref<4x64x286xbf16, #tpu.memory_space<vmem>>, %arg6: memref<1x64x32xbf16, #tpu.memory_space<vmem>>) attributes {dimension_semantics = [#tpu.dimension_semantics<parallel>], iteration_bounds = array<i64: 2>, scalar_prefetch = 0 : i64, scratch_operands = 0 : i64, tpu.core_type = #tpu.core_type<tc>, window_params = [{transform_indices = @transform_0, window_bounds = array<i64: 1, 324, 2>}, {pipeline_mode = #tpu.pipeline_mode<synchronous>, transform_indices = @transform_1, window_bounds = array<i64: 9, 2, 32>}, {pipeline_mode = #tpu.pipeline_mode<synchronous>, transform_indices = @transform_2, window_bounds = array<i64: 1, 32>}, {pipeline_mode = #tpu.pipeline_mode<synchronous>, transform_indices = @transform_3, window_bounds = array<i64: 1, 32>}, {pipeline_mode = #tpu.pipeline_mode<synchronous>, transform_indices = @transform_4, window_bounds = array<i64: 4, 64, 286>}, {transform_indices = @transform_5, window_bounds = array<i64: 1, 64, 32>}]} {
    %c0 = arith.constant 0 : index
    %c0_0 = arith.constant 0 : index
    %c0_1 = arith.constant 0 : index
    %0 = vector.load %arg1[%c0, %c0_0, %c0_1] : memref<1x324x2xbf16, #tpu.memory_space<vmem>>, vector<1x286x2xbf16>
    %1 = vector.shape_cast %0 : vector<1x286x2xbf16> to vector<286x2xbf16>
    %c0_2 = arith.constant 0 : index
    %c0_3 = arith.constant 0 : index
    %c0_4 = arith.constant 0 : index
    %2 = vector.load %arg2[%c0_2, %c0_3, %c0_4] : memref<9x2x32xbf16, #tpu.memory_space<vmem>>, vector<1x2x32xbf16>
    %3 = vector.shape_cast %2 : vector<1x2x32xbf16> to vector<2x32xbf16>
    %cst = arith.constant dense<0.000000e+00> : vector<286x32xf32>
    %4 = tpu.matmul %1, %3, %cst {dimension_numbers = #tpu.dot_dimension_numbers<[1], [0], [0], [1], [0, 0, 1, 1], [], []>} : vector<286x2xbf16>, vector<2x32xbf16>, vector<286x32xf32> -> vector<286x32xf32>
    %c0_5 = arith.constant 0 : index
    %c1 = arith.constant 1 : index
    %c0_6 = arith.constant 0 : index
    %5 = vector.load %arg1[%c0_5, %c1, %c0_6] : memref<1x324x2xbf16, #tpu.memory_space<vmem>>, vector<1x286x2xbf16>
    %6 = vector.shape_cast %5 : vector<1x286x2xbf16> to vector<286x2xbf16>
    %c1_7 = arith.constant 1 : index
    %c0_8 = arith.constant 0 : index
    %c0_9 = arith.constant 0 : index
    %7 = vector.load %arg2[%c1_7, %c0_8, %c0_9] : memref<9x2x32xbf16, #tpu.memory_space<vmem>>, vector<1x2x32xbf16>
    %8 = vector.shape_cast %7 : vector<1x2x32xbf16> to vector<2x32xbf16>
    %cst_10 = arith.constant dense<0.000000e+00> : vector<286x32xf32>
    %9 = tpu.matmul %6, %8, %cst_10 {dimension_numbers = #tpu.dot_dimension_numbers<[1], [0], [0], [1], [0, 0, 1, 1], [], []>} : vector<286x2xbf16>, vector<2x32xbf16>, vector<286x32xf32> -> vector<286x32xf32>
    %10 = arith.addf %4, %9 : vector<286x32xf32>
    %c0_11 = arith.constant 0 : index
    %c2 = arith.constant 2 : index
    %c0_12 = arith.constant 0 : index
    %11 = vector.load %arg1[%c0_11, %c2, %c0_12] : memref<1x324x2xbf16, #tpu.memory_space<vmem>>, vector<1x286x2xbf16>
    %12 = vector.shape_cast %11 : vector<1x286x2xbf16> to vector<286x2xbf16>
    %c2_13 = arith.constant 2 : index
    %c0_14 = arith.constant 0 : index
    %c0_15 = arith.constant 0 : index
    %13 = vector.load %arg2[%c2_13, %c0_14, %c0_15] : memref<9x2x32xbf16, #tpu.memory_space<vmem>>, vector<1x2x32xbf16>
    %14 = vector.shape_cast %13 : vector<1x2x32xbf16> to vector<2x32xbf16>
    %cst_16 = arith.constant dense<0.000000e+00> : vector<286x32xf32>
    %15 = tpu.matmul %12, %14, %cst_16 {dimension_numbers = #tpu.dot_dimension_numbers<[1], [0], [0], [1], [0, 0, 1, 1], [], []>} : vector<286x2xbf16>, vector<2x32xbf16>, vector<286x32xf32> -> vector<286x32xf32>
    %16 = arith.addf %10, %15 : vector<286x32xf32>
    %c0_17 = arith.constant 0 : index
    %c18 = arith.constant 18 : index
    %c0_18 = arith.constant 0 : index
    %17 = vector.load %arg1[%c0_17, %c18, %c0_18] : memref<1x324x2xbf16, #tpu.memory_space<vmem>>, vector<1x286x2xbf16>
    %18 = vector.shape_cast %17 : vector<1x286x2xbf16> to vector<286x2xbf16>
    %c3 = arith.constant 3 : index
    %c0_19 = arith.constant 0 : index
    %c0_20 = arith.constant 0 : index
    %19 = vector.load %arg2[%c3, %c0_19, %c0_20] : memref<9x2x32xbf16, #tpu.memory_space<vmem>>, vector<1x2x32xbf16>
    %20 = vector.shape_cast %19 : vector<1x2x32xbf16> to vector<2x32xbf16>
    %cst_21 = arith.constant dense<0.000000e+00> : vector<286x32xf32>
    %21 = tpu.matmul %18, %20, %cst_21 {dimension_numbers = #tpu.dot_dimension_numbers<[1], [0], [0], [1], [0, 0, 1, 1], [], []>} : vector<286x2xbf16>, vector<2x32xbf16>, vector<286x32xf32> -> vector<286x32xf32>
    %22 = arith.addf %16, %21 : vector<286x32xf32>
    %c0_22 = arith.constant 0 : index
    %c19 = arith.constant 19 : index
    %c0_23 = arith.constant 0 : index
    %23 = vector.load %arg1[%c0_22, %c19, %c0_23] : memref<1x324x2xbf16, #tpu.memory_space<vmem>>, vector<1x286x2xbf16>
    %24 = vector.shape_cast %23 : vector<1x286x2xbf16> to vector<286x2xbf16>
    %c4 = arith.constant 4 : index
    %c0_24 = arith.constant 0 : index
    %c0_25 = arith.constant 0 : index
    %25 = vector.load %arg2[%c4, %c0_24, %c0_25] : memref<9x2x32xbf16, #tpu.memory_space<vmem>>, vector<1x2x32xbf16>
    %26 = vector.shape_cast %25 : vector<1x2x32xbf16> to vector<2x32xbf16>
    %cst_26 = arith.constant dense<0.000000e+00> : vector<286x32xf32>
    %27 = tpu.matmul %24, %26, %cst_26 {dimension_numbers = #tpu.dot_dimension_numbers<[1], [0], [0], [1], [0, 0, 1, 1], [], []>} : vector<286x2xbf16>, vector<2x32xbf16>, vector<286x32xf32> -> vector<286x32xf32>
    %28 = arith.addf %22, %27 : vector<286x32xf32>
    %c0_27 = arith.constant 0 : index
    %c20 = arith.constant 20 : index
    %c0_28 = arith.constant 0 : index
    %29 = vector.load %arg1[%c0_27, %c20, %c0_28] : memref<1x324x2xbf16, #tpu.memory_space<vmem>>, vector<1x286x2xbf16>
    %30 = vector.shape_cast %29 : vector<1x286x2xbf16> to vector<286x2xbf16>
    %c5 = arith.constant 5 : index
    %c0_29 = arith.constant 0 : index
    %c0_30 = arith.constant 0 : index
    %31 = vector.load %arg2[%c5, %c0_29, %c0_30] : memref<9x2x32xbf16, #tpu.memory_space<vmem>>, vector<1x2x32xbf16>
    %32 = vector.shape_cast %31 : vector<1x2x32xbf16> to vector<2x32xbf16>
    %cst_31 = arith.constant dense<0.000000e+00> : vector<286x32xf32>
    %33 = tpu.matmul %30, %32, %cst_31 {dimension_numbers = #tpu.dot_dimension_numbers<[1], [0], [0], [1], [0, 0, 1, 1], [], []>} : vector<286x2xbf16>, vector<2x32xbf16>, vector<286x32xf32> -> vector<286x32xf32>
    %34 = arith.addf %28, %33 : vector<286x32xf32>
    %c0_32 = arith.constant 0 : index
    %c36 = arith.constant 36 : index
    %c0_33 = arith.constant 0 : index
    %35 = vector.load %arg1[%c0_32, %c36, %c0_33] : memref<1x324x2xbf16, #tpu.memory_space<vmem>>, vector<1x286x2xbf16>
    %36 = vector.shape_cast %35 : vector<1x286x2xbf16> to vector<286x2xbf16>
    %c6 = arith.constant 6 : index
    %c0_34 = arith.constant 0 : index
    %c0_35 = arith.constant 0 : index
    %37 = vector.load %arg2[%c6, %c0_34, %c0_35] : memref<9x2x32xbf16, #tpu.memory_space<vmem>>, vector<1x2x32xbf16>
    %38 = vector.shape_cast %37 : vector<1x2x32xbf16> to vector<2x32xbf16>
    %cst_36 = arith.constant dense<0.000000e+00> : vector<286x32xf32>
    %39 = tpu.matmul %36, %38, %cst_36 {dimension_numbers = #tpu.dot_dimension_numbers<[1], [0], [0], [1], [0, 0, 1, 1], [], []>} : vector<286x2xbf16>, vector<2x32xbf16>, vector<286x32xf32> -> vector<286x32xf32>
    %40 = arith.addf %34, %39 : vector<286x32xf32>
    %c0_37 = arith.constant 0 : index
    %c37 = arith.constant 37 : index
    %c0_38 = arith.constant 0 : index
    %41 = vector.load %arg1[%c0_37, %c37, %c0_38] : memref<1x324x2xbf16, #tpu.memory_space<vmem>>, vector<1x286x2xbf16>
    %42 = vector.shape_cast %41 : vector<1x286x2xbf16> to vector<286x2xbf16>
    %c7 = arith.constant 7 : index
    %c0_39 = arith.constant 0 : index
    %c0_40 = arith.constant 0 : index
    %43 = vector.load %arg2[%c7, %c0_39, %c0_40] : memref<9x2x32xbf16, #tpu.memory_space<vmem>>, vector<1x2x32xbf16>
    %44 = vector.shape_cast %43 : vector<1x2x32xbf16> to vector<2x32xbf16>
    %cst_41 = arith.constant dense<0.000000e+00> : vector<286x32xf32>
    %45 = tpu.matmul %42, %44, %cst_41 {dimension_numbers = #tpu.dot_dimension_numbers<[1], [0], [0], [1], [0, 0, 1, 1], [], []>} : vector<286x2xbf16>, vector<2x32xbf16>, vector<286x32xf32> -> vector<286x32xf32>
    %46 = arith.addf %40, %45 : vector<286x32xf32>
    %c0_42 = arith.constant 0 : index
    %c38 = arith.constant 38 : index
    %c0_43 = arith.constant 0 : index
    %47 = vector.load %arg1[%c0_42, %c38, %c0_43] : memref<1x324x2xbf16, #tpu.memory_space<vmem>>, vector<1x286x2xbf16>
    %48 = vector.shape_cast %47 : vector<1x286x2xbf16> to vector<286x2xbf16>
    %c8 = arith.constant 8 : index
    %c0_44 = arith.constant 0 : index
    %c0_45 = arith.constant 0 : index
    %49 = vector.load %arg2[%c8, %c0_44, %c0_45] : memref<9x2x32xbf16, #tpu.memory_space<vmem>>, vector<1x2x32xbf16>
    %50 = vector.shape_cast %49 : vector<1x2x32xbf16> to vector<2x32xbf16>
    %cst_46 = arith.constant dense<0.000000e+00> : vector<286x32xf32>
    %51 = tpu.matmul %48, %50, %cst_46 {dimension_numbers = #tpu.dot_dimension_numbers<[1], [0], [0], [1], [0, 0, 1, 1], [], []>} : vector<286x2xbf16>, vector<2x32xbf16>, vector<286x32xf32> -> vector<286x32xf32>
    %52 = arith.addf %46, %51 : vector<286x32xf32>
    %c0_47 = arith.constant 0 : index
    %c0_48 = arith.constant 0 : index
    %53 = vector.load %arg3[%c0_47, %c0_48] : memref<1x32xf32, #tpu.memory_space<vmem>>, vector<1x32xf32>
    %54 = vector.broadcast %53 : vector<1x32xf32> to vector<286x32xf32>
    %55 = arith.mulf %52, %54 : vector<286x32xf32>
    %c0_49 = arith.constant 0 : index
    %c0_50 = arith.constant 0 : index
    %56 = vector.load %arg4[%c0_49, %c0_50] : memref<1x32xf32, #tpu.memory_space<vmem>>, vector<1x32xf32>
    %57 = vector.broadcast %56 : vector<1x32xf32> to vector<286x32xf32>
    %58 = arith.addf %55, %57 : vector<286x32xf32>
    %cst_51 = arith.constant 0.000000e+00 : f32
    %59 = vector.broadcast %cst_51 : f32 to vector<286x32xf32>
    %60 = arith.maximumf %58, %59 : vector<286x32xf32>
    %61 = arith.truncf %60 : vector<286x32xf32> to vector<286x32xbf16>
    %c0_52 = arith.constant 0 : index
    %c0_53 = arith.constant 0 : index
    %c0_54 = arith.constant 0 : index
    %62 = vector.load %arg5[%c0_52, %c0_53, %c0_54] : memref<4x64x286xbf16, #tpu.memory_space<vmem>>, vector<1x64x286xbf16>
    %63 = vector.shape_cast %62 : vector<1x64x286xbf16> to vector<64x286xbf16>
    %cst_55 = arith.constant dense<0.000000e+00> : vector<64x32xf32>
    %64 = tpu.matmul %63, %61, %cst_55 {dimension_numbers = #tpu.dot_dimension_numbers<[1], [0], [0], [1], [0, 0, 1, 1], [], []>} : vector<64x286xbf16>, vector<286x32xbf16>, vector<64x32xf32> -> vector<64x32xf32>
    %c1_56 = arith.constant 1 : index
    %c0_57 = arith.constant 0 : index
    %c0_58 = arith.constant 0 : index
    %65 = vector.load %arg5[%c1_56, %c0_57, %c0_58] : memref<4x64x286xbf16, #tpu.memory_space<vmem>>, vector<1x64x286xbf16>
    %66 = vector.shape_cast %65 : vector<1x64x286xbf16> to vector<64x286xbf16>
    %cst_59 = arith.constant dense<0.000000e+00> : vector<64x32xf32>
    %67 = tpu.matmul %66, %61, %cst_59 {dimension_numbers = #tpu.dot_dimension_numbers<[1], [0], [0], [1], [0, 0, 1, 1], [], []>} : vector<64x286xbf16>, vector<286x32xbf16>, vector<64x32xf32> -> vector<64x32xf32>
    %68 = arith.maximumf %64, %67 : vector<64x32xf32>
    %c2_60 = arith.constant 2 : index
    %c0_61 = arith.constant 0 : index
    %c0_62 = arith.constant 0 : index
    %69 = vector.load %arg5[%c2_60, %c0_61, %c0_62] : memref<4x64x286xbf16, #tpu.memory_space<vmem>>, vector<1x64x286xbf16>
    %70 = vector.shape_cast %69 : vector<1x64x286xbf16> to vector<64x286xbf16>
    %cst_63 = arith.constant dense<0.000000e+00> : vector<64x32xf32>
    %71 = tpu.matmul %70, %61, %cst_63 {dimension_numbers = #tpu.dot_dimension_numbers<[1], [0], [0], [1], [0, 0, 1, 1], [], []>} : vector<64x286xbf16>, vector<286x32xbf16>, vector<64x32xf32> -> vector<64x32xf32>
    %72 = arith.maximumf %68, %71 : vector<64x32xf32>
    %c3_64 = arith.constant 3 : index
    %c0_65 = arith.constant 0 : index
    %c0_66 = arith.constant 0 : index
    %73 = vector.load %arg5[%c3_64, %c0_65, %c0_66] : memref<4x64x286xbf16, #tpu.memory_space<vmem>>, vector<1x64x286xbf16>
    %74 = vector.shape_cast %73 : vector<1x64x286xbf16> to vector<64x286xbf16>
    %cst_67 = arith.constant dense<0.000000e+00> : vector<64x32xf32>
    %75 = tpu.matmul %74, %61, %cst_67 {dimension_numbers = #tpu.dot_dimension_numbers<[1], [0], [0], [1], [0, 0, 1, 1], [], []>} : vector<64x286xbf16>, vector<286x32xbf16>, vector<64x32xf32> -> vector<64x32xf32>
    %76 = arith.maximumf %72, %75 : vector<64x32xf32>
    %77 = arith.truncf %76 : vector<64x32xf32> to vector<64x32xbf16>
    %c0_68 = arith.constant 0 : index
    %c0_69 = arith.constant 0 : index
    %c0_70 = arith.constant 0 : index
    %78 = vector.load %arg6[%c0_68, %c0_69, %c0_70] : memref<1x64x32xbf16, #tpu.memory_space<vmem>>, vector<1x64x32xbf16>
    %79 = vector.shape_cast %78 : vector<1x64x32xbf16> to vector<64x32xbf16>
    %80 = vector.shape_cast %77 : vector<64x32xbf16> to vector<1x64x32xbf16>
    tpu.vector_store %arg6[%c0_68, %c0_69, %c0_70], %80 {strides = array<i32>} : memref<1x64x32xbf16, #tpu.memory_space<vmem>>, vector<1x64x32xbf16>,
    return
  }
  func.func @transform_0(%arg0: i32) -> (i32, i32, i32) {
    %c0_i32 = arith.constant 0 : i32
    %c0_i32_0 = arith.constant 0 : i32
    %c0_i32_1 = arith.constant 0 : i32
    return %arg0, %c0_i32, %c0_i32_0 : i32, i32, i32
  }
  func.func @transform_1(%arg0: i32) -> (i32, i32, i32) {
    %c0_i32 = arith.constant 0 : i32
    %c0_i32_0 = arith.constant 0 : i32
    %c0_i32_1 = arith.constant 0 : i32
    %c0_i32_2 = arith.constant 0 : i32
    return %c0_i32, %c0_i32_0, %c0_i32_1 : i32, i32, i32
  }
  func.func @transform_2(%arg0: i32) -> (i32, i32) {
    %c0_i32 = arith.constant 0 : i32
    %c0_i32_0 = arith.constant 0 : i32
    %c0_i32_1 = arith.constant 0 : i32
    return %c0_i32, %c0_i32_0 : i32, i32
  }
  func.func @transform_3(%arg0: i32) -> (i32, i32) {
    %c0_i32 = arith.constant 0 : i32
    %c0_i32_0 = arith.constant 0 : i32
    %c0_i32_1 = arith.constant 0 : i32
    return %c0_i32, %c0_i32_0 : i32, i32
  }
  func.func @transform_4(%arg0: i32) -> (i32, i32, i32) {
    %c0_i32 = arith.constant 0 : i32
    %c0_i32_0 = arith.constant 0 : i32
    %c0_i32_1 = arith.constant 0 : i32
    %c0_i32_2 = arith.constant 0 : i32
    return %c0_i32, %c0_i32_0, %c0_i32_1 : i32, i32, i32
  }
  func.func @transform_5(%arg0: i32) -> (i32, i32, i32) {
    %c0_i32 = arith.constant 0 : i32
    %c0_i32_0 = arith.constant 0 : i32
    %c0_i32_1 = arith.constant 0 : i32
    return %arg0, %c0_i32, %c0_i32_0 : i32, i32, i32
  }
}

module attributes {stable_mosaic.version = 11 : i64} {
  func.func @_conv_block_kernel(%arg0: i32, %arg1: memref<1x100x32xbf16, #tpu.memory_space<vmem>>, %arg2: memref<9x32x64xbf16, #tpu.memory_space<vmem>>, %arg3: memref<1x64xf32, #tpu.memory_space<vmem>>, %arg4: memref<1x64xf32, #tpu.memory_space<vmem>>, %arg5: memref<4x16x78xbf16, #tpu.memory_space<vmem>>, %arg6: memref<1x16x64xbf16, #tpu.memory_space<vmem>>) attributes {dimension_semantics = [#tpu.dimension_semantics<parallel>], iteration_bounds = array<i64: 2>, scalar_prefetch = 0 : i64, scratch_operands = 0 : i64, tpu.core_type = #tpu.core_type<tc>, window_params = [{transform_indices = @transform_0, window_bounds = array<i64: 1, 100, 32>}, {pipeline_mode = #tpu.pipeline_mode<synchronous>, transform_indices = @transform_1, window_bounds = array<i64: 9, 32, 64>}, {pipeline_mode = #tpu.pipeline_mode<synchronous>, transform_indices = @transform_2, window_bounds = array<i64: 1, 64>}, {pipeline_mode = #tpu.pipeline_mode<synchronous>, transform_indices = @transform_3, window_bounds = array<i64: 1, 64>}, {pipeline_mode = #tpu.pipeline_mode<synchronous>, transform_indices = @transform_4, window_bounds = array<i64: 4, 16, 78>}, {transform_indices = @transform_5, window_bounds = array<i64: 1, 16, 64>}]} {
    %c0 = arith.constant 0 : index
    %c0_0 = arith.constant 0 : index
    %c0_1 = arith.constant 0 : index
    %0 = vector.load %arg1[%c0, %c0_0, %c0_1] : memref<1x100x32xbf16, #tpu.memory_space<vmem>>, vector<1x78x32xbf16>
    %1 = vector.shape_cast %0 : vector<1x78x32xbf16> to vector<78x32xbf16>
    %c0_2 = arith.constant 0 : index
    %c0_3 = arith.constant 0 : index
    %c0_4 = arith.constant 0 : index
    %2 = vector.load %arg2[%c0_2, %c0_3, %c0_4] : memref<9x32x64xbf16, #tpu.memory_space<vmem>>, vector<1x32x64xbf16>
    %3 = vector.shape_cast %2 : vector<1x32x64xbf16> to vector<32x64xbf16>
    %cst = arith.constant dense<0.000000e+00> : vector<78x64xf32>
    %4 = tpu.matmul %1, %3, %cst {dimension_numbers = #tpu.dot_dimension_numbers<[1], [0], [0], [1], [0, 0, 1, 1], [], []>} : vector<78x32xbf16>, vector<32x64xbf16>, vector<78x64xf32> -> vector<78x64xf32>
    %c0_5 = arith.constant 0 : index
    %c1 = arith.constant 1 : index
    %c0_6 = arith.constant 0 : index
    %5 = vector.load %arg1[%c0_5, %c1, %c0_6] : memref<1x100x32xbf16, #tpu.memory_space<vmem>>, vector<1x78x32xbf16>
    %6 = vector.shape_cast %5 : vector<1x78x32xbf16> to vector<78x32xbf16>
    %c1_7 = arith.constant 1 : index
    %c0_8 = arith.constant 0 : index
    %c0_9 = arith.constant 0 : index
    %7 = vector.load %arg2[%c1_7, %c0_8, %c0_9] : memref<9x32x64xbf16, #tpu.memory_space<vmem>>, vector<1x32x64xbf16>
    %8 = vector.shape_cast %7 : vector<1x32x64xbf16> to vector<32x64xbf16>
    %cst_10 = arith.constant dense<0.000000e+00> : vector<78x64xf32>
    %9 = tpu.matmul %6, %8, %cst_10 {dimension_numbers = #tpu.dot_dimension_numbers<[1], [0], [0], [1], [0, 0, 1, 1], [], []>} : vector<78x32xbf16>, vector<32x64xbf16>, vector<78x64xf32> -> vector<78x64xf32>
    %10 = arith.addf %4, %9 : vector<78x64xf32>
    %c0_11 = arith.constant 0 : index
    %c2 = arith.constant 2 : index
    %c0_12 = arith.constant 0 : index
    %11 = vector.load %arg1[%c0_11, %c2, %c0_12] : memref<1x100x32xbf16, #tpu.memory_space<vmem>>, vector<1x78x32xbf16>
    %12 = vector.shape_cast %11 : vector<1x78x32xbf16> to vector<78x32xbf16>
    %c2_13 = arith.constant 2 : index
    %c0_14 = arith.constant 0 : index
    %c0_15 = arith.constant 0 : index
    %13 = vector.load %arg2[%c2_13, %c0_14, %c0_15] : memref<9x32x64xbf16, #tpu.memory_space<vmem>>, vector<1x32x64xbf16>
    %14 = vector.shape_cast %13 : vector<1x32x64xbf16> to vector<32x64xbf16>
    %cst_16 = arith.constant dense<0.000000e+00> : vector<78x64xf32>
    %15 = tpu.matmul %12, %14, %cst_16 {dimension_numbers = #tpu.dot_dimension_numbers<[1], [0], [0], [1], [0, 0, 1, 1], [], []>} : vector<78x32xbf16>, vector<32x64xbf16>, vector<78x64xf32> -> vector<78x64xf32>
    %16 = arith.addf %10, %15 : vector<78x64xf32>
    %c0_17 = arith.constant 0 : index
    %c10 = arith.constant 10 : index
    %c0_18 = arith.constant 0 : index
    %17 = vector.load %arg1[%c0_17, %c10, %c0_18] : memref<1x100x32xbf16, #tpu.memory_space<vmem>>, vector<1x78x32xbf16>
    %18 = vector.shape_cast %17 : vector<1x78x32xbf16> to vector<78x32xbf16>
    %c3 = arith.constant 3 : index
    %c0_19 = arith.constant 0 : index
    %c0_20 = arith.constant 0 : index
    %19 = vector.load %arg2[%c3, %c0_19, %c0_20] : memref<9x32x64xbf16, #tpu.memory_space<vmem>>, vector<1x32x64xbf16>
    %20 = vector.shape_cast %19 : vector<1x32x64xbf16> to vector<32x64xbf16>
    %cst_21 = arith.constant dense<0.000000e+00> : vector<78x64xf32>
    %21 = tpu.matmul %18, %20, %cst_21 {dimension_numbers = #tpu.dot_dimension_numbers<[1], [0], [0], [1], [0, 0, 1, 1], [], []>} : vector<78x32xbf16>, vector<32x64xbf16>, vector<78x64xf32> -> vector<78x64xf32>
    %22 = arith.addf %16, %21 : vector<78x64xf32>
    %c0_22 = arith.constant 0 : index
    %c11 = arith.constant 11 : index
    %c0_23 = arith.constant 0 : index
    %23 = vector.load %arg1[%c0_22, %c11, %c0_23] : memref<1x100x32xbf16, #tpu.memory_space<vmem>>, vector<1x78x32xbf16>
    %24 = vector.shape_cast %23 : vector<1x78x32xbf16> to vector<78x32xbf16>
    %c4 = arith.constant 4 : index
    %c0_24 = arith.constant 0 : index
    %c0_25 = arith.constant 0 : index
    %25 = vector.load %arg2[%c4, %c0_24, %c0_25] : memref<9x32x64xbf16, #tpu.memory_space<vmem>>, vector<1x32x64xbf16>
    %26 = vector.shape_cast %25 : vector<1x32x64xbf16> to vector<32x64xbf16>
    %cst_26 = arith.constant dense<0.000000e+00> : vector<78x64xf32>
    %27 = tpu.matmul %24, %26, %cst_26 {dimension_numbers = #tpu.dot_dimension_numbers<[1], [0], [0], [1], [0, 0, 1, 1], [], []>} : vector<78x32xbf16>, vector<32x64xbf16>, vector<78x64xf32> -> vector<78x64xf32>
    %28 = arith.addf %22, %27 : vector<78x64xf32>
    %c0_27 = arith.constant 0 : index
    %c12 = arith.constant 12 : index
    %c0_28 = arith.constant 0 : index
    %29 = vector.load %arg1[%c0_27, %c12, %c0_28] : memref<1x100x32xbf16, #tpu.memory_space<vmem>>, vector<1x78x32xbf16>
    %30 = vector.shape_cast %29 : vector<1x78x32xbf16> to vector<78x32xbf16>
    %c5 = arith.constant 5 : index
    %c0_29 = arith.constant 0 : index
    %c0_30 = arith.constant 0 : index
    %31 = vector.load %arg2[%c5, %c0_29, %c0_30] : memref<9x32x64xbf16, #tpu.memory_space<vmem>>, vector<1x32x64xbf16>
    %32 = vector.shape_cast %31 : vector<1x32x64xbf16> to vector<32x64xbf16>
    %cst_31 = arith.constant dense<0.000000e+00> : vector<78x64xf32>
    %33 = tpu.matmul %30, %32, %cst_31 {dimension_numbers = #tpu.dot_dimension_numbers<[1], [0], [0], [1], [0, 0, 1, 1], [], []>} : vector<78x32xbf16>, vector<32x64xbf16>, vector<78x64xf32> -> vector<78x64xf32>
    %34 = arith.addf %28, %33 : vector<78x64xf32>
    %c0_32 = arith.constant 0 : index
    %c20 = arith.constant 20 : index
    %c0_33 = arith.constant 0 : index
    %35 = vector.load %arg1[%c0_32, %c20, %c0_33] : memref<1x100x32xbf16, #tpu.memory_space<vmem>>, vector<1x78x32xbf16>
    %36 = vector.shape_cast %35 : vector<1x78x32xbf16> to vector<78x32xbf16>
    %c6 = arith.constant 6 : index
    %c0_34 = arith.constant 0 : index
    %c0_35 = arith.constant 0 : index
    %37 = vector.load %arg2[%c6, %c0_34, %c0_35] : memref<9x32x64xbf16, #tpu.memory_space<vmem>>, vector<1x32x64xbf16>
    %38 = vector.shape_cast %37 : vector<1x32x64xbf16> to vector<32x64xbf16>
    %cst_36 = arith.constant dense<0.000000e+00> : vector<78x64xf32>
    %39 = tpu.matmul %36, %38, %cst_36 {dimension_numbers = #tpu.dot_dimension_numbers<[1], [0], [0], [1], [0, 0, 1, 1], [], []>} : vector<78x32xbf16>, vector<32x64xbf16>, vector<78x64xf32> -> vector<78x64xf32>
    %40 = arith.addf %34, %39 : vector<78x64xf32>
    %c0_37 = arith.constant 0 : index
    %c21 = arith.constant 21 : index
    %c0_38 = arith.constant 0 : index
    %41 = vector.load %arg1[%c0_37, %c21, %c0_38] : memref<1x100x32xbf16, #tpu.memory_space<vmem>>, vector<1x78x32xbf16>
    %42 = vector.shape_cast %41 : vector<1x78x32xbf16> to vector<78x32xbf16>
    %c7 = arith.constant 7 : index
    %c0_39 = arith.constant 0 : index
    %c0_40 = arith.constant 0 : index
    %43 = vector.load %arg2[%c7, %c0_39, %c0_40] : memref<9x32x64xbf16, #tpu.memory_space<vmem>>, vector<1x32x64xbf16>
    %44 = vector.shape_cast %43 : vector<1x32x64xbf16> to vector<32x64xbf16>
    %cst_41 = arith.constant dense<0.000000e+00> : vector<78x64xf32>
    %45 = tpu.matmul %42, %44, %cst_41 {dimension_numbers = #tpu.dot_dimension_numbers<[1], [0], [0], [1], [0, 0, 1, 1], [], []>} : vector<78x32xbf16>, vector<32x64xbf16>, vector<78x64xf32> -> vector<78x64xf32>
    %46 = arith.addf %40, %45 : vector<78x64xf32>
    %c0_42 = arith.constant 0 : index
    %c22 = arith.constant 22 : index
    %c0_43 = arith.constant 0 : index
    %47 = vector.load %arg1[%c0_42, %c22, %c0_43] : memref<1x100x32xbf16, #tpu.memory_space<vmem>>, vector<1x78x32xbf16>
    %48 = vector.shape_cast %47 : vector<1x78x32xbf16> to vector<78x32xbf16>
    %c8 = arith.constant 8 : index
    %c0_44 = arith.constant 0 : index
    %c0_45 = arith.constant 0 : index
    %49 = vector.load %arg2[%c8, %c0_44, %c0_45] : memref<9x32x64xbf16, #tpu.memory_space<vmem>>, vector<1x32x64xbf16>
    %50 = vector.shape_cast %49 : vector<1x32x64xbf16> to vector<32x64xbf16>
    %cst_46 = arith.constant dense<0.000000e+00> : vector<78x64xf32>
    %51 = tpu.matmul %48, %50, %cst_46 {dimension_numbers = #tpu.dot_dimension_numbers<[1], [0], [0], [1], [0, 0, 1, 1], [], []>} : vector<78x32xbf16>, vector<32x64xbf16>, vector<78x64xf32> -> vector<78x64xf32>
    %52 = arith.addf %46, %51 : vector<78x64xf32>
    %c0_47 = arith.constant 0 : index
    %c0_48 = arith.constant 0 : index
    %53 = vector.load %arg3[%c0_47, %c0_48] : memref<1x64xf32, #tpu.memory_space<vmem>>, vector<1x64xf32>
    %54 = vector.broadcast %53 : vector<1x64xf32> to vector<78x64xf32>
    %55 = arith.mulf %52, %54 : vector<78x64xf32>
    %c0_49 = arith.constant 0 : index
    %c0_50 = arith.constant 0 : index
    %56 = vector.load %arg4[%c0_49, %c0_50] : memref<1x64xf32, #tpu.memory_space<vmem>>, vector<1x64xf32>
    %57 = vector.broadcast %56 : vector<1x64xf32> to vector<78x64xf32>
    %58 = arith.addf %55, %57 : vector<78x64xf32>
    %cst_51 = arith.constant 0.000000e+00 : f32
    %59 = vector.broadcast %cst_51 : f32 to vector<78x64xf32>
    %60 = arith.maximumf %58, %59 : vector<78x64xf32>
    %61 = arith.truncf %60 : vector<78x64xf32> to vector<78x64xbf16>
    %c0_52 = arith.constant 0 : index
    %c0_53 = arith.constant 0 : index
    %c0_54 = arith.constant 0 : index
    %62 = vector.load %arg5[%c0_52, %c0_53, %c0_54] : memref<4x16x78xbf16, #tpu.memory_space<vmem>>, vector<1x16x78xbf16>
    %63 = vector.shape_cast %62 : vector<1x16x78xbf16> to vector<16x78xbf16>
    %cst_55 = arith.constant dense<0.000000e+00> : vector<16x64xf32>
    %64 = tpu.matmul %63, %61, %cst_55 {dimension_numbers = #tpu.dot_dimension_numbers<[1], [0], [0], [1], [0, 0, 1, 1], [], []>} : vector<16x78xbf16>, vector<78x64xbf16>, vector<16x64xf32> -> vector<16x64xf32>
    %c1_56 = arith.constant 1 : index
    %c0_57 = arith.constant 0 : index
    %c0_58 = arith.constant 0 : index
    %65 = vector.load %arg5[%c1_56, %c0_57, %c0_58] : memref<4x16x78xbf16, #tpu.memory_space<vmem>>, vector<1x16x78xbf16>
    %66 = vector.shape_cast %65 : vector<1x16x78xbf16> to vector<16x78xbf16>
    %cst_59 = arith.constant dense<0.000000e+00> : vector<16x64xf32>
    %67 = tpu.matmul %66, %61, %cst_59 {dimension_numbers = #tpu.dot_dimension_numbers<[1], [0], [0], [1], [0, 0, 1, 1], [], []>} : vector<16x78xbf16>, vector<78x64xbf16>, vector<16x64xf32> -> vector<16x64xf32>
    %68 = arith.maximumf %64, %67 : vector<16x64xf32>
    %c2_60 = arith.constant 2 : index
    %c0_61 = arith.constant 0 : index
    %c0_62 = arith.constant 0 : index
    %69 = vector.load %arg5[%c2_60, %c0_61, %c0_62] : memref<4x16x78xbf16, #tpu.memory_space<vmem>>, vector<1x16x78xbf16>
    %70 = vector.shape_cast %69 : vector<1x16x78xbf16> to vector<16x78xbf16>
    %cst_63 = arith.constant dense<0.000000e+00> : vector<16x64xf32>
    %71 = tpu.matmul %70, %61, %cst_63 {dimension_numbers = #tpu.dot_dimension_numbers<[1], [0], [0], [1], [0, 0, 1, 1], [], []>} : vector<16x78xbf16>, vector<78x64xbf16>, vector<16x64xf32> -> vector<16x64xf32>
    %72 = arith.maximumf %68, %71 : vector<16x64xf32>
    %c3_64 = arith.constant 3 : index
    %c0_65 = arith.constant 0 : index
    %c0_66 = arith.constant 0 : index
    %73 = vector.load %arg5[%c3_64, %c0_65, %c0_66] : memref<4x16x78xbf16, #tpu.memory_space<vmem>>, vector<1x16x78xbf16>
    %74 = vector.shape_cast %73 : vector<1x16x78xbf16> to vector<16x78xbf16>
    %cst_67 = arith.constant dense<0.000000e+00> : vector<16x64xf32>
    %75 = tpu.matmul %74, %61, %cst_67 {dimension_numbers = #tpu.dot_dimension_numbers<[1], [0], [0], [1], [0, 0, 1, 1], [], []>} : vector<16x78xbf16>, vector<78x64xbf16>, vector<16x64xf32> -> vector<16x64xf32>
    %76 = arith.maximumf %72, %75 : vector<16x64xf32>
    %77 = arith.truncf %76 : vector<16x64xf32> to vector<16x64xbf16>
    %c0_68 = arith.constant 0 : index
    %c0_69 = arith.constant 0 : index
    %c0_70 = arith.constant 0 : index
    %78 = vector.load %arg6[%c0_68, %c0_69, %c0_70] : memref<1x16x64xbf16, #tpu.memory_space<vmem>>, vector<1x16x64xbf16>
    %79 = vector.shape_cast %78 : vector<1x16x64xbf16> to vector<16x64xbf16>
    %80 = vector.shape_cast %77 : vector<16x64xbf16> to vector<1x16x64xbf16>
    tpu.vector_store %arg6[%c0_68, %c0_69, %c0_70], %80 {strides = array<i32>} : memref<1x16x64xbf16, #tpu.memory_space<vmem>>, vector<1x16x64xbf16>,
    return
  }
  func.func @transform_0(%arg0: i32) -> (i32, i32, i32) {
    %c0_i32 = arith.constant 0 : i32
    %c0_i32_0 = arith.constant 0 : i32
    %c0_i32_1 = arith.constant 0 : i32
    return %arg0, %c0_i32, %c0_i32_0 : i32, i32, i32
  }
  func.func @transform_1(%arg0: i32) -> (i32, i32, i32) {
    %c0_i32 = arith.constant 0 : i32
    %c0_i32_0 = arith.constant 0 : i32
    %c0_i32_1 = arith.constant 0 : i32
    %c0_i32_2 = arith.constant 0 : i32
    return %c0_i32, %c0_i32_0, %c0_i32_1 : i32, i32, i32
  }
  func.func @transform_2(%arg0: i32) -> (i32, i32) {
    %c0_i32 = arith.constant 0 : i32
    %c0_i32_0 = arith.constant 0 : i32
    %c0_i32_1 = arith.constant 0 : i32
    return %c0_i32, %c0_i32_0 : i32, i32
  }
  func.func @transform_3(%arg0: i32) -> (i32, i32) {
    %c0_i32 = arith.constant 0 : i32
    %c0_i32_0 = arith.constant 0 : i32
    %c0_i32_1 = arith.constant 0 : i32
    return %c0_i32, %c0_i32_0 : i32, i32
  }
  func.func @transform_4(%arg0: i32) -> (i32, i32, i32) {
    %c0_i32 = arith.constant 0 : i32
    %c0_i32_0 = arith.constant 0 : i32
    %c0_i32_1 = arith.constant 0 : i32
    %c0_i32_2 = arith.constant 0 : i32
    return %c0_i32, %c0_i32_0, %c0_i32_1 : i32, i32, i32
  }
  func.func @transform_5(%arg0: i32) -> (i32, i32, i32) {
    %c0_i32 = arith.constant 0 : i32
    %c0_i32_0 = arith.constant 0 : i32
    %c0_i32_1 = arith.constant 0 : i32
    return %arg0, %c0_i32, %c0_i32_0 : i32, i32, i32
  }
}

module attributes {stable_mosaic.version = 11 : i64} {
  func.func @_conv_block_kernel(%arg0: i32, %arg1: memref<1x36x64xbf16, #tpu.memory_space<vmem>>, %arg2: memref<9x64x128xbf16, #tpu.memory_space<vmem>>, %arg3: memref<1x128xf32, #tpu.memory_space<vmem>>, %arg4: memref<1x128xf32, #tpu.memory_space<vmem>>, %arg5: memref<4x4x22xbf16, #tpu.memory_space<vmem>>, %arg6: memref<1x4x128xbf16, #tpu.memory_space<vmem>>) attributes {dimension_semantics = [#tpu.dimension_semantics<parallel>], iteration_bounds = array<i64: 2>, scalar_prefetch = 0 : i64, scratch_operands = 0 : i64, tpu.core_type = #tpu.core_type<tc>, window_params = [{transform_indices = @transform_0, window_bounds = array<i64: 1, 36, 64>}, {pipeline_mode = #tpu.pipeline_mode<synchronous>, transform_indices = @transform_1, window_bounds = array<i64: 9, 64, 128>}, {pipeline_mode = #tpu.pipeline_mode<synchronous>, transform_indices = @transform_2, window_bounds = array<i64: 1, 128>}, {pipeline_mode = #tpu.pipeline_mode<synchronous>, transform_indices = @transform_3, window_bounds = array<i64: 1, 128>}, {pipeline_mode = #tpu.pipeline_mode<synchronous>, transform_indices = @transform_4, window_bounds = array<i64: 4, 4, 22>}, {transform_indices = @transform_5, window_bounds = array<i64: 1, 4, 128>}]} {
    %c0 = arith.constant 0 : index
    %c0_0 = arith.constant 0 : index
    %c0_1 = arith.constant 0 : index
    %0 = vector.load %arg1[%c0, %c0_0, %c0_1] : memref<1x36x64xbf16, #tpu.memory_space<vmem>>, vector<1x22x64xbf16>
    %1 = vector.shape_cast %0 : vector<1x22x64xbf16> to vector<22x64xbf16>
    %c0_2 = arith.constant 0 : index
    %c0_3 = arith.constant 0 : index
    %c0_4 = arith.constant 0 : index
    %2 = vector.load %arg2[%c0_2, %c0_3, %c0_4] : memref<9x64x128xbf16, #tpu.memory_space<vmem>>, vector<1x64x128xbf16>
    %3 = vector.shape_cast %2 : vector<1x64x128xbf16> to vector<64x128xbf16>
    %cst = arith.constant dense<0.000000e+00> : vector<22x128xf32>
    %4 = tpu.matmul %1, %3, %cst {dimension_numbers = #tpu.dot_dimension_numbers<[1], [0], [0], [1], [0, 0, 1, 1], [], []>} : vector<22x64xbf16>, vector<64x128xbf16>, vector<22x128xf32> -> vector<22x128xf32>
    %c0_5 = arith.constant 0 : index
    %c1 = arith.constant 1 : index
    %c0_6 = arith.constant 0 : index
    %5 = vector.load %arg1[%c0_5, %c1, %c0_6] : memref<1x36x64xbf16, #tpu.memory_space<vmem>>, vector<1x22x64xbf16>
    %6 = vector.shape_cast %5 : vector<1x22x64xbf16> to vector<22x64xbf16>
    %c1_7 = arith.constant 1 : index
    %c0_8 = arith.constant 0 : index
    %c0_9 = arith.constant 0 : index
    %7 = vector.load %arg2[%c1_7, %c0_8, %c0_9] : memref<9x64x128xbf16, #tpu.memory_space<vmem>>, vector<1x64x128xbf16>
    %8 = vector.shape_cast %7 : vector<1x64x128xbf16> to vector<64x128xbf16>
    %cst_10 = arith.constant dense<0.000000e+00> : vector<22x128xf32>
    %9 = tpu.matmul %6, %8, %cst_10 {dimension_numbers = #tpu.dot_dimension_numbers<[1], [0], [0], [1], [0, 0, 1, 1], [], []>} : vector<22x64xbf16>, vector<64x128xbf16>, vector<22x128xf32> -> vector<22x128xf32>
    %10 = arith.addf %4, %9 : vector<22x128xf32>
    %c0_11 = arith.constant 0 : index
    %c2 = arith.constant 2 : index
    %c0_12 = arith.constant 0 : index
    %11 = vector.load %arg1[%c0_11, %c2, %c0_12] : memref<1x36x64xbf16, #tpu.memory_space<vmem>>, vector<1x22x64xbf16>
    %12 = vector.shape_cast %11 : vector<1x22x64xbf16> to vector<22x64xbf16>
    %c2_13 = arith.constant 2 : index
    %c0_14 = arith.constant 0 : index
    %c0_15 = arith.constant 0 : index
    %13 = vector.load %arg2[%c2_13, %c0_14, %c0_15] : memref<9x64x128xbf16, #tpu.memory_space<vmem>>, vector<1x64x128xbf16>
    %14 = vector.shape_cast %13 : vector<1x64x128xbf16> to vector<64x128xbf16>
    %cst_16 = arith.constant dense<0.000000e+00> : vector<22x128xf32>
    %15 = tpu.matmul %12, %14, %cst_16 {dimension_numbers = #tpu.dot_dimension_numbers<[1], [0], [0], [1], [0, 0, 1, 1], [], []>} : vector<22x64xbf16>, vector<64x128xbf16>, vector<22x128xf32> -> vector<22x128xf32>
    %16 = arith.addf %10, %15 : vector<22x128xf32>
    %c0_17 = arith.constant 0 : index
    %c6 = arith.constant 6 : index
    %c0_18 = arith.constant 0 : index
    %17 = vector.load %arg1[%c0_17, %c6, %c0_18] : memref<1x36x64xbf16, #tpu.memory_space<vmem>>, vector<1x22x64xbf16>
    %18 = vector.shape_cast %17 : vector<1x22x64xbf16> to vector<22x64xbf16>
    %c3 = arith.constant 3 : index
    %c0_19 = arith.constant 0 : index
    %c0_20 = arith.constant 0 : index
    %19 = vector.load %arg2[%c3, %c0_19, %c0_20] : memref<9x64x128xbf16, #tpu.memory_space<vmem>>, vector<1x64x128xbf16>
    %20 = vector.shape_cast %19 : vector<1x64x128xbf16> to vector<64x128xbf16>
    %cst_21 = arith.constant dense<0.000000e+00> : vector<22x128xf32>
    %21 = tpu.matmul %18, %20, %cst_21 {dimension_numbers = #tpu.dot_dimension_numbers<[1], [0], [0], [1], [0, 0, 1, 1], [], []>} : vector<22x64xbf16>, vector<64x128xbf16>, vector<22x128xf32> -> vector<22x128xf32>
    %22 = arith.addf %16, %21 : vector<22x128xf32>
    %c0_22 = arith.constant 0 : index
    %c7 = arith.constant 7 : index
    %c0_23 = arith.constant 0 : index
    %23 = vector.load %arg1[%c0_22, %c7, %c0_23] : memref<1x36x64xbf16, #tpu.memory_space<vmem>>, vector<1x22x64xbf16>
    %24 = vector.shape_cast %23 : vector<1x22x64xbf16> to vector<22x64xbf16>
    %c4 = arith.constant 4 : index
    %c0_24 = arith.constant 0 : index
    %c0_25 = arith.constant 0 : index
    %25 = vector.load %arg2[%c4, %c0_24, %c0_25] : memref<9x64x128xbf16, #tpu.memory_space<vmem>>, vector<1x64x128xbf16>
    %26 = vector.shape_cast %25 : vector<1x64x128xbf16> to vector<64x128xbf16>
    %cst_26 = arith.constant dense<0.000000e+00> : vector<22x128xf32>
    %27 = tpu.matmul %24, %26, %cst_26 {dimension_numbers = #tpu.dot_dimension_numbers<[1], [0], [0], [1], [0, 0, 1, 1], [], []>} : vector<22x64xbf16>, vector<64x128xbf16>, vector<22x128xf32> -> vector<22x128xf32>
    %28 = arith.addf %22, %27 : vector<22x128xf32>
    %c0_27 = arith.constant 0 : index
    %c8 = arith.constant 8 : index
    %c0_28 = arith.constant 0 : index
    %29 = vector.load %arg1[%c0_27, %c8, %c0_28] : memref<1x36x64xbf16, #tpu.memory_space<vmem>>, vector<1x22x64xbf16>
    %30 = vector.shape_cast %29 : vector<1x22x64xbf16> to vector<22x64xbf16>
    %c5 = arith.constant 5 : index
    %c0_29 = arith.constant 0 : index
    %c0_30 = arith.constant 0 : index
    %31 = vector.load %arg2[%c5, %c0_29, %c0_30] : memref<9x64x128xbf16, #tpu.memory_space<vmem>>, vector<1x64x128xbf16>
    %32 = vector.shape_cast %31 : vector<1x64x128xbf16> to vector<64x128xbf16>
    %cst_31 = arith.constant dense<0.000000e+00> : vector<22x128xf32>
    %33 = tpu.matmul %30, %32, %cst_31 {dimension_numbers = #tpu.dot_dimension_numbers<[1], [0], [0], [1], [0, 0, 1, 1], [], []>} : vector<22x64xbf16>, vector<64x128xbf16>, vector<22x128xf32> -> vector<22x128xf32>
    %34 = arith.addf %28, %33 : vector<22x128xf32>
    %c0_32 = arith.constant 0 : index
    %c12 = arith.constant 12 : index
    %c0_33 = arith.constant 0 : index
    %35 = vector.load %arg1[%c0_32, %c12, %c0_33] : memref<1x36x64xbf16, #tpu.memory_space<vmem>>, vector<1x22x64xbf16>
    %36 = vector.shape_cast %35 : vector<1x22x64xbf16> to vector<22x64xbf16>
    %c6_34 = arith.constant 6 : index
    %c0_35 = arith.constant 0 : index
    %c0_36 = arith.constant 0 : index
    %37 = vector.load %arg2[%c6_34, %c0_35, %c0_36] : memref<9x64x128xbf16, #tpu.memory_space<vmem>>, vector<1x64x128xbf16>
    %38 = vector.shape_cast %37 : vector<1x64x128xbf16> to vector<64x128xbf16>
    %cst_37 = arith.constant dense<0.000000e+00> : vector<22x128xf32>
    %39 = tpu.matmul %36, %38, %cst_37 {dimension_numbers = #tpu.dot_dimension_numbers<[1], [0], [0], [1], [0, 0, 1, 1], [], []>} : vector<22x64xbf16>, vector<64x128xbf16>, vector<22x128xf32> -> vector<22x128xf32>
    %40 = arith.addf %34, %39 : vector<22x128xf32>
    %c0_38 = arith.constant 0 : index
    %c13 = arith.constant 13 : index
    %c0_39 = arith.constant 0 : index
    %41 = vector.load %arg1[%c0_38, %c13, %c0_39] : memref<1x36x64xbf16, #tpu.memory_space<vmem>>, vector<1x22x64xbf16>
    %42 = vector.shape_cast %41 : vector<1x22x64xbf16> to vector<22x64xbf16>
    %c7_40 = arith.constant 7 : index
    %c0_41 = arith.constant 0 : index
    %c0_42 = arith.constant 0 : index
    %43 = vector.load %arg2[%c7_40, %c0_41, %c0_42] : memref<9x64x128xbf16, #tpu.memory_space<vmem>>, vector<1x64x128xbf16>
    %44 = vector.shape_cast %43 : vector<1x64x128xbf16> to vector<64x128xbf16>
    %cst_43 = arith.constant dense<0.000000e+00> : vector<22x128xf32>
    %45 = tpu.matmul %42, %44, %cst_43 {dimension_numbers = #tpu.dot_dimension_numbers<[1], [0], [0], [1], [0, 0, 1, 1], [], []>} : vector<22x64xbf16>, vector<64x128xbf16>, vector<22x128xf32> -> vector<22x128xf32>
    %46 = arith.addf %40, %45 : vector<22x128xf32>
    %c0_44 = arith.constant 0 : index
    %c14 = arith.constant 14 : index
    %c0_45 = arith.constant 0 : index
    %47 = vector.load %arg1[%c0_44, %c14, %c0_45] : memref<1x36x64xbf16, #tpu.memory_space<vmem>>, vector<1x22x64xbf16>
    %48 = vector.shape_cast %47 : vector<1x22x64xbf16> to vector<22x64xbf16>
    %c8_46 = arith.constant 8 : index
    %c0_47 = arith.constant 0 : index
    %c0_48 = arith.constant 0 : index
    %49 = vector.load %arg2[%c8_46, %c0_47, %c0_48] : memref<9x64x128xbf16, #tpu.memory_space<vmem>>, vector<1x64x128xbf16>
    %50 = vector.shape_cast %49 : vector<1x64x128xbf16> to vector<64x128xbf16>
    %cst_49 = arith.constant dense<0.000000e+00> : vector<22x128xf32>
    %51 = tpu.matmul %48, %50, %cst_49 {dimension_numbers = #tpu.dot_dimension_numbers<[1], [0], [0], [1], [0, 0, 1, 1], [], []>} : vector<22x64xbf16>, vector<64x128xbf16>, vector<22x128xf32> -> vector<22x128xf32>
    %52 = arith.addf %46, %51 : vector<22x128xf32>
    %c0_50 = arith.constant 0 : index
    %c0_51 = arith.constant 0 : index
    %53 = vector.load %arg3[%c0_50, %c0_51] : memref<1x128xf32, #tpu.memory_space<vmem>>, vector<1x128xf32>
    %54 = vector.broadcast %53 : vector<1x128xf32> to vector<22x128xf32>
    %55 = arith.mulf %52, %54 : vector<22x128xf32>
    %c0_52 = arith.constant 0 : index
    %c0_53 = arith.constant 0 : index
    %56 = vector.load %arg4[%c0_52, %c0_53] : memref<1x128xf32, #tpu.memory_space<vmem>>, vector<1x128xf32>
    %57 = vector.broadcast %56 : vector<1x128xf32> to vector<22x128xf32>
    %58 = arith.addf %55, %57 : vector<22x128xf32>
    %cst_54 = arith.constant 0.000000e+00 : f32
    %59 = vector.broadcast %cst_54 : f32 to vector<22x128xf32>
    %60 = arith.maximumf %58, %59 : vector<22x128xf32>
    %61 = arith.truncf %60 : vector<22x128xf32> to vector<22x128xbf16>
    %c0_55 = arith.constant 0 : index
    %c0_56 = arith.constant 0 : index
    %c0_57 = arith.constant 0 : index
    %62 = vector.load %arg5[%c0_55, %c0_56, %c0_57] : memref<4x4x22xbf16, #tpu.memory_space<vmem>>, vector<1x4x22xbf16>
    %63 = vector.shape_cast %62 : vector<1x4x22xbf16> to vector<4x22xbf16>
    %cst_58 = arith.constant dense<0.000000e+00> : vector<4x128xf32>
    %64 = tpu.matmul %63, %61, %cst_58 {dimension_numbers = #tpu.dot_dimension_numbers<[1], [0], [0], [1], [0, 0, 1, 1], [], []>} : vector<4x22xbf16>, vector<22x128xbf16>, vector<4x128xf32> -> vector<4x128xf32>
    %c1_59 = arith.constant 1 : index
    %c0_60 = arith.constant 0 : index
    %c0_61 = arith.constant 0 : index
    %65 = vector.load %arg5[%c1_59, %c0_60, %c0_61] : memref<4x4x22xbf16, #tpu.memory_space<vmem>>, vector<1x4x22xbf16>
    %66 = vector.shape_cast %65 : vector<1x4x22xbf16> to vector<4x22xbf16>
    %cst_62 = arith.constant dense<0.000000e+00> : vector<4x128xf32>
    %67 = tpu.matmul %66, %61, %cst_62 {dimension_numbers = #tpu.dot_dimension_numbers<[1], [0], [0], [1], [0, 0, 1, 1], [], []>} : vector<4x22xbf16>, vector<22x128xbf16>, vector<4x128xf32> -> vector<4x128xf32>
    %68 = arith.maximumf %64, %67 : vector<4x128xf32>
    %c2_63 = arith.constant 2 : index
    %c0_64 = arith.constant 0 : index
    %c0_65 = arith.constant 0 : index
    %69 = vector.load %arg5[%c2_63, %c0_64, %c0_65] : memref<4x4x22xbf16, #tpu.memory_space<vmem>>, vector<1x4x22xbf16>
    %70 = vector.shape_cast %69 : vector<1x4x22xbf16> to vector<4x22xbf16>
    %cst_66 = arith.constant dense<0.000000e+00> : vector<4x128xf32>
    %71 = tpu.matmul %70, %61, %cst_66 {dimension_numbers = #tpu.dot_dimension_numbers<[1], [0], [0], [1], [0, 0, 1, 1], [], []>} : vector<4x22xbf16>, vector<22x128xbf16>, vector<4x128xf32> -> vector<4x128xf32>
    %72 = arith.maximumf %68, %71 : vector<4x128xf32>
    %c3_67 = arith.constant 3 : index
    %c0_68 = arith.constant 0 : index
    %c0_69 = arith.constant 0 : index
    %73 = vector.load %arg5[%c3_67, %c0_68, %c0_69] : memref<4x4x22xbf16, #tpu.memory_space<vmem>>, vector<1x4x22xbf16>
    %74 = vector.shape_cast %73 : vector<1x4x22xbf16> to vector<4x22xbf16>
    %cst_70 = arith.constant dense<0.000000e+00> : vector<4x128xf32>
    %75 = tpu.matmul %74, %61, %cst_70 {dimension_numbers = #tpu.dot_dimension_numbers<[1], [0], [0], [1], [0, 0, 1, 1], [], []>} : vector<4x22xbf16>, vector<22x128xbf16>, vector<4x128xf32> -> vector<4x128xf32>
    %76 = arith.maximumf %72, %75 : vector<4x128xf32>
    %77 = arith.truncf %76 : vector<4x128xf32> to vector<4x128xbf16>
    %c0_71 = arith.constant 0 : index
    %c0_72 = arith.constant 0 : index
    %c0_73 = arith.constant 0 : index
    %78 = vector.load %arg6[%c0_71, %c0_72, %c0_73] : memref<1x4x128xbf16, #tpu.memory_space<vmem>>, vector<1x4x128xbf16>
    %79 = vector.shape_cast %78 : vector<1x4x128xbf16> to vector<4x128xbf16>
    %80 = vector.shape_cast %77 : vector<4x128xbf16> to vector<1x4x128xbf16>
    tpu.vector_store %arg6[%c0_71, %c0_72, %c0_73], %80 {strides = array<i32>} : memref<1x4x128xbf16, #tpu.memory_space<vmem>>, vector<1x4x128xbf16>,
    return
  }
  func.func @transform_0(%arg0: i32) -> (i32, i32, i32) {
    %c0_i32 = arith.constant 0 : i32
    %c0_i32_0 = arith.constant 0 : i32
    %c0_i32_1 = arith.constant 0 : i32
    return %arg0, %c0_i32, %c0_i32_0 : i32, i32, i32
  }
  func.func @transform_1(%arg0: i32) -> (i32, i32, i32) {
    %c0_i32 = arith.constant 0 : i32
    %c0_i32_0 = arith.constant 0 : i32
    %c0_i32_1 = arith.constant 0 : i32
    %c0_i32_2 = arith.constant 0 : i32
    return %c0_i32, %c0_i32_0, %c0_i32_1 : i32, i32, i32
  }
  func.func @transform_2(%arg0: i32) -> (i32, i32) {
    %c0_i32 = arith.constant 0 : i32
    %c0_i32_0 = arith.constant 0 : i32
    %c0_i32_1 = arith.constant 0 : i32
    return %c0_i32, %c0_i32_0 : i32, i32
  }
  func.func @transform_3(%arg0: i32) -> (i32, i32) {
    %c0_i32 = arith.constant 0 : i32
    %c0_i32_0 = arith.constant 0 : i32
    %c0_i32_1 = arith.constant 0 : i32
    return %c0_i32, %c0_i32_0 : i32, i32
  }
  func.func @transform_4(%arg0: i32) -> (i32, i32, i32) {
    %c0_i32 = arith.constant 0 : i32
    %c0_i32_0 = arith.constant 0 : i32
    %c0_i32_1 = arith.constant 0 : i32
    %c0_i32_2 = arith.constant 0 : i32
    return %c0_i32, %c0_i32_0, %c0_i32_1 : i32, i32, i32
  }
  func.func @transform_5(%arg0: i32) -> (i32, i32, i32) {
    %c0_i32 = arith.constant 0 : i32
    %c0_i32_0 = arith.constant 0 : i32
    %c0_i32_1 = arith.constant 0 : i32
    return %arg0, %c0_i32, %c0_i32_0 : i32, i32, i32
  }
}

module attributes {stable_mosaic.version = 11 : i64} {
  func.func @_fc_fused_kernel(%arg0: i32, %arg1: memref<2x512xbf16, #tpu.memory_space<vmem>>, %arg2: memref<512x256xbf16, #tpu.memory_space<vmem>>, %arg3: memref<1x256xf32, #tpu.memory_space<vmem>>, %arg4: memref<256x128xbf16, #tpu.memory_space<vmem>>, %arg5: memref<1x128xf32, #tpu.memory_space<vmem>>, %arg6: memref<128x128xbf16, #tpu.memory_space<vmem>>, %arg7: memref<1x128xf32, #tpu.memory_space<vmem>>, %arg8: memref<2x128xf32, #tpu.memory_space<vmem>>) attributes {dimension_semantics = [#tpu.dimension_semantics<arbitrary>], iteration_bounds = array<i64: 1>, scalar_prefetch = 0 : i64, scratch_operands = 0 : i64, tpu.core_type = #tpu.core_type<tc>, window_params = [{pipeline_mode = #tpu.pipeline_mode<synchronous>, transform_indices = @transform_0, window_bounds = array<i64: 2, 512>}, {pipeline_mode = #tpu.pipeline_mode<synchronous>, transform_indices = @transform_1, window_bounds = array<i64: 512, 256>}, {pipeline_mode = #tpu.pipeline_mode<synchronous>, transform_indices = @transform_2, window_bounds = array<i64: 1, 256>}, {pipeline_mode = #tpu.pipeline_mode<synchronous>, transform_indices = @transform_3, window_bounds = array<i64: 256, 128>}, {pipeline_mode = #tpu.pipeline_mode<synchronous>, transform_indices = @transform_4, window_bounds = array<i64: 1, 128>}, {pipeline_mode = #tpu.pipeline_mode<synchronous>, transform_indices = @transform_5, window_bounds = array<i64: 128, 128>}, {pipeline_mode = #tpu.pipeline_mode<synchronous>, transform_indices = @transform_6, window_bounds = array<i64: 1, 128>}, {pipeline_mode = #tpu.pipeline_mode<synchronous>, transform_indices = @transform_7, window_bounds = array<i64: 2, 128>}]} {
    %c0 = arith.constant 0 : index
    %c0_0 = arith.constant 0 : index
    %0 = vector.load %arg1[%c0, %c0_0] : memref<2x512xbf16, #tpu.memory_space<vmem>>, vector<2x512xbf16>
    %c0_1 = arith.constant 0 : index
    %c0_2 = arith.constant 0 : index
    %1 = vector.load %arg2[%c0_1, %c0_2] : memref<512x256xbf16, #tpu.memory_space<vmem>>, vector<512x256xbf16>
    %cst = arith.constant dense<0.000000e+00> : vector<2x256xf32>
    %2 = tpu.matmul %0, %1, %cst {dimension_numbers = #tpu.dot_dimension_numbers<[1], [0], [0], [1], [0, 0, 1, 1], [], []>} : vector<2x512xbf16>, vector<512x256xbf16>, vector<2x256xf32> -> vector<2x256xf32>
    %c0_3 = arith.constant 0 : index
    %c0_4 = arith.constant 0 : index
    %3 = vector.load %arg3[%c0_3, %c0_4] : memref<1x256xf32, #tpu.memory_space<vmem>>, vector<1x256xf32>
    %4 = vector.broadcast %3 : vector<1x256xf32> to vector<2x256xf32>
    %5 = arith.addf %2, %4 : vector<2x256xf32>
    %cst_5 = arith.constant 0.000000e+00 : f32
    %6 = vector.broadcast %cst_5 : f32 to vector<2x256xf32>
    %7 = arith.maximumf %5, %6 : vector<2x256xf32>
    %8 = arith.truncf %7 : vector<2x256xf32> to vector<2x256xbf16>
    %c0_6 = arith.constant 0 : index
    %c0_7 = arith.constant 0 : index
    %9 = vector.load %arg4[%c0_6, %c0_7] : memref<256x128xbf16, #tpu.memory_space<vmem>>, vector<256x128xbf16>
    %cst_8 = arith.constant dense<0.000000e+00> : vector<2x128xf32>
    %10 = tpu.matmul %8, %9, %cst_8 {dimension_numbers = #tpu.dot_dimension_numbers<[1], [0], [0], [1], [0, 0, 1, 1], [], []>} : vector<2x256xbf16>, vector<256x128xbf16>, vector<2x128xf32> -> vector<2x128xf32>
    %c0_9 = arith.constant 0 : index
    %c0_10 = arith.constant 0 : index
    %11 = vector.load %arg5[%c0_9, %c0_10] : memref<1x128xf32, #tpu.memory_space<vmem>>, vector<1x128xf32>
    %12 = vector.broadcast %11 : vector<1x128xf32> to vector<2x128xf32>
    %13 = arith.addf %10, %12 : vector<2x128xf32>
    %cst_11 = arith.constant 0.000000e+00 : f32
    %14 = vector.broadcast %cst_11 : f32 to vector<2x128xf32>
    %15 = arith.maximumf %13, %14 : vector<2x128xf32>
    %16 = arith.truncf %15 : vector<2x128xf32> to vector<2x128xbf16>
    %c0_12 = arith.constant 0 : index
    %c0_13 = arith.constant 0 : index
    %17 = vector.load %arg6[%c0_12, %c0_13] : memref<128x128xbf16, #tpu.memory_space<vmem>>, vector<128x128xbf16>
    %cst_14 = arith.constant dense<0.000000e+00> : vector<2x128xf32>
    %18 = tpu.matmul %16, %17, %cst_14 {dimension_numbers = #tpu.dot_dimension_numbers<[1], [0], [0], [1], [0, 0, 1, 1], [], []>} : vector<2x128xbf16>, vector<128x128xbf16>, vector<2x128xf32> -> vector<2x128xf32>
    %c0_15 = arith.constant 0 : index
    %c0_16 = arith.constant 0 : index
    %19 = vector.load %arg7[%c0_15, %c0_16] : memref<1x128xf32, #tpu.memory_space<vmem>>, vector<1x128xf32>
    %20 = vector.broadcast %19 : vector<1x128xf32> to vector<2x128xf32>
    %21 = arith.addf %18, %20 : vector<2x128xf32>
    %c0_17 = arith.constant 0 : index
    %c0_18 = arith.constant 0 : index
    %22 = vector.load %arg8[%c0_17, %c0_18] : memref<2x128xf32, #tpu.memory_space<vmem>>, vector<2x128xf32>
    tpu.vector_store %arg8[%c0_17, %c0_18], %21 {strides = array<i32>} : memref<2x128xf32, #tpu.memory_space<vmem>>, vector<2x128xf32>,
    return
  }
  func.func @transform_0(%arg0: i32) -> (i32, i32) {
    %c0_i32 = arith.constant 0 : i32
    %c0_i32_0 = arith.constant 0 : i32
    %c0_i32_1 = arith.constant 0 : i32
    return %c0_i32, %c0_i32_0 : i32, i32
  }
  func.func @transform_1(%arg0: i32) -> (i32, i32) {
    %c0_i32 = arith.constant 0 : i32
    %c0_i32_0 = arith.constant 0 : i32
    %c0_i32_1 = arith.constant 0 : i32
    return %c0_i32, %c0_i32_0 : i32, i32
  }
  func.func @transform_2(%arg0: i32) -> (i32, i32) {
    %c0_i32 = arith.constant 0 : i32
    %c0_i32_0 = arith.constant 0 : i32
    %c0_i32_1 = arith.constant 0 : i32
    return %c0_i32, %c0_i32_0 : i32, i32
  }
  func.func @transform_3(%arg0: i32) -> (i32, i32) {
    %c0_i32 = arith.constant 0 : i32
    %c0_i32_0 = arith.constant 0 : i32
    %c0_i32_1 = arith.constant 0 : i32
    return %c0_i32, %c0_i32_0 : i32, i32
  }
  func.func @transform_4(%arg0: i32) -> (i32, i32) {
    %c0_i32 = arith.constant 0 : i32
    %c0_i32_0 = arith.constant 0 : i32
    %c0_i32_1 = arith.constant 0 : i32
    return %c0_i32, %c0_i32_0 : i32, i32
  }
  func.func @transform_5(%arg0: i32) -> (i32, i32) {
    %c0_i32 = arith.constant 0 : i32
    %c0_i32_0 = arith.constant 0 : i32
    %c0_i32_1 = arith.constant 0 : i32
    return %c0_i32, %c0_i32_0 : i32, i32
  }
  func.func @transform_6(%arg0: i32) -> (i32, i32) {
    %c0_i32 = arith.constant 0 : i32
    %c0_i32_0 = arith.constant 0 : i32
    %c0_i32_1 = arith.constant 0 : i32
    return %c0_i32, %c0_i32_0 : i32, i32
  }
  func.func @transform_7(%arg0: i32) -> (i32, i32) {
    %c0_i32 = arith.constant 0 : i32
    %c0_i32_0 = arith.constant 0 : i32
    %c0_i32_1 = arith.constant 0 : i32
    return %c0_i32, %c0_i32_0 : i32, i32
  }
}

</mosaic_0001>

<bundles_post_ra>
// kernel: cnn_forward.7
= control target key start
LH: loop header
LB: loop body
LE: loop exit
PB: predicated region body
PF: predicated region fallthrough
CT: control target
= control target key end

     0   :  { %v95_v9 = vlaneseq  ;;  %v1139_v10 = vmov 1966171168   ;;  %s1495_s0 = inlined_call_operand.vmem [shape: bf16[2,512], index: 0, kind: input, shape index: {}]   ;;  %s1496_s1 = inlined_call_operand.vmem [shape: bf16[512,256], index: 1, kind: input, shape index: {}]   ;;  %s1497_s2 = inlined_call_operand.vmem [shape: f32[1,256], index: 2, kind: input, shape index: {}]   ;;  %s1498_s3 = inlined_call_operand.vmem [shape: bf16[256,128], index: 3, kind: input, shape index: {}]   ;;  %s1499_s4 = inlined_call_operand.vmem [shape: f32[1,128], index: 4, kind: input, shape index: {}]   ;;  %s1500_s5 = inlined_call_operand.vmem [shape: bf16[128,128], index: 5, kind: input, shape index: {}]   ;;  %s1501_s6 = inlined_call_operand.vmem [shape: f32[1,128], index: 6, kind: input, shape index: {}]   ;;  %s1502_s7 = inlined_call_operand.hbm [shape: f32[2,128], index: 7, kind: output, shape index: {}]  }
   0x1   :  { %v995_v0 = vld [vmem:[%s1496_s1 + $0x4] ss:$8 sps:$4 sm:$0xff]   ;;  %v997_v1 = vld [vmem:[%s1496_s1] ss:$8 sps:$4 sm:$0xff]   ;;  %v998_v2 = vld [vmem:[%s1496_s1 + $0x14] ss:$8 sps:$4 sm:$0xff]   ;;  %v115_v11 = vunpack.c.l.s4 %v1139_v10 }
   0x2   :  { %454 = vmatprep.subr.bf16.mxu0 %v995_v0  ;;  %v1000_v3 = vld [vmem:[%s1496_s1 + $0x10] ss:$8 sps:$4 sm:$0xff]   ;;  %v1001_v4 = vld [vmem:[%s1496_s1 + $0x24] ss:$8 sps:$4 sm:$0xff]   ;;  %v1003_v5 = vld [vmem:[%s1496_s1 + $0x20] ss:$8 sps:$4 sm:$0xff]  }
   0x3   :  { %455 = vmatpush1.bf16.msra.mxu0 %v997_v1  ;;  %v1004_v6 = vld [vmem:[%s1496_s1 + $0x34] ss:$8 sps:$4 sm:$0xff]   ;;  %v1006_v7 = vld [vmem:[%s1496_s1 + $0x30] ss:$8 sps:$4 sm:$0xff]   ;;  %v1007_v8 = vld [vmem:[%s1496_s1 + $0x44] ss:$8 sps:$4 sm:$0xff]   ;;  %v116_v15 = vunpack.c.0.s8 %v115_v11 }
   0x4   :  { %456 = vmatprep.subr.bf16.mxu0 %v998_v2  ;;  %v1009_v12 = vld [vmem:[%s1496_s1 + $0x40] ss:$8 sps:$4 sm:$0xff]   ;;  %v1010_v13 = vld [vmem:[%s1496_s1 + $0x54] ss:$8 sps:$4 sm:$0xff]   ;;  %v1216_v14 = vshrl.u32 %v95_v9, 7 }
   0x5   :  { %v1012_v16 = vld [vmem:[%s1496_s1 + $0x50] ss:$8 sps:$4 sm:$0xff]   ;;  %v1013_v17 = vld [vmem:[%s1496_s1 + $0x64] ss:$8 sps:$4 sm:$0xff]   ;;  %v1015_v21 = vld [vmem:[%s1496_s1 + $0x60] ss:$8 sps:$4 sm:$0xff]  }
   0x6   :  { %v1225_v18 = vsub.s32 %v116_v15, %v1216_v14  ;;  %v1230_v19 = vld.sshfl [vmem:[%s1495_s0] sm:$0x33 pattern:$0x75316420]  ;;  %v1016_v22 = vld [vmem:[%s1496_s1 + $0x74] ss:$8 sps:$4 sm:$0xff]  }
   0x7   :  { %457 = vmatpush1.bf16.msra.mxu0 %v1000_v3  ;;  %v113_v20 = vcombine.high %v1230_v19, %v1230_v19  ;;  %v1018_v24 = vld [vmem:[%s1496_s1 + $0x70] ss:$8 sps:$4 sm:$0xff]   ;;  %v1019_v25 = vld [vmem:[%s1496_s1 + $0x84] ss:$8 sps:$4 sm:$0xff]   ;;  %v1021_v26 = vld [vmem:[%s1496_s1 + $0x80] ss:$8 sps:$4 sm:$0xff]  }
   0x8   :  { %458 = vmatprep.subr.bf16.mxu0 %v1001_v4  ;;  %v1022_v27 = vld [vmem:[%s1496_s1 + $0x94] ss:$8 sps:$4 sm:$0xff]   ;;  %v1024_v28 = vld [vmem:[%s1496_s1 + $0x90] ss:$8 sps:$4 sm:$0xff]   ;;  %v1025_v29 = vld [vmem:[%s1496_s1 + $0xa4] ss:$8 sps:$4 sm:$0xff]   ;;  %v1336_v54 = vrot.slane %v1230_v19, %v1225_v18 }
   0x9   :  { %v1241_v23 = vrot.slane %v113_v20, %v1225_v18  ;;  %v1027_v30 = vld [vmem:[%s1496_s1 + $0xa0] ss:$8 sps:$4 sm:$0xff]   ;;  %v1028_v31 = vld [vmem:[%s1496_s1 + $0xb4] ss:$8 sps:$4 sm:$0xff]   ;;  %v1030_v32 = vld [vmem:[%s1496_s1 + $0xb0] ss:$8 sps:$4 sm:$0xff]  }
   0xa   :  { %v1031_v33 = vld [vmem:[%s1496_s1 + $0xc4] ss:$8 sps:$4 sm:$0xff]   ;;  %v1033_v35 = vld [vmem:[%s1496_s1 + $0xc0] ss:$8 sps:$4 sm:$0xff]   ;;  %v1034_v37 = vld [vmem:[%s1496_s1 + $0xd4] ss:$8 sps:$4 sm:$0xff]  }
   0xb   :  { %459 = vmatpush1.bf16.msra.mxu0 %v1003_v5  ;;  %486 = vmatprep.mubr.bf16.mxu0 %v1241_v23  ;;  %v1091_v34 = vld [vmem:[%s1498_s3 + $0x40] sm:$0xff]   ;;  %v1093_v38 = vld [vmem:[%s1498_s3 + $0x48] sm:$0xff]   ;;  %v1095_v40 = vld [vmem:[%s1498_s3 + $0x50] sm:$0xff]   ;;  %v129_v55 = vcombine.high %v1241_v23, %v1241_v23 }
   0xc   :  { %460 = vmatprep.subr.bf16.mxu0 %v1004_v6  ;;  %v1092_v36 = vld [vmem:[%s1498_s3] sm:$0xff]   ;;  %934 = vmatprep.subr.bf16.mxu1 %v1091_v34  ;;  %v1094_v39 = vld [vmem:[%s1498_s3 + $0x8] sm:$0xff]   ;;  %v1036_v41 = vld [vmem:[%s1496_s1 + $0xd0] ss:$8 sps:$4 sm:$0xff]  }
   0xd   :  { %935 = vmatpush3.bf16.msra.mxu1 %v1092_v36  ;;  %v1037_v42 = vld [vmem:[%s1496_s1 + $0xe4] ss:$8 sps:$4 sm:$0xff]   ;;  %v1096_v43 = vld [vmem:[%s1498_s3 + $0x10] sm:$0xff]   ;;  %v1097_v44 = vld [vmem:[%s1498_s3 + $0x58] sm:$0xff]  }
   0xe   :  { %936 = vmatprep.subr.bf16.mxu1 %v1093_v38  ;;  %v1039_v45 = vld [vmem:[%s1496_s1 + $0xe0] ss:$8 sps:$4 sm:$0xff]   ;;  %v1040_v46 = vld [vmem:[%s1496_s1 + $0xf4] ss:$8 sps:$4 sm:$0xff]   ;;  %v1042_v49 = vld [vmem:[%s1496_s1 + $0xf0] ss:$8 sps:$4 sm:$0xff]  }
   0xf   :  { %461 = vmatpush1.bf16.msra.mxu0 %v1006_v7  ;;  %v1098_v47 = vld [vmem:[%s1498_s3 + $0x18] sm:$0xff]   ;;  %v1099_v48 = vld [vmem:[%s1498_s3 + $0x60] sm:$0xff]   ;;  %v1101_v52 = vld [vmem:[%s1498_s3 + $0x68] sm:$0xff]  }
  0x10   :  { %462 = vmatprep.subr.bf16.mxu0 %v1007_v8  ;;  %v1100_v50 = vld [vmem:[%s1498_s3 + $0x20] sm:$0xff]  }
  0x11   :  { %937 = vmatpush3.bf16.msra.mxu1 %v1094_v39  ;;  %v1045_v51 = vld [vmem:[%s1496_s1 + $0x104] ss:$8 sps:$4 sm:$0xff]   ;;  %v1043_v53 = vld [vmem:[%s1496_s1 + $0x100] ss:$8 sps:$4 sm:$0xff]  }
  0x12   :  { %938 = vmatprep.subr.bf16.mxu1 %v1095_v40 }
  0x13   :  { %463 = vmatpush1.bf16.msra.mxu0 %v1009_v12 }
  0x14   :  { %464 = vmatprep.subr.bf16.mxu0 %v1010_v13 }
  0x15   :  { %939 = vmatpush3.bf16.msra.mxu1 %v1096_v43 }
  0x16   :  { %940 = vmatprep.subr.bf16.mxu1 %v1097_v44 }
  0x17   :  { %465 = vmatpush1.bf16.msra.mxu0 %v1012_v16 }
  0x18   :  { %466 = vmatprep.subr.bf16.mxu0 %v1013_v17 }
  0x19   :  { %941 = vmatpush3.bf16.msra.mxu1 %v1098_v47 }
  0x1a   :  { %942 = vmatprep.subr.bf16.mxu1 %v1099_v48 }
  0x1b   :  { %467 = vmatpush1.bf16.msra.mxu0 %v1015_v21 }
  0x1c   :  { %468 = vmatprep.subr.bf16.mxu0 %v1016_v22 }
  0x1d   :  { %943 = vmatpush3.bf16.msra.mxu1 %v1100_v50 }
  0x1f   :  { %469 = vmatpush1.bf16.msra.mxu0 %v1018_v24 }
  0x20   :  { %470 = vmatprep.subr.bf16.mxu0 %v1019_v25 }
  0x23   :  { %471 = vmatpush1.bf16.msra.mxu0 %v1021_v26 }
  0x24   :  { %472 = vmatprep.subr.bf16.mxu0 %v1022_v27 }
  0x27   :  { %473 = vmatpush1.bf16.msra.mxu0 %v1024_v28 }
  0x28   :  { %474 = vmatprep.subr.bf16.mxu0 %v1025_v29 }
  0x2b   :  { %475 = vmatpush1.bf16.msra.mxu0 %v1027_v30 }
  0x2c   :  { %476 = vmatprep.subr.bf16.mxu0 %v1028_v31 }
  0x2f   :  { %477 = vmatpush1.bf16.msra.mxu0 %v1030_v32 }
  0x30   :  { %478 = vmatprep.subr.bf16.mxu0 %v1031_v33 }
  0x33   :  { %479 = vmatpush1.bf16.msra.mxu0 %v1033_v35 }
  0x34   :  { %480 = vmatprep.subr.bf16.mxu0 %v1034_v37 }
  0x37   :  { %481 = vmatpush1.bf16.msra.mxu0 %v1036_v41 }
  0x38   :  { %482 = vmatprep.subr.bf16.mxu0 %v1037_v42 }
  0x3b   :  { %483 = vmatpush1.bf16.msra.mxu0 %v1039_v45 }
  0x3c   :  { %484 = vmatprep.subr.bf16.mxu0 %v1040_v46 }
  0x3f   :  { %485 = vmatpush1.bf16.msra.mxu0 %v1042_v49 }
  0x40   :  { %12 = vsyncpa [#allocation3], 0  ;;  %495 = vmatprep.subr.bf16.mxu0 %v1045_v51  ;;  %v1048_v56 = vld [vmem:[%s1496_s1 + $0x114] ss:$8 sps:$4 sm:$0xff]   ;;  %944 = vmatprep.subr.bf16.mxu1 %v1101_v52  ;;  %v1102_v57 = vld [vmem:[%s1498_s3 + $0x28] sm:$0xff]   ;;  %v128_v24 = vcombine.high %v1336_v54, %v1336_v54  ;;  %v1140_v29 = vmov 0.0  }
  0x41   :  { %v1046_v58 = vld [vmem:[%s1496_s1 + $0x110] ss:$8 sps:$4 sm:$0xff]   ;;  %v1051_v59 = vld [vmem:[%s1496_s1 + $0x124] ss:$8 sps:$4 sm:$0xff]   ;;  %945 = vmatpush3.bf16.msra.mxu1 %v1102_v57  ;;  %v1049_v60 = vld [vmem:[%s1496_s1 + $0x120] ss:$8 sps:$4 sm:$0xff]  }
  0x42   :  { %487 = vmatmul.mubr.bf16.vlgmr.msra.gmra.mrb[0].mxu0 %v1336_v54  ;;  %v1054_v61 = vld [vmem:[%s1496_s1 + $0x134] ss:$8 sps:$4 sm:$0xff]   ;;  %v1052_v62 = vld [vmem:[%s1496_s1 + $0x130] ss:$8 sps:$4 sm:$0xff]   ;;  %v1057_v63 = vld [vmem:[%s1496_s1 + $0x144] ss:$8 sps:$4 sm:$0xff]  }
  0x43   :  { %496 = vmatpush1.bf16.msra.mxu0 %v1043_v53  ;;  %527 = vmatprep.mubr.bf16.mxu0 %v129_v55  ;;  %v1055_v0 = vld [vmem:[%s1496_s1 + $0x140] ss:$8 sps:$4 sm:$0xff]   ;;  %v1060_v1 = vld [vmem:[%s1496_s1 + $0x154] ss:$8 sps:$4 sm:$0xff]   ;;  %v1058_v2 = vld [vmem:[%s1496_s1 + $0x150] ss:$8 sps:$4 sm:$0xff]  }
  0x44   :  { %497 = vmatprep.subr.bf16.mxu0 %v1048_v56  ;;  %v1063_v3 = vld [vmem:[%s1496_s1 + $0x164] ss:$8 sps:$4 sm:$0xff]   ;;  %v1061_v4 = vld [vmem:[%s1496_s1 + $0x160] ss:$8 sps:$4 sm:$0xff]   ;;  %v1066_v5 = vld [vmem:[%s1496_s1 + $0x174] ss:$8 sps:$4 sm:$0xff]  }
  0x45   :  { %v1064_v6 = vld [vmem:[%s1496_s1 + $0x170] ss:$8 sps:$4 sm:$0xff]   ;;  %v1069_v7 = vld [vmem:[%s1496_s1 + $0x184] ss:$8 sps:$4 sm:$0xff]   ;;  %v1067_v8 = vld [vmem:[%s1496_s1 + $0x180] ss:$8 sps:$4 sm:$0xff]  }
  0x46   :  { %v1072_v9 = vld [vmem:[%s1496_s1 + $0x194] ss:$8 sps:$4 sm:$0xff]   ;;  %v1070_v10 = vld [vmem:[%s1496_s1 + $0x190] ss:$8 sps:$4 sm:$0xff]   ;;  %v1075_v11 = vld [vmem:[%s1496_s1 + $0x1a4] ss:$8 sps:$4 sm:$0xff]  }
  0x47   :  { %498 = vmatpush1.bf16.msra.mxu0 %v1046_v58  ;;  %v1073_v12 = vld [vmem:[%s1496_s1 + $0x1a0] ss:$8 sps:$4 sm:$0xff]   ;;  %v1078_v13 = vld [vmem:[%s1496_s1 + $0x1b4] ss:$8 sps:$4 sm:$0xff]   ;;  %v1076_v15 = vld [vmem:[%s1496_s1 + $0x1b0] ss:$8 sps:$4 sm:$0xff]  }
  0x48   :  { %499 = vmatprep.subr.bf16.mxu0 %v1051_v59  ;;  %v1081_v16 = vld [vmem:[%s1496_s1 + $0x1c4] ss:$8 sps:$4 sm:$0xff]   ;;  %v1079_v17 = vld [vmem:[%s1496_s1 + $0x1c0] ss:$8 sps:$4 sm:$0xff]   ;;  %v1084_v18 = vld [vmem:[%s1496_s1 + $0x1d4] ss:$8 sps:$4 sm:$0xff]  }
  0x49   :  { %v1082_v19 = vld [vmem:[%s1496_s1 + $0x1d0] ss:$8 sps:$4 sm:$0xff]   ;;  %v1087_v20 = vld [vmem:[%s1496_s1 + $0x1e4] ss:$8 sps:$4 sm:$0xff]   ;;  %v1085_v21 = vld [vmem:[%s1496_s1 + $0x1e0] ss:$8 sps:$4 sm:$0xff]  }
  0x4a   :  { %v1090_v22 = vld [vmem:[%s1496_s1 + $0x1f4] ss:$8 sps:$4 sm:$0xff]   ;;  %v1088_v23 = vld [vmem:[%s1496_s1 + $0x1f0] ss:$8 sps:$4 sm:$0xff]   ;;  %v97_v30 = vsub.s32 0, %v1216_v14  ;;  %v101_v32 = vsub.s32 1, %v1216_v14 }
  0x4b   :  { %500 = vmatpush1.bf16.msra.mxu0 %v1049_v60  ;;  %v1103_v25 = vld [vmem:[%s1498_s3 + $0x70] sm:$0xff]   ;;  %v1105_v27 = vld [vmem:[%s1498_s3 + $0x78] sm:$0xff]   ;;  %v93_v31 = vld [vmem:[%s1497_s2] sm:$0x3]  ;;  %vm1141_vm0 = vmmov 0  }
  0x4c   :  { %501 = vmatprep.subr.bf16.mxu0 %v1054_v61  ;;  %v1104_v26 = vld [vmem:[%s1498_s3 + $0x30] sm:$0xff]   ;;  %946 = vmatprep.subr.bf16.mxu1 %v1103_v25  ;;  %v1106_v28 = vld [vmem:[%s1498_s3 + $0x38] sm:$0xff]   ;;  %v98_v33 = vrot.slane %v93_v31, %v97_v30  ;;  %v102_v34 = vrot.slane %v93_v31, %v101_v32  ;;  %v1107_v44 = vld [vmem:[%s1500_s5] sm:$0xff]  }
  0x4d   :  { %947 = vmatpush3.bf16.msra.mxu1 %v1104_v26  ;;  %v1108_v14 = vld [vmem:[%s1500_s5 + $0x8] sm:$0xff]   ;;  %v1109_v46 = vld [vmem:[%s1500_s5 + $0x10] sm:$0xff]   ;;  %v1110_v47 = vld [vmem:[%s1500_s5 + $0x18] sm:$0xff]  }
  0x4e   :  { %948 = vmatprep.subr.bf16.mxu1 %v1105_v27  ;;  %v1111_v48 = vld [vmem:[%s1500_s5 + $0x20] sm:$0xff]   ;;  %v1112_v49 = vld [vmem:[%s1500_s5 + $0x28] sm:$0xff]   ;;  %v1113_v50 = vld [vmem:[%s1500_s5 + $0x30] sm:$0xff]  }
  0x4f   :  { %502 = vmatpush1.bf16.msra.mxu0 %v1052_v62  ;;  %v1114_v51 = vld [vmem:[%s1500_s5 + $0x38] sm:$0xff]   ;;  %v908_v53 = vld [vmem:[%s1499_s4] ss:$0 sm:$0xff]  ;;  %s1142_s5 = smov [#allocation2]  }
  0x50   :  { %503 = vmatprep.subr.bf16.mxu0 %v1057_v63  ;;  %v925_v61 = vld [vmem:[%s1501_s6] ss:$0 sm:$0xff]  ;;  %s835_s14 = sshll.u32 %s1142_s5, 4  ;;  %s836_s14 = int_to_ptr.vmem [resolvable:$true] %s835_s14 }
  0x51   :  { %949 = vmatpush3.bf16.msra.mxu1 %v1106_v28  ;;  %s1115_s4 = scalar_lea.vmem %s836_s14, 32  ;;  %p1120_p1 = scmp.lt.s32.totalorder %s836_s14, %s836_s14 }
  0x52   :  { %965 = vmatprep.subr.bf16.mxu1 %v1140_v29  ;;  %p1116_p0 = scmp.ne.s32.totalorder %s836_s14, %s1115_s4  ;;  %p1121_p2 = scmp.lt.s32.totalorder %s1115_s4, %s1115_s4 }
  0x53   :  { %504 = vmatpush1.bf16.msra.mxu0 %v1055_v0 }
  0x54   :  { %505 = vmatprep.subr.bf16.mxu0 %v1060_v1  ;;  %p1122_p3 = por %p1121_p2, %p1120_p1 }
  0x56   :  { %p1123_p4 = pnand %p1122_p3, %p1116_p0 }
  0x57   :  { %506 = vmatpush1.bf16.msra.mxu0 %v1058_v2 }
  0x58   :  { %507 = vmatprep.subr.bf16.mxu0 %v1063_v3 }
  0x5b   :  { %508 = vmatpush1.bf16.msra.mxu0 %v1061_v4 }
  0x5c   :  { %509 = vmatprep.subr.bf16.mxu0 %v1066_v5 }
  0x5f   :  { %510 = vmatpush1.bf16.msra.mxu0 %v1064_v6 }
  0x60   :  { %511 = vmatprep.subr.bf16.mxu0 %v1069_v7 }
  0x63   :  { %512 = vmatpush1.bf16.msra.mxu0 %v1067_v8 }
  0x64   :  { %513 = vmatprep.subr.bf16.mxu0 %v1072_v9 }
  0x67   :  { %514 = vmatpush1.bf16.msra.mxu0 %v1070_v10 }
  0x68   :  { %515 = vmatprep.subr.bf16.mxu0 %v1075_v11 }
  0x6b   :  { %516 = vmatpush1.bf16.msra.mxu0 %v1073_v12 }
  0x6c   :  { %517 = vmatprep.subr.bf16.mxu0 %v1078_v13 }
  0x6f   :  { %518 = vmatpush1.bf16.msra.mxu0 %v1076_v15 }
  0x70   :  { %519 = vmatprep.subr.bf16.mxu0 %v1081_v16 }
  0x73   :  { %520 = vmatpush1.bf16.msra.mxu0 %v1079_v17 }
  0x74   :  { %521 = vmatprep.subr.bf16.mxu0 %v1084_v18 }
  0x77   :  { %522 = vmatpush1.bf16.msra.mxu0 %v1082_v19 }
  0x78   :  { %523 = vmatprep.subr.bf16.mxu0 %v1087_v20 }
  0x7b   :  { %524 = vmatpush1.bf16.msra.mxu0 %v1085_v21 }
  0x7c   :  { %525 = vmatprep.subr.bf16.mxu0 %v1090_v22 }
  0x7f   :  { %526 = vmatpush1.bf16.msra.mxu0 %v1088_v23 }
  0x82   :  { %528 = vmatmul.mubr.bf16.vlgmr.msra.gmra.mrb[0].mxu0 %v128_v24 }
 0x155   :  { %v529_v35 = vpop.f32.mrb[0].mxu0 }
 0x156   :  { %v985_v36 = vadd.f32 %v529_v35, %v98_v33  ;;  %v531_v37 = vpop.f32.mrb[1].mxu0 }
 0x157   :  { %v986_v38 = vadd.f32 %v531_v37, %v102_v34  ;;  %v533_v39 = vpop.f32.mrb[2].mxu0 }
 0x158   :  { %v536_v40 = vmax.f32 %v985_v36, 0.0  ;;  %v534_v41 = vpop.f32.mrb[3].mxu0 }
 0x159   :  { %v537_v42 = vmax.f32 %v986_v38, 0.0 }
 0x15a   :  { %v538_v45 = vpack.c.bf16 %v536_v40, %v536_v40 }
 0x15b   :  { %v539_v43 = vpack.c.bf16 %v537_v42, %v537_v42 }
 0x15d   :  { %707 = vmatprep.mubr.bf16.mxu1 %v539_v43 }
 0x15e   :  { %708 = vmatmul.mubr.bf16.vlgmr.msra.gmra.mrb[0].mxu1 %v538_v45 }
 0x15f   :  { %966 = vmatpush3.bf16.msra.mxu1 %v1107_v44  ;;  %981 = vmatprep.mubr.msk.bf16.mxu1 %vm1141_vm0, %v1140_v29 }
 0x160   :  { %967 = vmatprep.subr.bf16.mxu1 %v1140_v29 }
 0x163   :  { %968 = vmatpush3.bf16.msra.mxu1 %v1108_v14 }
 0x164   :  { %969 = vmatprep.subr.bf16.mxu1 %v1140_v29 }
 0x167   :  { %970 = vmatpush3.bf16.msra.mxu1 %v1109_v46 }
 0x168   :  { %971 = vmatprep.subr.bf16.mxu1 %v1140_v29 }
 0x16b   :  { %972 = vmatpush3.bf16.msra.mxu1 %v1110_v47 }
 0x16c   :  { %973 = vmatprep.subr.bf16.mxu1 %v1140_v29 }
 0x16f   :  { %974 = vmatpush3.bf16.msra.mxu1 %v1111_v48 }
 0x170   :  { %975 = vmatprep.subr.bf16.mxu1 %v1140_v29 }
 0x173   :  { %976 = vmatpush3.bf16.msra.mxu1 %v1112_v49 }
 0x174   :  { %977 = vmatprep.subr.bf16.mxu1 %v1140_v29 }
 0x177   :  { %978 = vmatpush3.bf16.msra.mxu1 %v1113_v50 }
 0x178   :  { %979 = vmatprep.subr.bf16.mxu1 %v1140_v29 }
 0x17b   :  { %980 = vmatpush3.bf16.msra.mxu1 %v1114_v51 }
 0x231   :  { %v950_v52 = vpop.f32.mrb[0].mxu1 }
 0x232   :  { %v951_v54 = vpop.f32.mrb[1].mxu1 }
 0x233   :  { %v952_v55 = vadd.f32 %v951_v54, %v950_v52  ;;  %v953_v56 = vpop.f32.mrb[2].mxu1 }
 0x234   :  { %v954_v57 = vpop.f32.mrb[3].mxu1 }
 0x235   :  { %v710_v58 = vadd.f32 %v952_v55, %v908_v53 }
 0x237   :  { %v715_v59 = vmax.f32 %v710_v58, 0.0 }
 0x239   :  { %v716_v60 = vpack.c.bf16 %v715_v59, %v715_v59 }
 0x23b   :  { %982 = vmatmul.mubr.bf16.vlgmr.msra.gmra.mrb[4].mxu1 %v716_v60 }
 0x30e   :  { %v822_v62 = vpop.f32.mrb[4].mxu1 }
 0x30f   :  { %v823_v63 = vadd.f32 %v925_v61, %v822_v62  ;;  %v983_v0 = vpop.f32.mrb[5].mxu1 }
 0x310   :  { %v825_v1 = vpop.f32.mrb[6].mxu1 }
 0x311   :  { %828 = vst [vmem:[#allocation2] sm:$0x3] %v823_v63  ;;  %v984_v2 = vpop.f32.mrb[7].mxu1 }
 0x312   :  { %1126 = shalt.err (!%p1123_p4)
}
 0x313   :  { %s1127_s6 = scalar_lea.hbm %s1502_s7, 32 }
 0x314   :  { %p1128_p5 = scmp.ne.s32.totalorder %s1502_s7, %s1127_s6  ;;  %p1131_p6 = scmp.lt.u32.totalorder %s1127_s6, %s1502_s7 }
 0x316   :  { %p1133_p7 = pnand %p1131_p6, %p1128_p5 }
 0x318   :  { %1136 = shalt.err (!%p1133_p7)
}
 0x319   :  { %838 = dma.vmem_to_hbm [thread:$0]  %s836_s14, 32, %s1502_s7, [#allocation3]  }
 0x31a   :  { %1137 = dma.done.wait [#allocation3], 32  }
 0x31b   :  { %1138 = vsyncadd [#allocation3], 4294967264 }
 0x31c   :  { %842 = vsyncpa [#allocation3], 1 }

// kernel: cnn_forward.6
= control target key start
LH: loop header
LB: loop body
LE: loop exit
PB: predicated region body
PF: predicated region fallthrough
CT: control target
= control target key end

     0   :  { %s1908_s18 = smov 0   ;;  %s2139_s0 = inlined_call_operand.vmem [shape: bf16[2,36,64], index: 0, kind: input, shape index: {}]   ;;  %s2140_s1 = inlined_call_operand.vmem [shape: bf16[9,64,128], index: 1, kind: input, shape index: {}]   ;;  %s2141_s2 = inlined_call_operand.vmem [shape: f32[1,128], index: 2, kind: input, shape index: {}]   ;;  %s2142_s3 = inlined_call_operand.vmem [shape: f32[1,128], index: 3, kind: input, shape index: {}]   ;;  %s2143_s4 = inlined_call_operand.vmem [shape: bf16[4,4,22], index: 4, kind: input, shape index: {}]   ;;  %s2144_s5 = inlined_call_operand.vmem [shape: bf16[2,4,128], index: 5, kind: output, shape index: {}]  }
   0x1 LB: > { %s1422_s19 = sadd.s32 4294967295, %s1874_s18   ;;  %p1426_p0 = scmp.ge.s32.totalorder %s1874_s18, 1  ;;  %s1874_s18 = sphi %s1908_s18, %s15_s18  }
   0x2   : > { %p187_p1 = scmp.lt.s32.totalorder %s1874_s18, 3 }
   0x4   : > { %p188_p2 = pnand %p1426_p0, %p187_p1 }
   0x5   : > { %v1819_v0 = vld [vmem:[%s2140_s1 + $0x60] sm:$0xff] (!%p188_p2)   ;;  %p214_p3 = scmp.lt.s32.totalorder (!%p188_p2), %s1422_s19, 1  ;;  %v1820_v1 = vld [vmem:[%s2140_s1 + $0x68] sm:$0xff] (!%p188_p2)   ;;  %v1821_v2 = vld [vmem:[%s2140_s1 + $0x70] sm:$0xff] (!%p188_p2)   ;;  %vm293_vm0 = vcmask (!%p188_p2), 523264   ;;  %vm549_vm1 = vcmask (!%p188_p2), 1044480  }
   0x6   : > { %191 = sbr.rel (%p188_p2) target bundleno = 578 (0x242), region = 40  ;;  %1673 = vmatprep.subr.bf16.mxu0 (!%p188_p2), %v1819_v0  ;;  %v1823_v3 = vld [vmem:[%s2140_s1 + $0x20] sm:$0xff] (!%p188_p2)   ;;  %v1828_v4 = vld [vmem:[%s2140_s1 + $0x28] sm:$0xff] (!%p188_p2)   ;;  %v1822_v8 = vld [vmem:[%s2140_s1 + $0x78] sm:$0xff] (!%p188_p2)   ;;  %vm253_vm2 = vsmask.f32 (!%p188_p2), 7424 }
   0x7   : > { %1674 = vmatpush3.bf16.msra.mxu0 (!%p188_p2), %v1819_v0  ;;  %1637 = vmatprep.subr.bf16.mxu1 (!%p188_p2), %v1823_v3  ;;  %v1830_v14 = vld [vmem:[%s2140_s1 + $0x30] sm:$0xff] (!%p188_p2)   ;;  %v1827_v16 = vld [vmem:[%s2140_s1 + $0x80] sm:$0xff] (!%p188_p2)   ;;  %v1832_v17 = vld [vmem:[%s2140_s1 + $0x38] sm:$0xff] (!%p188_p2)   ;;  %vm647_vm3 = vsmask.f32 (!%p188_p2), 4352  ;;  %vm441_vm4 = vcmask (!%p188_p2), 1046528  }
   0x8   : > { %1675 = vmatprep.subr.bf16.mxu0 (!%p188_p2), %v1820_v1  ;;  %1638 = vmatpush3.bf16.msra.mxu1 (!%p188_p2), %v1823_v3  ;;  %v1829_v26 = vld [vmem:[%s2140_s1 + $0x88] sm:$0xff] (!%p188_p2)   ;;  %v1836_v29 = vld [vmem:[%s2140_s1] sm:$0xff] (!%p188_p2)   ;;  %v1831_v39 = vld [vmem:[%s2140_s1 + $0x90] sm:$0xff] (!%p188_p2)   ;;  %vm861_vm5 = vcmask (!%p188_p2), 1045504   ;;  %vm959_vm6 = vsmask.f32 (!%p188_p2), 5376 }
   0x9   : > { %1639 = vmatprep.subr.bf16.mxu1 (!%p188_p2), %v1828_v4  ;;  %v1838_v46 = vld [vmem:[%s2140_s1 + $0x8] sm:$0xff] (!%p188_p2)   ;;  %v1833_v47 = vld [vmem:[%s2140_s1 + $0x98] sm:$0xff] (!%p188_p2)   ;;  %v1840_v49 = vld [vmem:[%s2140_s1 + $0x10] sm:$0xff] (!%p188_p2)   ;;  %vm1877_vm7 = vmmov (!%p188_p2), 0   ;;  %vm1185_vm8 = vcmask (!%p188_p2), 1042432   ;;  %vm1181_vm9 = vcmask (!%p188_p2), 179200  }
   0xa   : > { %v1837_v50 = vld [vmem:[%s2140_s1 + $0xa0] sm:$0xff] (!%p188_p2)   ;;  %v1842_v51 = vld [vmem:[%s2140_s1 + $0x18] sm:$0xff] (!%p188_p2)   ;;  %v1839_v52 = vld [vmem:[%s2140_s1 + $0xa8] sm:$0xff] (!%p188_p2)  }
   0xb   : > { %1676 = vmatpush3.bf16.msra.mxu0 (!%p188_p2), %v1820_v1  ;;  %v1844_v57 = vld [vmem:[%s2140_s1 + $0x40] sm:$0xff] (!%p188_p2)   ;;  %v1841_v59 = vld [vmem:[%s2140_s1 + $0xb0] sm:$0xff] (!%p188_p2)   ;;  %v1849_v1 = vld [vmem:[%s2140_s1 + $0x48] sm:$0xff] (!%p188_p2)  }
   0xc   : > { %1677 = vmatprep.subr.bf16.mxu0 (!%p188_p2), %v1821_v2  ;;  %1640 = vmatpush3.bf16.msra.mxu1 (!%p188_p2), %v1828_v4  ;;  %v1843_v3 = vld [vmem:[%s2140_s1 + $0xb8] sm:$0xff] (!%p188_p2)  }
   0xd   : > { %s2146_s19 = smov (!%p214_p3, %s1422_s19), 1  ;;  %1641 = vmatprep.subr.bf16.mxu1 %v1830_v14 }
   0xe   : > { %s1808_s28 = smul.u32 20, %s2146_s19  ;;  %s1428_s15 = sshll.u32 %s2146_s19, 1 }
   0xf   : > { %1678 = vmatpush3.bf16.msra.mxu0 %v1821_v2  ;;  %s222_s20 = scalar_lea.vmem %s2144_s5, %s1428_s15 }
  0x10   : > { %s1934_s6 = scalar_lea.vmem %s2139_s0, %s1808_s28  ;;  %1679 = vmatprep.subr.bf16.mxu0 %v1822_v8  ;;  %1642 = vmatpush3.bf16.msra.mxu1 %v1830_v14 }
  0x11   : > { %v526_v5 = vld [vmem:[%s1934_s6] sm:$0x8]  ;;  %v1941_v6 = vld [vmem:[%s1934_s6 + $0x4] sm:$0xf]  ;;  %v1944_v7 = vld [vmem:[%s1934_s6 + $0x8] sm:$0xf]  ;;  %1643 = vmatprep.subr.bf16.mxu1 %v1832_v17 }
  0x12   : > { %v529_v9 = vld [vmem:[%s1934_s6 + $0xc] sm:$0x3]  ;;  %v1475_v10 = vcombine.low %v526_v5, %v1941_v6  ;;  %v224_v21 = vld [vmem:[%s1934_s6] sm:$0xf]  ;;  %v1970_v23 = vld [vmem:[%s1934_s6 + $0x4] sm:$0xf]  ;;  %v1506_v53 = vcombine.low %v1941_v6, %v1944_v7 }
  0x13   : > { %v1476_v11 = vcombine.low %v1944_v7, %v529_v9  ;;  %v1953_v12 = vld [vmem:[%s1934_s6 + $0xc] sm:$0x7]  ;;  %v1973_v24 = vld [vmem:[%s1934_s6 + $0x8] ss:$0 sps:$4 sm:$0xff]   ;;  %1680 = vmatpush3.bf16.msra.mxu0 %v1822_v8  ;;  %v1437_v25 = vcombine.low %v224_v21, %v1970_v23  ;;  %v428_v54 = vld [vmem:[%s1934_s6] sm:$0xe] }
  0x14   : > { %v550_v13 = vrot.slane %v1475_v10, 3  ;;  %v649_v18 = vshrl.u32 %v1475_v10, 16  ;;  %v1491_v20 = vcombine.low %v1944_v7, %v1953_v12  ;;  %v652_v22 = vshll.u32 %v1475_v10, 16  ;;  %1685 = vmatprep.subr.bf16.mxu0 %v1827_v16  ;;  %1644 = vmatpush3.bf16.msra.mxu1 %v1832_v17  ;;  %v1845_v58 = vld [vmem:[%s1934_s6 + $0x8] ss:$0 sps:$4 sm:$0x77]  }
  0x15   : > { %v551_v15 = vrot.slane %v1476_v11, 3  ;;  %v262_v27 = vshll.u32 %v1973_v24, 16  ;;  %v266_v28 = vshrl.u32 %v1973_v24, 16  ;;  %v255_v31 = vshrl.u32 %v1437_v25, 16  ;;  %1649 = vmatprep.subr.bf16.mxu1 %v1836_v29  ;;  %v838_v61 = vld [vmem:[%s1934_s6 + $0x4] sm:$0xc] }
  0x16   : > { %v651_v30 = vrot.slane %v649_v18, 3  ;;  %v257_v32 = vshll.u32 %v1437_v25, 16  ;;  %v654_v33 = vrot.slane %v652_v22, 4  ;;  %v657_v34 = vshrl.u32 %v1491_v20, 16  ;;  %v839_v62 = vld [vmem:[%s1934_s6 + $0x8] sm:$0xf] }
  0x17   : > { %v552_v19 = vsel %vm549_vm1, %v550_v13, %v551_v15  ;;  %v264_v35 = vrot.slane %v262_v27, 1  ;;  %v660_v36 = vshll.u32 %v1491_v20, 16  ;;  %v1460_v55 = vcombine.low %v428_v54, %v1970_v23  ;;  %v840_v63 = vld [vmem:[%s1934_s6 + $0xc] sm:$0xf]  ;;  %v841_v0 = vld [vmem:[%s1934_s6 + $0x10] sm:$0x1] }
  0x18   : > { %1681 = vmatprep.mubr.msk.bf16.mxu0 %vm293_vm0, %v552_v19  ;;  %v259_v37 = vrot.slane %v257_v32, 1  ;;  %v659_v38 = vrot.slane %v657_v34, 3  ;;  %v655_v40 = vor.u32 %v654_v33, %v651_v30  ;;  %v443_v56 = vrot.slane %v1973_v24, 1  ;;  %v946_v4 = vld [vmem:[%s1934_s6 + $0x10] sm:$0x3]  ;;  %v1847_v9 = vld [vmem:[%s2140_s1 + $0xc0] sm:$0xff]  }
  0x19   : > { %1682 = vmatmul.mubr.msk.bf16.vlgmr.msra.gmra.mrb[0].mxu0 %vm293_vm0, %v551_v15  ;;  %v662_v41 = vrot.slane %v660_v36, 4  ;;  %v268_v43 = vor.u32 %v266_v28, %v264_v35  ;;  %v442_v60 = vrot.slane %v1460_v55, 1  ;;  %v1522_v5 = vcombine.low %v838_v61, %v839_v62  ;;  %v1851_v7 = vld [vmem:[%s2140_s1 + $0x50] sm:$0xff]   ;;  %v1058_v10 = vld [vmem:[%s1934_s6 + $0x4] sm:$0x8]  ;;  %v1853_v17 = vld [vmem:[%s2140_s1 + $0x58] sm:$0xff]  }
  0x1a   : > { %1686 = vmatpush3.bf16.msra.mxu0 %v1827_v16  ;;  %v260_v42 = vor.u32 %v259_v37, %v255_v31  ;;  %v1523_v6 = vcombine.low %v840_v63, %v841_v0  ;;  %v2044_v8 = vcombine.low %v840_v63, %v946_v4  ;;  %v1553_v14 = vcombine.low %v1058_v10, %v839_v62  ;;  %v1850_v19 = vld [vmem:[%s2140_s1 + $0xc8] sm:$0xff]   ;;  %v1854_v27 = vld [vmem:[%s2140_s1 + $0xd8] sm:$0xff]   ;;  %v1859_v32 = vld [vmem:[%s2140_s1 + $0xe0] sm:$0xff]  }
  0x1b   : > { %1687 = vmatprep.subr.bf16.mxu0 %v1829_v26  ;;  %v663_v44 = vor.u32 %v662_v41, %v659_v38  ;;  %v444_v2 = vsel %vm441_vm4, %v442_v60, %v443_v56  ;;  %v862_v11 = vrot.slane %v1522_v5, 2  ;;  %v1507_v16 = vcombine.low %v1953_v12, %v1953_v12  ;;  %v1852_v12 = vld [vmem:[%s2140_s1 + $0xd0] sm:$0xff]   ;;  %v1862_v37 = vld [vmem:[%s2140_s1 + $0xf8] sm:$0xff]   ;;  %v1863_v38 = vld [vmem:[%s2140_s1 + $0x100] sm:$0xff]  }
  0x1c   : > { %v265_v45 = vsel %vm253_vm2, %v260_v42, %v264_v35  ;;  %v863_v13 = vrot.slane %v1523_v6, 2  ;;  %v1072_v15 = vrot.slane %v2044_v8, 3  ;;  %v1071_v18 = vrot.slane %v1553_v14, 3  ;;  %v1860_v35 = vld [vmem:[%s2140_s1 + $0xe8] sm:$0xff]   ;;  %v1861_v24 = vld [vmem:[%s2140_s1 + $0xf0] sm:$0xff]   ;;  %v1866_v41 = vld [vmem:[%s2140_s1 + $0x118] sm:$0xff]  }
  0x1d   : > { %1645 = vmatprep.mubr.msk.bf16.mxu1 %vm293_vm0, %v265_v45  ;;  %v664_v48 = vsel %vm647_vm3, %v655_v40, %v663_v44  ;;  %v961_v22 = vshrl.u32 %v1522_v5, 16  ;;  %v964_v23 = vshll.u32 %v1522_v5, 16  ;;  %v1865_v40 = vld [vmem:[%s2140_s1 + $0x110] sm:$0xff]   ;;  %v1876_v42 = vmov 0.0   ;;  %v1180_v4 = vld [vmem:[%s2143_s4] sm:$0x3] }
  0x1e   : > { %1688 = vmatpush3.bf16.msra.mxu0 %v1829_v26  ;;  %1646 = vmatmul.mubr.msk.bf16.vlgmr.msra.gmra.mrb[0].mxu1 %vm293_vm0, %v268_v43  ;;  %v864_v20 = vsel %vm861_vm5, %v862_v11, %v863_v13  ;;  %v1073_v21 = vsel %vm549_vm1, %v1071_v18, %v1072_v15  ;;  %v972_v26 = vshll.u32 %v2044_v8, 16  ;;  %v1563_v5 = vld [vmem:[%s2143_s4 + $0x2] sm:$0x3]  ;;  %v1565_v6 = vld [vmem:[%s2143_s4 + $0x4] sm:$0x3] }
  0x1f   : > { %1689 = vmatprep.subr.bf16.mxu0 %v1831_v39  ;;  %1693 = vmatprep.mubr.msk.bf16.mxu0 %vm293_vm0, %v664_v48  ;;  %v963_v28 = vrot.slane %v961_v22, 2  ;;  %v1560_v48 = vld [vmem:[%s2141_s2] ss:$0 sm:$0xff] }
  0x20   : > { %1650 = vmatpush3.bf16.msra.mxu1 %v1836_v29  ;;  %1657 = vmatprep.mubr.msk.bf16.mxu1 %vm293_vm0, %v1437_v25  ;;  %v969_v25 = vshrl.u32 %v2044_v8, 16  ;;  %v966_v29 = vrot.slane %v964_v23, 3  ;;  %v974_v31 = vrot.slane %v972_v26, 3 }
  0x21   : > { %1651 = vmatprep.subr.bf16.mxu1 %v1838_v46 }
  0x22   : > { %1690 = vmatpush3.bf16.msra.mxu0 %v1831_v39  ;;  %v971_v30 = vrot.slane %v969_v25, 2  ;;  %v967_v33 = vor.u32 %v966_v29, %v963_v28  ;;  %v1864_v39 = vld [vmem:[%s2140_s1 + $0x108] sm:$0xff]  }
  0x23   : > { %1691 = vmatprep.subr.bf16.mxu0 %v1833_v47 }
  0x24   : > { %1652 = vmatpush3.bf16.msra.mxu1 %v1838_v46  ;;  %v975_v34 = vor.u32 %v974_v31, %v971_v30 }
  0x25   : > { %1653 = vmatprep.subr.bf16.mxu1 %v1840_v49 }
  0x26   : > { %1692 = vmatpush3.bf16.msra.mxu0 %v1833_v47  ;;  %v976_v36 = vsel %vm959_vm6, %v967_v33, %v975_v34 }
  0x27   : > { %1697 = vmatprep.subr.bf16.mxu0 %v1837_v50 }
  0x28   : > { %1654 = vmatpush3.bf16.msra.mxu1 %v1840_v49 }
  0x29   : > { %1694 = vmatmul.mubr.msk.bf16.vlgmr.msra.gmra.mrb[0].mxu0 %vm293_vm0, %v663_v44  ;;  %1655 = vmatprep.subr.bf16.mxu1 %v1842_v51 }
  0x2a   : > { %1698 = vmatpush3.bf16.msra.mxu0 %v1837_v50  ;;  %1705 = vmatprep.mubr.msk.bf16.mxu0 %vm293_vm0, %v1506_v53 }
  0x2b   : > { %1699 = vmatprep.subr.bf16.mxu0 %v1839_v52 }
  0x2c   : > { %1656 = vmatpush3.bf16.msra.mxu1 %v1842_v51  ;;  %v1561_v51 = vld [vmem:[%s2142_s3] ss:$0 sm:$0xff] }
  0x2d   : > { %1661 = vmatprep.subr.bf16.mxu1 %v1844_v57 }
  0x2e   : > { %1700 = vmatpush3.bf16.msra.mxu0 %v1839_v52 }
  0x2f   : > { %1701 = vmatprep.subr.bf16.mxu0 %v1841_v59  ;;  %1658 = vmatmul.mubr.msk.bf16.vlgmr.msra.gmra.mrb[0].mxu1 %vm293_vm0, %v1845_v58 }
  0x30   : > { %1662 = vmatpush3.bf16.msra.mxu1 %v1844_v57  ;;  %1669 = vmatprep.mubr.msk.bf16.mxu1 %vm293_vm0, %v444_v2 }
  0x31   : > { %1663 = vmatprep.subr.bf16.mxu1 %v1849_v1 }
  0x32   : > { %1702 = vmatpush3.bf16.msra.mxu0 %v1841_v59 }
  0x33   : > { %1703 = vmatprep.subr.bf16.mxu0 %v1843_v3 }
  0x34   : > { %1664 = vmatpush3.bf16.msra.mxu1 %v1849_v1 }
  0x35   : > { %1665 = vmatprep.subr.bf16.mxu1 %v1851_v7 }
  0x36   : > { %1704 = vmatpush3.bf16.msra.mxu0 %v1843_v3 }
  0x37   : > { %1709 = vmatprep.subr.bf16.mxu0 %v1847_v9 }
  0x38   : > { %1666 = vmatpush3.bf16.msra.mxu1 %v1851_v7  ;;  %v1567_v7 = vld [vmem:[%s2143_s4 + $0x6] sm:$0x3] }
  0x39   : > { %1706 = vmatmul.mubr.msk.bf16.vlgmr.msra.gmra.mrb[0].mxu0 %vm293_vm0, %v1507_v16  ;;  %1667 = vmatprep.subr.bf16.mxu1 %v1853_v17 }
  0x3a   : > { %1710 = vmatpush3.bf16.msra.mxu0 %v1847_v9  ;;  %1717 = vmatprep.mubr.msk.bf16.mxu0 %vm293_vm0, %v864_v20 }
  0x3b   : > { %1711 = vmatprep.subr.bf16.mxu0 %v1850_v19 }
  0x3c   : > { %1668 = vmatpush3.bf16.msra.mxu1 %v1853_v17 }
  0x3d   : > { %1745 = vmatprep.subr.bf16.mxu1 %v1876_v42 }
  0x3e   : > { %1712 = vmatpush3.bf16.msra.mxu0 %v1850_v19 }
  0x3f   : > { %1713 = vmatprep.subr.bf16.mxu0 %v1852_v12  ;;  %1670 = vmatmul.mubr.msk.bf16.vlgmr.msra.gmra.mrb[0].mxu1 %vm293_vm0, %v443_v56 }
  0x40   : > { %1749 = vmatprep.mubr.msk.bf16.mxu1 %vm1877_vm7, %v1876_v42 }
  0x42   : > { %1714 = vmatpush3.bf16.msra.mxu0 %v1852_v12 }
  0x43   : > { %1715 = vmatprep.subr.bf16.mxu0 %v1854_v27 }
  0x46   : > { %1716 = vmatpush3.bf16.msra.mxu0 %v1854_v27 }
  0x47   : > { %1721 = vmatprep.subr.bf16.mxu0 %v1859_v32 }
  0x49   : > { %1718 = vmatmul.mubr.msk.bf16.vlgmr.msra.gmra.mrb[0].mxu0 %vm293_vm0, %v863_v13 }
  0x4a   : > { %1722 = vmatpush3.bf16.msra.mxu0 %v1859_v32  ;;  %1729 = vmatprep.mubr.msk.bf16.mxu0 %vm293_vm0, %v976_v36 }
  0x4b   : > { %1723 = vmatprep.subr.bf16.mxu0 %v1860_v35 }
  0x4e   : > { %1724 = vmatpush3.bf16.msra.mxu0 %v1860_v35 }
  0x4f   : > { %1725 = vmatprep.subr.bf16.mxu0 %v1861_v24 }
  0x52   : > { %1726 = vmatpush3.bf16.msra.mxu0 %v1861_v24 }
  0x53   : > { %1727 = vmatprep.subr.bf16.mxu0 %v1862_v37 }
  0x56   : > { %1728 = vmatpush3.bf16.msra.mxu0 %v1862_v37 }
  0x57   : > { %1733 = vmatprep.subr.bf16.mxu0 %v1863_v38 }
  0x59   : > { %1730 = vmatmul.mubr.msk.bf16.vlgmr.msra.gmra.mrb[0].mxu0 %vm293_vm0, %v975_v34 }
  0x5a   : > { %1734 = vmatpush3.bf16.msra.mxu0 %v1863_v38  ;;  %1741 = vmatprep.mubr.msk.bf16.mxu0 %vm293_vm0, %v1073_v21 }
  0x5b   : > { %1735 = vmatprep.subr.bf16.mxu0 %v1864_v39 }
  0x5e   : > { %1736 = vmatpush3.bf16.msra.mxu0 %v1864_v39 }
  0x5f   : > { %1737 = vmatprep.subr.bf16.mxu0 %v1865_v40 }
  0x62   : > { %1738 = vmatpush3.bf16.msra.mxu0 %v1865_v40 }
  0x63   : > { %1739 = vmatprep.subr.bf16.mxu0 %v1866_v41 }
  0x66   : > { %1740 = vmatpush3.bf16.msra.mxu0 %v1866_v41 }
  0x69   : > { %1742 = vmatmul.mubr.msk.bf16.vlgmr.msra.gmra.mrb[0].mxu0 %vm293_vm0, %v1072_v15 }
 0x112   : > { %v1671_v43 = vpop.f32.mrb[0].mxu1 }
 0x113   : > { %v509_v44 = vpop.f32.mrb[1].mxu1 }
 0x114   : > { %v1672_v45 = vpop.f32.mrb[2].mxu1 }
 0x115   : > { %v512_v46 = vpop.f32.mrb[3].mxu1 }
 0x13c   : > { %v1743_v47 = vpop.f32.mrb[0].mxu0 }
 0x13d   : > { %v1777_v49 = vadd.f32 %v1743_v47, %v1671_v43  ;;  %v1138_v50 = vpop.f32.mrb[1].mxu0 }
 0x13e   : > { %v1778_v52 = vadd.f32 %v1138_v50, %v509_v44  ;;  %v1744_v53 = vpop.f32.mrb[2].mxu0 }
 0x13f   : > { %v1164_v54 = vmul.f32 %v1777_v49, %v1560_v48  ;;  %v1141_v55 = vpop.f32.mrb[3].mxu0 }
 0x140   : > { %v1162_v56 = vmul.f32 %v1778_v52, %v1560_v48  ;;  %v1779_v57 = vadd.f32 %v1141_v55, %v512_v46 }
 0x141   : > { %v1174_v58 = vadd.f32 %v1561_v51, %v1164_v54 }
 0x142   : > { %v1172_v59 = vadd.f32 %v1561_v51, %v1162_v56  ;;  %v1163_v60 = vmul.f32 %v1779_v57, %v1560_v48 }
 0x143   : > { %v1177_v62 = vmax.f32 %v1174_v58, 0.0 }
 0x144   : > { %v1173_v61 = vadd.f32 %v1561_v51, %v1163_v60  ;;  %v1175_v63 = vmax.f32 %v1172_v59, 0.0 }
 0x145   : > { %v1179_v2 = vpack.c.bf16 %v1177_v62, %v1177_v62 }
 0x146   : > { %v1176_v0 = vmax.f32 %v1173_v61, 0.0 }
 0x147   : > { %v1187_v3 = vsel %vm1185_vm8, %v1179_v2, 0 }
 0x148   : > { %v1178_v1 = vpack.c.bf16 %v1176_v0, %v1175_v63 }
 0x14a   : > { %1746 = vmatpush3.bf16.msra.mxu1 %v1178_v1 }
 0x14b   : > { %1747 = vmatprep.subr.bf16.mxu1 %v1876_v42 }
 0x14e   : > { %1748 = vmatpush3.bf16.msra.mxu1 %v1187_v3 }
 0x14f   : > { %1753 = vmatprep.subr.bf16.mxu1 %v1876_v42 }
 0x151   : > { %1750 = vmatmul.mubr.msk.bf16.vlgmr.msra.gmra.mrb[4].mxu1 %vm1181_vm9, %v1180_v4 }
 0x152   : > { %1754 = vmatpush3.bf16.msra.mxu1 %v1178_v1  ;;  %1757 = vmatprep.mubr.msk.bf16.mxu1 %vm1877_vm7, %v1876_v42 }
 0x153   : > { %1755 = vmatprep.subr.bf16.mxu1 %v1876_v42 }
 0x156   : > { %1756 = vmatpush3.bf16.msra.mxu1 %v1187_v3 }
 0x157   : > { %1761 = vmatprep.subr.bf16.mxu1 %v1876_v42 }
 0x159   : > { %1758 = vmatmul.mubr.msk.bf16.vlgmr.msra.gmra.mrb[8].mxu1 %vm1181_vm9, %v1563_v5 }
 0x15a   : > { %1762 = vmatpush3.bf16.msra.mxu1 %v1178_v1  ;;  %1765 = vmatprep.mubr.msk.bf16.mxu1 %vm1877_vm7, %v1876_v42 }
 0x15b   : > { %1763 = vmatprep.subr.bf16.mxu1 %v1876_v42 }
 0x15e   : > { %1764 = vmatpush3.bf16.msra.mxu1 %v1187_v3 }
 0x15f   : > { %1769 = vmatprep.subr.bf16.mxu1 %v1876_v42 }
 0x161   : > { %1766 = vmatmul.mubr.msk.bf16.vlgmr.msra.gmra.mrb[12].mxu1 %vm1181_vm9, %v1565_v6 }
 0x162   : > { %1770 = vmatpush3.bf16.msra.mxu1 %v1178_v1  ;;  %1773 = vmatprep.mubr.msk.bf16.mxu1 %vm1877_vm7, %v1876_v42 }
 0x163   : > { %1771 = vmatprep.subr.bf16.mxu1 %v1876_v42 }
 0x166   : > { %1772 = vmatpush3.bf16.msra.mxu1 %v1187_v3 }
 0x169   : > { %1774 = vmatmul.mubr.msk.bf16.vlgmr.msra.gmra.mrb[16].mxu1 %vm1181_vm9, %v1567_v7 }
 0x224   : > { %v1223_v8 = vpop.f32.mrb[4].mxu1 }
 0x225   : > { %v1751_v9 = vpop.f32.mrb[5].mxu1 }
 0x226   : > { %v1226_v10 = vpop.f32.mrb[6].mxu1 }
 0x227   : > { %v1752_v11 = vpop.f32.mrb[7].mxu1 }
 0x22c   : > { %v1268_v13 = vpop.f32.mrb[8].mxu1 }
 0x22d   : > { %v1274_v14 = vmax.f32 %v1223_v8, %v1268_v13  ;;  %v1759_v15 = vpop.f32.mrb[9].mxu1 }
 0x22e   : > { %v1271_v16 = vpop.f32.mrb[10].mxu1 }
 0x22f   : > { %v1760_v17 = vpop.f32.mrb[11].mxu1 }
 0x234   : > { %v1314_v18 = vpop.f32.mrb[12].mxu1 }
 0x235   : > { %v1320_v19 = vmax.f32 %v1274_v14, %v1314_v18  ;;  %v1767_v20 = vpop.f32.mrb[13].mxu1 }
 0x236   : > { %v1317_v21 = vpop.f32.mrb[14].mxu1 }
 0x237   : > { %v1768_v12 = vpop.f32.mrb[15].mxu1 }
 0x23c   : > { %v1360_v22 = vpop.f32.mrb[16].mxu1 }
 0x23d   : > { %v1366_v23 = vmax.f32 %v1320_v19, %v1360_v22  ;;  %v1775_v25 = vpop.f32.mrb[17].mxu1 }
 0x23e   : > { %v1363_v26 = vpop.f32.mrb[18].mxu1 }
 0x23f   : > { %v1367_v27 = vpack.c.bf16 %v1366_v23, %v1366_v23  ;;  %v1776_v28 = vpop.f32.mrb[19].mxu1 }
 0x241   : > { %1368 = vst [vmem:[%s222_s20] sm:$0x3] %v1367_v27 }
 0x242 PF: > { %s15_s18 = sadd.s32 1, %s1874_s18  }
 0x243   : > { %p12_p4 = scmp.ge.s32.totalorder %s15_s18, 4  }
 0x245   :  { %14 = sbr.rel (!%p12_p4) target bundleno = 1 (0x1), region = 81 }

// kernel: cnn_forward.5
= control target key start
LH: loop header
LB: loop body
LE: loop exit
PB: predicated region body
PF: predicated region fallthrough
CT: control target
= control target key end

     0   :  { %s2702_s18 = smov 0   ;;  %s3258_s0 = inlined_call_operand.vmem [shape: bf16[2,100,32], index: 0, kind: input, shape index: {}]   ;;  %s3259_s1 = inlined_call_operand.vmem [shape: bf16[9,32,64], index: 1, kind: input, shape index: {}]   ;;  %s3260_s2 = inlined_call_operand.vmem [shape: f32[1,64], index: 2, kind: input, shape index: {}]   ;;  %s3261_s3 = inlined_call_operand.vmem [shape: f32[1,64], index: 3, kind: input, shape index: {}]   ;;  %s3262_s4 = inlined_call_operand.vmem [shape: bf16[4,16,78], index: 4, kind: input, shape index: {}]   ;;  %s3263_s5 = inlined_call_operand.vmem [shape: bf16[2,16,64], index: 5, kind: output, shape index: {}]  }
   0x1 LB: > { %s1936_s19 = sadd.s32 4294967295, %s2668_s18   ;;  %p1940_p0 = scmp.ge.s32.totalorder %s2668_s18, 1  ;;  %s2668_s18 = sphi %s2702_s18, %s15_s18  }
   0x2   : > { %p187_p1 = scmp.lt.s32.totalorder %s2668_s18, 3 }
   0x4   : > { %p188_p2 = pnand %p1940_p0, %p187_p1 }
   0x5   : > { %v2713_v0 = vld [vmem:[%s3259_s1 + $0x30] sm:$0xff] (!%p188_p2)   ;;  %v2670_v1 = vmov (!%p188_p2), 0.0   ;;  %v2720_v2 = vld [vmem:[%s3259_s1 + $0x38] sm:$0xff] (!%p188_p2)   ;;  %vm2671_vm0 = vmmov (!%p188_p2), 0   ;;  %p215_p3 = scmp.lt.s32.totalorder (!%p188_p2), %s1936_s19, 1  ;;  %vm323_vm1 = vcmask (!%p188_p2), 261120  }
   0x6   : > { %191 = sbr.rel (%p188_p2) target bundleno = 737 (0x2e1), region = 40  ;;  %2248 = vmatprep.subr.bf16.mxu0 (!%p188_p2), %v2670_v1  ;;  %2176 = vmatprep.subr.bf16.mxu1 (!%p188_p2), %v2670_v1  ;;  %v2615_v3 = vld [vmem:[%s3259_s1 + $0x10] sm:$0xff] (!%p188_p2)   ;;  %v2619_v4 = vld [vmem:[%s3259_s1 + $0x18] sm:$0xff] (!%p188_p2)   ;;  %vm271_vm2 = vsmask.f32 (!%p188_p2), 7424  ;;  %vm520_vm3 = vcmask (!%p188_p2), 1046528  }
   0x7   : > { %2249 = vmatpush3.bf16.msra.mxu0 (!%p188_p2), %v2713_v0  ;;  %2252 = vmatprep.mubr.msk.bf16.mxu0 (!%p188_p2), %vm2671_vm0, %v2670_v1  ;;  %v2618_v7 = vld [vmem:[%s3259_s1 + $0x40] sm:$0xff] (!%p188_p2)   ;;  %v2623_v20 = vld [vmem:[%s3259_s1 + $0x48] sm:$0xff] (!%p188_p2)   ;;  %vm843_vm4 = vsmask.f32 (!%p188_p2), 6400  ;;  %v2627_v58 = vld [vmem:[%s3259_s1 + $0x50] sm:$0xff] (!%p188_p2)   ;;  %vm1012_vm5 = vcmask (!%p188_p2), 1045504  }
   0x8   : > { %2250 = vmatprep.subr.bf16.mxu0 (!%p188_p2), %v2670_v1  ;;  %2180 = vmatprep.mubr.msk.bf16.mxu1 (!%p188_p2), %vm2671_vm0, %v2670_v1  ;;  %v2633_v45 = vld [vmem:[%s3259_s1] sm:$0xff] (!%p188_p2)   ;;  %v2635_v53 = vld [vmem:[%s3259_s1 + $0x8] sm:$0xff] (!%p188_p2)   ;;  %vm1481_vm6 = vcmask (!%p188_p2), 1044480   ;;  %vm1308_vm7 = vsmask.f32 (!%p188_p2), 5376  ;;  %vm1659_vm8 = vcmask (!%p188_p2), 637952  }
   0x9   : > { %2177 = vmatpush3.bf16.msra.mxu1 (!%p188_p2), %v2615_v3  ;;  %vm1878_vm9 = vcmask (!%p188_p2), 519168  }
   0xa   : > { %2178 = vmatprep.subr.bf16.mxu1 (!%p188_p2), %v2670_v1 }
   0xb   : > { %2251 = vmatpush3.bf16.msra.mxu0 (!%p188_p2), %v2720_v2 }
   0xc   : > { %2272 = vmatprep.subr.bf16.mxu0 (!%p188_p2), %v2670_v1 }
   0xd   : > { %s3265_s19 = smov (!%p215_p3, %s1936_s19), 1  ;;  %2179 = vmatpush3.bf16.msra.mxu1 %v2619_v4 }
   0xe   : > { %s2602_s28 = smul.u32 52, %s3265_s19  ;;  %2200 = vmatprep.subr.bf16.mxu1 %v2670_v1  ;;  %s2086_s26 = sshll.u32 %s3265_s19, 3 }
   0xf   : > { %s224_s29 = scalar_lea.vmem %s3263_s5, %s2086_s26 }
  0x10   : > { %s2743_s6 = scalar_lea.vmem %s3258_s0, %s2602_s28 }
  0x11   : > { %v2616_v5 = vld [vmem:[%s2743_s6 + $0x4] sm:$0xfe]   ;;  %v2617_v6 = vld [vmem:[%s2743_s6 + $0xc] sm:$0xff]   ;;  %v226_v8 = vld [vmem:[%s2743_s6] sm:$0xf] }
  0x12   : > { %v2753_v9 = vld [vmem:[%s2743_s6 + $0x4] sm:$0xf]  ;;  %v680_v10 = vrot.slane %v2616_v5, 1  ;;  %v681_v11 = vrot.slane %v2617_v6, 1  ;;  %v2759_v13 = vld [vmem:[%s2743_s6 + $0x8] sm:$0xff]   ;;  %v2762_v14 = vld [vmem:[%s2743_s6 + $0x14] sm:$0xff]  }
  0x13   : > { %v2756_v12 = vcombine.low %v226_v8, %v2753_v9  ;;  %v280_v18 = vshll.u32 %v2759_v13, 16  ;;  %v2769_v19 = vld [vmem:[%s2743_s6 + $0x10] sm:$0xff]   ;;  %v799_v21 = vld [vmem:[%s2743_s6 + $0x4] sm:$0xe]  ;;  %v2777_v22 = vld [vmem:[%s2743_s6 + $0x8] sm:$0xf] }
  0x14   : > { %v682_v15 = vsel %vm520_vm3, %v680_v10, %v681_v11  ;;  %v683_v25 = vrot.slane %v2762_v14, 1  ;;  %v2000_v26 = vcombine.low %v799_v21, %v2777_v22  ;;  %v2784_v27 = vld [vmem:[%s2743_s6 + $0xc] sm:$0xff]   ;;  %v284_v29 = vshrl.u32 %v2759_v13, 16  ;;  %v2796_v38 = vld [vmem:[%s2743_s6 + $0x14] sm:$0xff]   ;;  %v2821_v54 = vld [vmem:[%s2743_s6 + $0x20] sm:$0xf] }
  0x15   : > { %v273_v16 = vshrl.u32 %v2756_v12, 16  ;;  %v275_v17 = vshll.u32 %v2756_v12, 16  ;;  %2253 = vmatmul.mubr.msk.bf16.vlgmr.msra.gmra.mrb[0].mxu0 %vm323_vm1, %v682_v15  ;;  %v282_v24 = vrot.slane %v280_v18, 1  ;;  %v288_v30 = vshll.u32 %v2769_v19, 16  ;;  %v2801_v42 = vld [vmem:[%s2743_s6 + $0x18] sm:$0xff]  }
  0x16   : > { %2273 = vmatpush3.bf16.msra.mxu0 %v2618_v7  ;;  %2256 = vmatprep.mubr.msk.bf16.mxu0 %vm2671_vm0, %v2670_v1  ;;  %v845_v31 = vshrl.u32 %v2000_v26, 16  ;;  %v848_v32 = vshll.u32 %v2000_v26, 16  ;;  %v853_v33 = vshrl.u32 %v2784_v27, 16  ;;  %v856_v34 = vshll.u32 %v2784_v27, 16  ;;  %v240_v55 = vld [vmem:[%s2743_s6 + $0x24] sm:$0xf] }
  0x17   : > { %v277_v23 = vrot.slane %v275_v17, 1  ;;  %2274 = vmatprep.subr.bf16.mxu0 %v2670_v1  ;;  %v684_v36 = vsel %vm520_vm3, %v681_v11, %v683_v25  ;;  %v286_v43 = vor.u32 %v284_v29, %v282_v24  ;;  %v290_v44 = vrot.slane %v288_v30, 1  ;;  %v2825_v56 = vld [vmem:[%s2743_s6 + $0x1c] sm:$0xff]  }
  0x18   : > { %v847_v37 = vrot.slane %v845_v31, 1  ;;  %v850_v39 = vrot.slane %v848_v32, 2  ;;  %v855_v40 = vrot.slane %v853_v33, 1  ;;  %v858_v41 = vrot.slane %v856_v34, 2  ;;  %v2632_v6 = vld [vmem:[%s3259_s1 + $0x58] sm:$0xff]   ;;  %v2871_v30 = vld [vmem:[%s2743_s6 + $0x20] sm:$0xff]  }
  0x19   : > { %v278_v28 = vor.u32 %v277_v23, %v273_v16  ;;  %v862_v48 = vshrl.u32 %v2796_v38, 16  ;;  %v865_v49 = vshll.u32 %v2796_v38, 16  ;;  %v292_v50 = vshrl.u32 %v2769_v19, 16  ;;  %v511_v10 = vld [vmem:[%s2743_s6] sm:$0xe]  ;;  %v2879_v34 = vld [vmem:[%s2743_s6 + $0x28] sm:$0xff]  }
  0x1a   : > { %2275 = vmatpush3.bf16.msra.mxu0 %v2623_v20  ;;  %v851_v46 = vor.u32 %v850_v39, %v847_v37  ;;  %v859_v47 = vor.u32 %v858_v41, %v855_v40  ;;  %v296_v51 = vshll.u32 %v2801_v42, 16  ;;  %v291_v52 = vsel %vm271_vm2, %v286_v43, %v290_v44  ;;  %v2855_v20 = vld [vmem:[%s2743_s6 + $0x24] sm:$0xff]   ;;  %v2652_v40 = vld [vmem:[%s2743_s6 + $0x30] ss:$0 sps:$4 sm:$0x11]  }
  0x1b   : > { %v283_v35 = vsel %vm271_vm2, %v278_v28, %v282_v24  ;;  %2296 = vmatprep.subr.bf16.mxu0 %v2670_v1  ;;  %v864_v59 = vrot.slane %v862_v48, 1  ;;  %v867_v60 = vrot.slane %v865_v49, 2  ;;  %v294_v61 = vor.u32 %v292_v50, %v290_v44 }
  0x1c   : > { %2181 = vmatmul.mubr.msk.bf16.vlgmr.msra.gmra.mrb[0].mxu1 %vm323_vm1, %v283_v35  ;;  %v860_v57 = vsel %vm843_vm4, %v851_v46, %v859_v47  ;;  %v298_v62 = vrot.slane %v296_v51, 1  ;;  %v2836_v63 = vcombine.low %v2821_v54, %v240_v55  ;;  %v871_v3 = vshrl.u32 %v2825_v56, 16  ;;  %v2911_v51 = vld [vmem:[%s2743_s6 + $0x2c] ss:$0 sps:$4 sm:$0x11]   ;;  %v2922_v55 = vld [vmem:[%s2743_s6 + $0x10] sm:$0xff]  }
  0x1d   : > { %2184 = vmatprep.mubr.msk.bf16.mxu1 %vm2671_vm0, %v2670_v1  ;;  %2257 = vmatmul.mubr.msk.bf16.gmra.mrb[4].mxu0 %vm323_vm1, %v684_v36  ;;  %v868_v4 = vor.u32 %v867_v60, %v864_v59  ;;  %v874_v5 = vshll.u32 %v2825_v56, 16  ;;  %v300_v8 = vshrl.u32 %v2801_v42, 16  ;;  %v1972_v15 = vcombine.low %v511_v10, %v2753_v9  ;;  %v2883_v36 = vld [vmem:[%s2743_s6 + $0x1c] sm:$0xff]   ;;  %v1472_v59 = vld [vmem:[%s2743_s6 + $0x8] sm:$0x8] }
  0x1e   : > { %2276 = vmatprep.mubr.msk.bf16.mxu0 %vm2671_vm0, %v2670_v1  ;;  %2201 = vmatpush3.bf16.msra.mxu1 %v2633_v45  ;;  %v299_v7 = vsel %vm271_vm2, %v294_v61, %v298_v62  ;;  %v304_v11 = vshll.u32 %v2836_v63, 16  ;;  %v522_v16 = vrot.slane %v2759_v13, 1  ;;  %v524_v17 = vrot.slane %v2769_v19, 1  ;;  %v1003_v60 = vld [vmem:[%s2743_s6 + $0x4] sm:$0xc]  ;;  %v2949_v10 = vld [vmem:[%s2743_s6 + $0x18] sm:$0xff]  }
  0x1f   : > { %2202 = vmatprep.subr.bf16.mxu1 %v2670_v1  ;;  %v873_v18 = vrot.slane %v871_v3, 1  ;;  %v869_v21 = vsel %vm843_vm4, %v859_v47, %v868_v4  ;;  %v876_v23 = vrot.slane %v874_v5, 2  ;;  %v521_v24 = vrot.slane %v1972_v15, 1  ;;  %v2641_v3 = vld [vmem:[%s3259_s1 + $0x20] sm:$0xff]  }
  0x20   : > { %v2861_v26 = vsel %vm520_vm3, %v522_v16, %v524_v17  ;;  %v302_v9 = vor.u32 %v300_v8, %v298_v62  ;;  %v306_v28 = vrot.slane %v304_v11, 1  ;;  %v880_v31 = vshrl.u32 %v2855_v20, 16  ;;  %v2642_v8 = vld [vmem:[%s3259_s1 + $0x28] sm:$0xff]  }
  0x21   : > { %v2868_v29 = vsel %vm520_vm3, %v521_v24, %v522_v16  ;;  %v877_v32 = vor.u32 %v876_v23, %v873_v18  ;;  %v883_v33 = vshll.u32 %v2855_v20, 16  ;;  %v1183_v35 = vrot.slane %v2871_v30, 2  ;;  %v2638_v18 = vld [vmem:[%s3259_s1 + $0x60] sm:$0xff]  }
  0x22   : > { %2203 = vmatpush3.bf16.msra.mxu1 %v2635_v53  ;;  %v307_v37 = vsel %vm271_vm2, %v302_v9, %v306_v28  ;;  %v1185_v39 = vrot.slane %v2879_v34, 2  ;;  %v882_v41 = vrot.slane %v880_v31, 1  ;;  %v685_v43 = vrot.slane %v2883_v36, 1 }
  0x23   : > { %2224 = vmatprep.subr.bf16.mxu1 %v2670_v1  ;;  %v878_v44 = vsel %vm843_vm4, %v868_v4, %v877_v32  ;;  %v885_v45 = vrot.slane %v883_v33, 2  ;;  %v1187_v47 = vrot.slane %v2652_v40, 2  ;;  %v308_v48 = vshrl.u32 %v2836_v63, 16  ;;  %v3002_v33 = vld [vmem:[%s2743_s6 + $0x30] ss:$0 sps:$4 sm:$0x33]  }
  0x24   : > { %2185 = vmatmul.mubr.msk.bf16.gmra.mrb[4].mxu1 %vm323_vm1, %v291_v52  ;;  %v2893_v46 = vsel %vm1012_vm5, %v1183_v35, %v1185_v39  ;;  %v2902_v49 = vsel %vm520_vm3, %v683_v25, %v685_v43  ;;  %v889_v25 = vshll.u32 %v2911_v51, 16  ;;  %v1483_v62 = vrot.slane %v2922_v55, 3 }
  0x25   : > { %2188 = vmatprep.mubr.msk.bf16.mxu1 %vm2671_vm0, %v2670_v1  ;;  %2277 = vmatmul.mubr.msk.bf16.vlgmr.msra.gmra.mrb[0].mxu0 %vm323_vm1, %v860_v57  ;;  %v2907_v50 = vsel %vm1012_vm5, %v1185_v39, %v1187_v47  ;;  %v886_v14 = vor.u32 %v885_v45, %v882_v41  ;;  %v310_v52 = vor.u32 %v308_v48, %v306_v28  ;;  %v1485_v11 = vrot.slane %v2949_v10, 3 }
  0x26   : > { %2297 = vmatpush3.bf16.msra.mxu0 %v2627_v58  ;;  %2280 = vmatprep.mubr.msk.bf16.mxu0 %vm2671_vm0, %v2670_v1  ;;  %v891_v57 = vrot.slane %v889_v25, 2  ;;  %v2927_v58 = vld [vmem:[%s2743_s6 + $0xc] sm:$0xf]  ;;  %v1487_v23 = vrot.slane %v2871_v30, 3  ;;  %v1489_v9 = vrot.slane %v2879_v34, 3  ;;  %v1179_v48 = vrot.slane %v2922_v55, 2 }
  0x27   : > { %2298 = vmatprep.subr.bf16.mxu0 %v2670_v1  ;;  %v887_v53 = vsel %vm843_vm4, %v877_v32, %v886_v14  ;;  %v2058_v61 = vcombine.low %v1472_v59, %v2927_v58  ;;  %v2958_v15 = vsel %vm1481_vm6, %v1483_v62, %v1485_v11  ;;  %v235_v32 = vld [vmem:[%s2743_s6 + $0x24] sm:$0x7]  ;;  %v1318_v25 = vshrl.u32 %v2922_v55, 16 }
  0x28   : > { %v892_v5 = vsel %vm843_vm4, %v886_v14, %v891_v57  ;;  %v2993_v28 = vsel %vm1481_vm6, %v1487_v23, %v1489_v9  ;;  %v1960_v39 = vcombine.low %v2821_v54, %v235_v32  ;;  %v2649_v14 = vld [vmem:[%s3259_s1 + $0x78] sm:$0xff]   ;;  %v2653_v57 = vld [vmem:[%s2743_s6 + $0x24] sm:$0xff]  }
  0x29   : > { %v1482_v4 = vrot.slane %v2058_v61, 3 }
  0x2a   : > { %2299 = vmatpush3.bf16.msra.mxu0 %v2632_v6  ;;  %v2017_v6 = vcombine.low %v1003_v60, %v2777_v22  ;;  %v1014_v22 = vrot.slane %v2784_v27, 2  ;;  %v1016_v27 = vrot.slane %v2796_v38, 2  ;;  %v1018_v38 = vrot.slane %v2825_v56, 2 }
  0x2b   : > { %2320 = vmatprep.subr.bf16.mxu0 %v2670_v1  ;;  %v1020_v56 = vrot.slane %v2855_v20, 2  ;;  %v1022_v20 = vrot.slane %v2911_v51, 2  ;;  %v526_v51 = vrot.slane %v2801_v42, 1  ;;  %v1320_v60 = vrot.slane %v1318_v25, 2 }
  0x2c   : > { %2189 = vmatmul.mubr.msk.bf16.gmra.mrb[8].mxu1 %vm323_vm1, %v299_v7  ;;  %v2941_v7 = vsel %vm1481_vm6, %v1482_v4, %v1483_v62  ;;  %v1017_v24 = vsel %vm1012_vm5, %v1014_v22, %v1016_v27  ;;  %v1019_v31 = vsel %vm1012_vm5, %v1016_v27, %v1018_v38  ;;  %v1330_v4 = vshll.u32 %v2949_v10, 16 }
  0x2d   : > { %2192 = vmatprep.mubr.msk.bf16.mxu1 %vm2671_vm0, %v2670_v1  ;;  %2281 = vmatmul.mubr.msk.bf16.gmra.mrb[4].mxu0 %vm323_vm1, %v869_v21  ;;  %v2640_v21 = vld [vmem:[%s3259_s1 + $0x68] sm:$0xff]   ;;  %v1021_v41 = vsel %vm1012_vm5, %v1018_v38, %v1020_v56  ;;  %v1023_v54 = vsel %vm1012_vm5, %v1020_v56, %v1022_v20  ;;  %v1348_v27 = vshll.u32 %v2879_v34, 16 }
  0x2e   : > { %2284 = vmatprep.mubr.msk.bf16.mxu0 %vm2671_vm0, %v2670_v1 }
  0x34   : > { %2193 = vmatmul.mubr.msk.bf16.gmra.mrb[12].mxu1 %vm323_vm1, %v307_v37  ;;  %v1491_v37 = vrot.slane %v3002_v33, 3 }
  0x35   : > { %2196 = vmatprep.mubr.msk.bf16.mxu1 %vm2671_vm0, %v2670_v1  ;;  %2285 = vmatmul.mubr.msk.bf16.gmra.mrb[8].mxu0 %vm323_vm1, %v878_v44  ;;  %v1134_v44 = vld [vmem:[%s2743_s6 + $0x8] sm:$0xc] }
  0x36   : > { %2288 = vmatprep.mubr.msk.bf16.mxu0 %vm2671_vm0, %v2670_v1  ;;  %v3011_v40 = vsel %vm1481_vm6, %v1489_v9, %v1491_v37  ;;  %v2029_v45 = vcombine.low %v1134_v44, %v2927_v58  ;;  %v1354_v9 = vshrl.u32 %v3002_v33, 16 }
  0x38   : > { %v1178_v47 = vrot.slane %v2029_v45, 2  ;;  %v1356_v56 = vrot.slane %v1354_v9, 2 }
  0x3c   : > { %2197 = vmatmul.mubr.msk.bf16.gmra.mrb[16].mxu1 %vm323_vm1, %v310_v52  ;;  %v528_v52 = vrot.slane %v2836_v63, 1  ;;  %v1310_v63 = vshrl.u32 %v2029_v45, 16 }
  0x3d   : > { %2204 = vmatprep.mubr.msk.bf16.mxu1 %vm2671_vm0, %v2670_v1  ;;  %2289 = vmatmul.mubr.msk.bf16.gmra.mrb[12].mxu0 %vm323_vm1, %v887_v53  ;;  %v1321_v53 = vshll.u32 %v2922_v55, 16 }
  0x3e   : > { %2292 = vmatprep.mubr.msk.bf16.mxu0 %vm2671_vm0, %v2670_v1  ;;  %v1312_v58 = vrot.slane %v1310_v63, 2 }
  0x3f   : > { %v1323_v61 = vrot.slane %v1321_v53, 3 }
  0x41   : > { %v1324_v55 = vor.u32 %v1323_v61, %v1320_v60 }
  0x44   : > { %2205 = vmatmul.mubr.msk.bf16.vlgmr.msra.gmra.mrb[0].mxu1 %vm323_vm1, %v2756_v12  ;;  %v1013_v12 = vrot.slane %v2017_v6, 2 }
  0x45   : > { %2208 = vmatprep.mubr.msk.bf16.mxu1 %vm2671_vm0, %v2670_v1  ;;  %2225 = vmatpush3.bf16.msra.mxu1 %v2641_v3  ;;  %v1327_v3 = vshrl.u32 %v2949_v10, 16 }
  0x46   : > { %2293 = vmatmul.mubr.msk.bf16.gmra.mrb[16].mxu0 %vm323_vm1, %v892_v5  ;;  %2226 = vmatprep.subr.bf16.mxu1 %v2670_v1  ;;  %v1015_v16 = vsel %vm1012_vm5, %v1013_v12, %v1014_v22  ;;  %v2655_v12 = vld [vmem:[%s3259_s1 + $0x88] sm:$0xff]  }
  0x47   : > { %2300 = vmatprep.mubr.msk.bf16.mxu0 %vm2671_vm0, %v2670_v1  ;;  %v1329_v6 = vrot.slane %v1327_v3, 2 }
  0x49   : > { %2227 = vmatpush3.bf16.msra.mxu1 %v2642_v8  ;;  %v1332_v8 = vrot.slane %v1330_v4, 3 }
  0x4a   : > { %2448 = vmatprep.subr.bf16.mxu1 %v2670_v1 }
  0x4b   : > { %v1333_v36 = vor.u32 %v1332_v8, %v1329_v6 }
  0x4c   : > { %2209 = vmatmul.mubr.msk.bf16.gmra.mrb[4].mxu1 %vm323_vm1, %v2759_v13  ;;  %v2979_v13 = vsel %vm1481_vm6, %v1485_v11, %v1487_v23 }
  0x4d   : > { %2212 = vmatprep.mubr.msk.bf16.mxu1 %vm2671_vm0, %v2670_v1  ;;  %v1334_v22 = vsel %vm1308_vm7, %v1324_v55, %v1333_v36 }
  0x4e   : > { %2301 = vmatmul.mubr.msk.bf16.vlgmr.msra.gmra.mrb[0].mxu0 %vm323_vm1, %v1015_v16 }
  0x4f   : > { %2321 = vmatpush3.bf16.msra.mxu0 %v2638_v18  ;;  %2304 = vmatprep.mubr.msk.bf16.mxu0 %vm2671_vm0, %v2670_v1  ;;  %v1345_v18 = vshrl.u32 %v2879_v34, 16 }
  0x50   : > { %2322 = vmatprep.subr.bf16.mxu0 %v2670_v1 }
  0x51   : > { %v1347_v23 = vrot.slane %v1345_v18, 2 }
  0x53   : > { %2323 = vmatpush3.bf16.msra.mxu0 %v2640_v21 }
  0x54   : > { %2213 = vmatmul.mubr.msk.bf16.gmra.mrb[8].mxu1 %vm323_vm1, %v2769_v19  ;;  %2344 = vmatprep.subr.bf16.mxu0 %v2670_v1  ;;  %v529_v19 = vsel %vm520_vm3, %v526_v51, %v528_v52 }
  0x55   : > { %2216 = vmatprep.mubr.msk.bf16.mxu1 %vm2671_vm0, %v2670_v1 }
  0x56   : > { %2305 = vmatmul.mubr.msk.bf16.gmra.mrb[4].mxu0 %vm323_vm1, %v1017_v24  ;;  %v1350_v24 = vrot.slane %v1348_v27, 3 }
  0x57   : > { %2308 = vmatprep.mubr.msk.bf16.mxu0 %vm2671_vm0, %v2670_v1 }
  0x58   : > { %v1351_v38 = vor.u32 %v1350_v24, %v1347_v23 }
  0x5c   : > { %2217 = vmatmul.mubr.msk.bf16.gmra.mrb[12].mxu1 %vm323_vm1, %v2801_v42 }
  0x5d   : > { %2220 = vmatprep.mubr.msk.bf16.mxu1 %vm2671_vm0, %v2670_v1 }
  0x5e   : > { %2309 = vmatmul.mubr.msk.bf16.gmra.mrb[8].mxu0 %vm323_vm1, %v1019_v31  ;;  %v1357_v31 = vshll.u32 %v3002_v33, 16 }
  0x5f   : > { %2312 = vmatprep.mubr.msk.bf16.mxu0 %vm2671_vm0, %v2670_v1 }
  0x60   : > { %v1359_v37 = vrot.slane %v1357_v31, 3 }
  0x62   : > { %v1360_v34 = vor.u32 %v1359_v37, %v1356_v56 }
  0x64   : > { %2221 = vmatmul.mubr.msk.bf16.gmra.mrb[16].mxu1 %vm323_vm1, %v1960_v39  ;;  %v1361_v39 = vsel %vm1308_vm7, %v1351_v38, %v1360_v34 }
  0x65   : > { %2228 = vmatprep.mubr.msk.bf16.mxu1 %vm2671_vm0, %v2670_v1 }
  0x66   : > { %2313 = vmatmul.mubr.msk.bf16.gmra.mrb[12].mxu0 %vm323_vm1, %v1021_v41 }
  0x67   : > { %2316 = vmatprep.mubr.msk.bf16.mxu0 %vm2671_vm0, %v2670_v1 }
  0x6c   : > { %2229 = vmatmul.mubr.msk.bf16.vlgmr.msra.gmra.mrb[0].mxu1 %vm323_vm1, %v2868_v29  ;;  %v1180_v29 = vsel %vm1012_vm5, %v1178_v47, %v1179_v48 }
  0x6d   : > { %2232 = vmatprep.mubr.msk.bf16.mxu1 %vm2671_vm0, %v2670_v1  ;;  %2450 = vmatpush3.bf16.msra.mxu1 %v2713_v0  ;;  %v2646_v0 = vld [vmem:[%s3259_s1 + $0x70] sm:$0xff]  }
  0x6e   : > { %2317 = vmatmul.mubr.msk.bf16.gmra.mrb[16].mxu0 %vm323_vm1, %v1023_v54  ;;  %2449 = vmatprep.subr.bf16.mxu1 %v2670_v1 }
  0x6f   : > { %2324 = vmatprep.mubr.msk.bf16.mxu0 %vm2671_vm0, %v2670_v1 }
  0x71   : > { %2451 = vmatpush3.bf16.msra.mxu1 %v2720_v2  ;;  %v1181_v2 = vrot.slane %v2949_v10, 2  ;;  %v1339_v10 = vshll.u32 %v2871_v30, 16 }
  0x72   : > { %2392 = vmatprep.subr.bf16.mxu1 %v2670_v1 }
  0x73   : > { %v1182_v42 = vsel %vm1012_vm5, %v1179_v48, %v1181_v2  ;;  %v1341_v16 = vrot.slane %v1339_v10, 3 }
  0x74   : > { %2233 = vmatmul.mubr.msk.bf16.gmra.mrb[4].mxu1 %vm323_vm1, %v2861_v26  ;;  %v527_v26 = vsel %vm520_vm3, %v524_v17, %v526_v51  ;;  %v1184_v17 = vsel %vm1012_vm5, %v1181_v2, %v1183_v35  ;;  %v1313_v35 = vshll.u32 %v2029_v45, 16 }
  0x75   : > { %2236 = vmatprep.mubr.msk.bf16.mxu1 %vm2671_vm0, %v2670_v1 }
  0x76   : > { %2325 = vmatmul.mubr.msk.bf16.vlgmr.msra.gmra.mrb[0].mxu0 %vm323_vm1, %v1180_v29  ;;  %v1315_v59 = vrot.slane %v1313_v35, 3  ;;  %v3167_v35 = vld [vmem:[%s3261_s3] ss:$0 sm:$0xff] }
  0x77   : > { %2345 = vmatpush3.bf16.msra.mxu0 %v2646_v0  ;;  %2328 = vmatprep.mubr.msk.bf16.mxu0 %vm2671_vm0, %v2670_v1 }
  0x78   : > { %2346 = vmatprep.subr.bf16.mxu0 %v2670_v1  ;;  %v1316_v62 = vor.u32 %v1315_v59, %v1312_v58 }
  0x7a   : > { %v1325_v5 = vsel %vm1308_vm7, %v1316_v62, %v1324_v55 }
  0x7b   : > { %2347 = vmatpush3.bf16.msra.mxu0 %v2649_v14 }
  0x7c   : > { %2237 = vmatmul.mubr.msk.bf16.gmra.mrb[8].mxu1 %vm323_vm1, %v527_v26  ;;  %2368 = vmatprep.subr.bf16.mxu0 %v2670_v1 }
  0x7d   : > { %2240 = vmatprep.mubr.msk.bf16.mxu1 %vm2671_vm0, %v2670_v1 }
  0x7e   : > { %2329 = vmatmul.mubr.msk.bf16.gmra.mrb[4].mxu0 %vm323_vm1, %v1182_v42 }
  0x7f   : > { %2332 = vmatprep.mubr.msk.bf16.mxu0 %vm2671_vm0, %v2670_v1 }
  0x84   : > { %2241 = vmatmul.mubr.msk.bf16.gmra.mrb[12].mxu1 %vm323_vm1, %v529_v19  ;;  %v3162_v19 = vld [vmem:[%s3260_s2] ss:$0 sm:$0xff] }
  0x85   : > { %2244 = vmatprep.mubr.msk.bf16.mxu1 %vm2671_vm0, %v2670_v1 }
  0x86   : > { %2333 = vmatmul.mubr.msk.bf16.gmra.mrb[8].mxu0 %vm323_vm1, %v1184_v17 }
  0x87   : > { %2336 = vmatprep.mubr.msk.bf16.mxu0 %vm2671_vm0, %v2670_v1 }
  0x8c   : > { %2245 = vmatmul.mubr.msk.bf16.gmra.mrb[16].mxu1 %vm323_vm1, %v528_v52 }
  0x8d   : > { %2260 = vmatprep.mubr.msk.bf16.mxu1 %vm2671_vm0, %v2670_v1 }
  0x8e   : > { %2337 = vmatmul.mubr.msk.bf16.gmra.mrb[12].mxu0 %vm323_vm1, %v2893_v46  ;;  %v687_v46 = vrot.slane %v2653_v57, 1 }
  0x8f   : > { %2340 = vmatprep.mubr.msk.bf16.mxu0 %vm2671_vm0, %v2670_v1 }
  0x94   : > { %2261 = vmatmul.mubr.msk.bf16.vlgmr.msra.gmra.mrb[8].mxu1 %vm323_vm1, %v2902_v49  ;;  %v688_v49 = vsel %vm520_vm3, %v685_v43, %v687_v46  ;;  %v1336_v43 = vshrl.u32 %v2871_v30, 16 }
  0x95   : > { %2264 = vmatprep.mubr.msk.bf16.mxu1 %vm2671_vm0, %v2670_v1 }
  0x96   : > { %2341 = vmatmul.mubr.msk.bf16.gmra.mrb[16].mxu0 %vm323_vm1, %v2907_v50  ;;  %v2654_v50 = vld [vmem:[%s3259_s1 + $0x80] sm:$0xff]   ;;  %v1338_v11 = vrot.slane %v1336_v43, 2 }
  0x97   : > { %2348 = vmatprep.mubr.msk.bf16.mxu0 %vm2671_vm0, %v2670_v1 }
  0x98   : > { %v1342_v30 = vor.u32 %v1341_v16, %v1338_v11 }
  0x9a   : > { %v1343_v21 = vsel %vm1308_vm7, %v1333_v36, %v1342_v30  ;;  %v1352_v32 = vsel %vm1308_vm7, %v1342_v30, %v1351_v38 }
  0x9c   : > { %2265 = vmatmul.mubr.msk.bf16.gmra.mrb[12].mxu1 %vm323_vm1, %v688_v49 }
  0x9d   : > { %2268 = vmatprep.mubr.msk.bf16.mxu1 %vm2671_vm0, %v2670_v1 }
  0x9e   : > { %2349 = vmatmul.mubr.msk.bf16.vlgmr.msra.gmra.mrb[0].mxu0 %vm323_vm1, %v1325_v5 }
  0x9f   : > { %2369 = vmatpush3.bf16.msra.mxu0 %v2654_v50  ;;  %2352 = vmatprep.mubr.msk.bf16.mxu0 %vm2671_vm0, %v2670_v1 }
  0xa0   : > { %2370 = vmatprep.subr.bf16.mxu0 %v2670_v1 }
  0xa3   : > { %2371 = vmatpush3.bf16.msra.mxu0 %v2655_v12 }
  0xa4   : > { %2269 = vmatmul.mubr.msk.bf16.gmra.mrb[16].mxu1 %vm323_vm1, %v687_v46 }
  0xa5   : > { %2402 = vmatprep.mubr.msk.bf16.mxu1 %vm2671_vm0, %v2670_v1 }
  0xa6   : > { %2353 = vmatmul.mubr.msk.bf16.gmra.mrb[4].mxu0 %vm323_vm1, %v1334_v22 }
  0xa7   : > { %2356 = vmatprep.mubr.msk.bf16.mxu0 %vm2671_vm0, %v2670_v1 }
  0xae   : > { %2357 = vmatmul.mubr.msk.bf16.gmra.mrb[8].mxu0 %vm323_vm1, %v1343_v21 }
  0xaf   : > { %2360 = vmatprep.mubr.msk.bf16.mxu0 %vm2671_vm0, %v2670_v1 }
  0xb6   : > { %2361 = vmatmul.mubr.msk.bf16.gmra.mrb[12].mxu0 %vm323_vm1, %v1352_v32 }
  0xb7   : > { %2364 = vmatprep.mubr.msk.bf16.mxu0 %vm2671_vm0, %v2670_v1 }
  0xbe   : > { %2365 = vmatmul.mubr.msk.bf16.gmra.mrb[16].mxu0 %vm323_vm1, %v1361_v39 }
  0xbf   : > { %2372 = vmatprep.mubr.msk.bf16.mxu0 %vm2671_vm0, %v2670_v1 }
  0xc6   : > { %2373 = vmatmul.mubr.msk.bf16.vlgmr.msra.gmra.mrb[0].mxu0 %vm323_vm1, %v2941_v7 }
  0xc7   : > { %2376 = vmatprep.mubr.msk.bf16.mxu0 %vm2671_vm0, %v2670_v1 }
  0xce   : > { %2377 = vmatmul.mubr.msk.bf16.gmra.mrb[4].mxu0 %vm323_vm1, %v2958_v15 }
  0xcf   : > { %2380 = vmatprep.mubr.msk.bf16.mxu0 %vm2671_vm0, %v2670_v1 }
  0xd6   : > { %2381 = vmatmul.mubr.msk.bf16.gmra.mrb[8].mxu0 %vm323_vm1, %v2979_v13 }
  0xd7   : > { %2384 = vmatprep.mubr.msk.bf16.mxu0 %vm2671_vm0, %v2670_v1 }
  0xde   : > { %2385 = vmatmul.mubr.msk.bf16.gmra.mrb[12].mxu0 %vm323_vm1, %v2993_v28 }
  0xdf   : > { %2388 = vmatprep.mubr.msk.bf16.mxu0 %vm2671_vm0, %v2670_v1 }
  0xe6   : > { %2389 = vmatmul.mubr.msk.bf16.gmra.mrb[16].mxu0 %vm323_vm1, %v3011_v40 }
 0x13f   : > { %v591_v7 = vpop.f32.mrb[0].mxu1 }
 0x140   : > { %v2230_v15 = vpop.f32.mrb[1].mxu1 }
 0x141   : > { %v594_v33 = vpop.f32.mrb[2].mxu1 }
 0x142   : > { %v2231_v41 = vpop.f32.mrb[3].mxu1 }
 0x147   : > { %v599_v20 = vpop.f32.mrb[4].mxu1 }
 0x148   : > { %v2234_v44 = vpop.f32.mrb[5].mxu1 }
 0x149   : > { %v602_v54 = vpop.f32.mrb[6].mxu1 }
 0x14a   : > { %v2235_v13 = vpop.f32.mrb[7].mxu1 }
 0x167   : > { %v766_v45 = vpop.f32.mrb[8].mxu1 }
 0x168   : > { %v2262_v47 = vpop.f32.mrb[9].mxu1 }
 0x169   : > { %v769_v48 = vpop.f32.mrb[10].mxu1 }
 0x16a   : > { %v2263_v29 = vpop.f32.mrb[11].mxu1 }
 0x16f   : > { %v774_v0 = vpop.f32.mrb[12].mxu1 }
 0x170   : > { %v2266_v28 = vpop.f32.mrb[13].mxu1 }
 0x171   : > { %v777_v51 = vpop.f32.mrb[14].mxu1 }
 0x172   : > { %v2267_v2 = vpop.f32.mrb[15].mxu1 }
 0x177   : > { %v3155_v14 = vpop.f32.mrb[16].mxu1 }
 0x178   : > { %v2270_v26 = vpop.f32.mrb[17].mxu1 }
 0x179   : > { %v3157_v40 = vpop.f32.mrb[18].mxu1 }
 0x17a   : > { %v2271_v42 = vpop.f32.mrb[19].mxu1 }
 0x199   : > { %v1554_v52 = vpop.f32.mrb[0].mxu0 }
 0x19a   : > { %v2452_v17 = vadd.f32 %v1554_v52, %v591_v7  ;;  %v2374_v63 = vpop.f32.mrb[1].mxu0 }
 0x19b   : > { %v1557_v25 = vpop.f32.mrb[2].mxu0 }
 0x19c   : > { %v1610_v53 = vmul.f32 %v2452_v17, %v3162_v19  ;;  %v2453_v57 = vadd.f32 %v1557_v25, %v594_v33  ;;  %v2375_v58 = vpop.f32.mrb[3].mxu0 }
 0x19d   : > { %v2658_v58 = vld [vmem:[%s3262_s4] sm:$0xff]  }
 0x19e   : > { %v1627_v59 = vadd.f32 %v3167_v35, %v1610_v53  ;;  %v1611_v60 = vmul.f32 %v2453_v57, %v3162_v19 }
 0x1a0   : > { %v1628_v61 = vadd.f32 %v3167_v35, %v1611_v60  ;;  %v1637_v62 = vmax.f32 %v1627_v59, 0.0 }
 0x1a1   : > { %v1562_v46 = vpop.f32.mrb[4].mxu0 }
 0x1a2   : > { %v1638_v55 = vmax.f32 %v1628_v61, 0.0  ;;  %v2454_v3 = vadd.f32 %v1562_v46, %v599_v20  ;;  %v2378_v4 = vpop.f32.mrb[5].mxu0 }
 0x1a3   : > { %v1565_v49 = vpop.f32.mrb[6].mxu0 }
 0x1a4   : > { %v3173_v5 = vpack.c.bf16 %v1638_v55, %v1637_v62  ;;  %v1612_v50 = vmul.f32 %v2454_v3, %v3162_v19  ;;  %v2455_v6 = vadd.f32 %v1565_v49, %v602_v54  ;;  %v2379_v8 = vpop.f32.mrb[7].mxu0 }
 0x1a6   : > { %v1629_v36 = vadd.f32 %v3167_v35, %v1612_v50  ;;  %v1613_v43 = vmul.f32 %v2455_v6, %v3162_v19  ;;  %2393 = vmatpush3.bf16.msra.mxu1 %v3173_v5 }
 0x1a7   : > { %2394 = vmatprep.subr.bf16.mxu1 %v2670_v1 }
 0x1a8   : > { %v1630_v10 = vadd.f32 %v3167_v35, %v1613_v43  ;;  %v1639_v22 = vmax.f32 %v1629_v36, 0.0 }
 0x1a9   : > { %v1570_v12 = vpop.f32.mrb[8].mxu0 }
 0x1aa   : > { %v1640_v11 = vmax.f32 %v1630_v10, 0.0  ;;  %v2456_v16 = vadd.f32 %v1570_v12, %v766_v45  ;;  %v2382_v30 = vpop.f32.mrb[9].mxu0 }
 0x1ab   : > { %v1573_v18 = vpop.f32.mrb[10].mxu0 }
 0x1ac   : > { %v3181_v27 = vpack.c.bf16 %v1640_v11, %v1639_v22  ;;  %v1614_v21 = vmul.f32 %v2456_v16, %v3162_v19  ;;  %v2457_v23 = vadd.f32 %v1573_v18, %v769_v48  ;;  %v2383_v24 = vpop.f32.mrb[11].mxu0 }
 0x1ae   : > { %v1631_v38 = vadd.f32 %v3167_v35, %v1614_v21  ;;  %v1615_v9 = vmul.f32 %v2457_v23, %v3162_v19  ;;  %2395 = vmatpush3.bf16.msra.mxu1 %v3181_v27 }
 0x1af   : > { %2396 = vmatprep.subr.bf16.mxu1 %v2670_v1 }
 0x1b0   : > { %v1632_v31 = vadd.f32 %v3167_v35, %v1615_v9  ;;  %v1641_v56 = vmax.f32 %v1631_v38, 0.0 }
 0x1b1   : > { %v1578_v32 = vpop.f32.mrb[12].mxu0 }
 0x1b2   : > { %v1642_v37 = vmax.f32 %v1632_v31, 0.0  ;;  %v2458_v34 = vadd.f32 %v1578_v32, %v774_v0  ;;  %v2386_v39 = vpop.f32.mrb[13].mxu0 }
 0x1b3   : > { %v1581_v7 = vpop.f32.mrb[14].mxu0 }
 0x1b4   : > { %v3189_v15 = vpack.c.bf16 %v1642_v37, %v1641_v56  ;;  %v1616_v33 = vmul.f32 %v2458_v34, %v3162_v19  ;;  %v2459_v41 = vadd.f32 %v1581_v7, %v777_v51  ;;  %v2387_v20 = vpop.f32.mrb[15].mxu0 }
 0x1b6   : > { %v1633_v44 = vadd.f32 %v3167_v35, %v1616_v33  ;;  %v1617_v54 = vmul.f32 %v2459_v41, %v3162_v19  ;;  %2397 = vmatpush3.bf16.msra.mxu1 %v3189_v15 }
 0x1b7   : > { %2398 = vmatprep.subr.bf16.mxu1 %v2670_v1 }
 0x1b8   : > { %v1634_v13 = vadd.f32 %v3167_v35, %v1617_v54  ;;  %v1643_v47 = vmax.f32 %v1633_v44, 0.0 }
 0x1b9   : > { %v1586_v45 = vpop.f32.mrb[16].mxu0 }
 0x1ba   : > { %v1644_v48 = vmax.f32 %v1634_v13, 0.0  ;;  %v2460_v29 = vadd.f32 %v1586_v45, %v3155_v14  ;;  %v2390_v0 = vpop.f32.mrb[17].mxu0 }
 0x1bb   : > { %v1589_v28 = vpop.f32.mrb[18].mxu0 }
 0x1bc   : > { %v1650_v2 = vpack.c.bf16 %v1644_v48, %v1643_v47  ;;  %v1618_v51 = vmul.f32 %v2460_v29, %v3162_v19  ;;  %v2461_v26 = vadd.f32 %v1589_v28, %v3157_v40  ;;  %v2391_v42 = vpop.f32.mrb[19].mxu0  ;;  %v2659_v40 = vld [vmem:[%s3262_s4 + $0x8] sm:$0xff]  }
 0x1be   : > { %v1635_v52 = vadd.f32 %v3167_v35, %v1618_v51  ;;  %v1619_v17 = vmul.f32 %v2461_v26, %v3162_v19  ;;  %2399 = vmatpush3.bf16.msra.mxu1 %v1650_v2  ;;  %v2660_v19 = vld [vmem:[%s3262_s4 + $0x10] sm:$0xff]  }
 0x1bf   : > { %2400 = vmatprep.subr.bf16.mxu1 %v2670_v1 }
 0x1c0   : > { %v1636_v63 = vadd.f32 %v3167_v35, %v1619_v17  ;;  %v1645_v25 = vmax.f32 %v1635_v52, 0.0  ;;  %v2661_v35 = vld [vmem:[%s3262_s4 + $0x18] sm:$0xff]  }
 0x1c2   : > { %v1646_v53 = vmax.f32 %v1636_v63, 0.0 }
 0x1c4   : > { %v1651_v14 = vpack.c.bf16 %v1646_v53, %v1645_v25 }
 0x1c6   : > { %v1665_v57 = vsel %vm520_vm3, %v1651_v14, 0 }
 0x1c7   : > { %2401 = vmatpush3.bf16.msra.mxu1 %v1665_v57 }
 0x1c8   : > { %2406 = vmatprep.subr.bf16.mxu1 %v2670_v1 }
 0x1ca   : > { %2403 = vmatmul.mubr.msk.bf16.vlgmr.msra.gmra.mrb[20].mxu1 %vm1659_vm8, %v2658_v58 }
 0x1cb   : > { %2407 = vmatpush3.bf16.msra.mxu1 %v3173_v5  ;;  %2416 = vmatprep.mubr.msk.bf16.mxu1 %vm2671_vm0, %v2670_v1 }
 0x1cc   : > { %2408 = vmatprep.subr.bf16.mxu1 %v2670_v1 }
 0x1cf   : > { %2409 = vmatpush3.bf16.msra.mxu1 %v3181_v27 }
 0x1d0   : > { %2410 = vmatprep.subr.bf16.mxu1 %v2670_v1 }
 0x1d3   : > { %2411 = vmatpush3.bf16.msra.mxu1 %v3189_v15 }
 0x1d4   : > { %2412 = vmatprep.subr.bf16.mxu1 %v2670_v1 }
 0x1d7   : > { %2413 = vmatpush3.bf16.msra.mxu1 %v1650_v2 }
 0x1d8   : > { %2414 = vmatprep.subr.bf16.mxu1 %v2670_v1 }
 0x1db   : > { %2415 = vmatpush3.bf16.msra.mxu1 %v1665_v57 }
 0x1dc   : > { %2420 = vmatprep.subr.bf16.mxu1 %v2670_v1 }
 0x1de   : > { %2417 = vmatmul.mubr.msk.bf16.vlgmr.msra.gmra.mrb[24].mxu1 %vm1659_vm8, %v2659_v40 }
 0x1df   : > { %2421 = vmatpush3.bf16.msra.mxu1 %v3173_v5  ;;  %2430 = vmatprep.mubr.msk.bf16.mxu1 %vm2671_vm0, %v2670_v1 }
 0x1e0   : > { %2422 = vmatprep.subr.bf16.mxu1 %v2670_v1 }
 0x1e3   : > { %2423 = vmatpush3.bf16.msra.mxu1 %v3181_v27 }
 0x1e4   : > { %2424 = vmatprep.subr.bf16.mxu1 %v2670_v1 }
 0x1e7   : > { %2425 = vmatpush3.bf16.msra.mxu1 %v3189_v15 }
 0x1e8   : > { %2426 = vmatprep.subr.bf16.mxu1 %v2670_v1 }
 0x1eb   : > { %2427 = vmatpush3.bf16.msra.mxu1 %v1650_v2 }
 0x1ec   : > { %2428 = vmatprep.subr.bf16.mxu1 %v2670_v1 }
 0x1ef   : > { %2429 = vmatpush3.bf16.msra.mxu1 %v1665_v57 }
 0x1f0   : > { %2434 = vmatprep.subr.bf16.mxu1 %v2670_v1 }
 0x1f2   : > { %2431 = vmatmul.mubr.msk.bf16.vlgmr.msra.gmra.mrb[28].mxu1 %vm1659_vm8, %v2660_v19 }
 0x1f3   : > { %2435 = vmatpush3.bf16.msra.mxu1 %v3173_v5  ;;  %2444 = vmatprep.mubr.msk.bf16.mxu1 %vm2671_vm0, %v2670_v1 }
 0x1f4   : > { %2436 = vmatprep.subr.bf16.mxu1 %v2670_v1 }
 0x1f7   : > { %2437 = vmatpush3.bf16.msra.mxu1 %v3181_v27 }
 0x1f8   : > { %2438 = vmatprep.subr.bf16.mxu1 %v2670_v1 }
 0x1fb   : > { %2439 = vmatpush3.bf16.msra.mxu1 %v3189_v15 }
 0x1fc   : > { %2440 = vmatprep.subr.bf16.mxu1 %v2670_v1 }
 0x1ff   : > { %2441 = vmatpush3.bf16.msra.mxu1 %v1650_v2 }
 0x200   : > { %2442 = vmatprep.subr.bf16.mxu1 %v2670_v1 }
 0x203   : > { %2443 = vmatpush3.bf16.msra.mxu1 %v1665_v57 }
 0x206   : > { %2445 = vmatmul.mubr.msk.bf16.vlgmr.msra.gmra.mrb[32].mxu1 %vm1659_vm8, %v2661_v35 }
 0x29d   : > { %v1701_v59 = vpop.f32.mrb[20].mxu1 }
 0x29e   : > { %v2404_v60 = vpop.f32.mrb[21].mxu1 }
 0x29f   : > { %v1704_v61 = vpop.f32.mrb[22].mxu1 }
 0x2a0   : > { %v2405_v46 = vpop.f32.mrb[23].mxu1 }
 0x2b1   : > { %v1753_v62 = vpop.f32.mrb[24].mxu1 }
 0x2b2   : > { %v1760_v55 = vmax.f32 %v1701_v59, %v1753_v62  ;;  %v2418_v3 = vpop.f32.mrb[25].mxu1 }
 0x2b3   : > { %v1756_v4 = vpop.f32.mrb[26].mxu1 }
 0x2b4   : > { %v1761_v49 = vmax.f32 %v1704_v61, %v1756_v4  ;;  %v2419_v5 = vpop.f32.mrb[27].mxu1 }
 0x2c5   : > { %v1807_v50 = vpop.f32.mrb[28].mxu1 }
 0x2c6   : > { %v1814_v1 = vmax.f32 %v1760_v55, %v1807_v50  ;;  %v2432_v6 = vpop.f32.mrb[29].mxu1 }
 0x2c7   : > { %v1810_v8 = vpop.f32.mrb[30].mxu1 }
 0x2c8   : > { %v1815_v36 = vmax.f32 %v1761_v49, %v1810_v8  ;;  %v2433_v43 = vpop.f32.mrb[31].mxu1 }
 0x2d9   : > { %v1861_v10 = vpop.f32.mrb[32].mxu1 }
 0x2da   : > { %v1868_v12 = vmax.f32 %v1814_v1, %v1861_v10  ;;  %v2446_v22 = vpop.f32.mrb[33].mxu1 }
 0x2db   : > { %v1864_v11 = vpop.f32.mrb[34].mxu1 }
 0x2dc   : > { %v2087_v16 = vpack.c.bf16 %v1868_v12, %v1868_v12  ;;  %v1869_v30 = vmax.f32 %v1815_v36, %v1864_v11  ;;  %v2447_v18 = vpop.f32.mrb[35].mxu1 }
 0x2de   : > { %1879 = vst.msk [vmem:[%s224_s29] sm:$0xf] %vm1878_vm9, %v2087_v16  ;;  %v2088_v27 = vpack.c.bf16 %v1869_v30, %v1869_v30 }
 0x2e0   : > { %1880 = vst.msk [vmem:[%s224_s29 + $0x4] sm:$0xf] %vm1878_vm9, %v2088_v27 }
 0x2e1 PF: > { %s15_s18 = sadd.s32 1, %s2668_s18  }
 0x2e2   : > { %p12_p4 = scmp.ge.s32.totalorder %s15_s18, 4  }
 0x2e4   :  { %14 = sbr.rel (!%p12_p4) target bundleno = 1 (0x1), region = 81 }

// kernel: cnn_forward.4
= control target key start
LH: loop header
LB: loop body
LE: loop exit
PB: predicated region body
PF: predicated region fallthrough
CT: control target
= control target key end

     0   :  { %s6557_s18 = smov 0   ;;  %s8024_s0 = inlined_call_operand.vmem [shape: bf16[2,324,2], index: 0, kind: input, shape index: {}]   ;;  %s8025_s1 = inlined_call_operand.vmem [shape: bf16[9,2,32], index: 1, kind: input, shape index: {}]   ;;  %s8026_s2 = inlined_call_operand.vmem [shape: f32[1,32], index: 2, kind: input, shape index: {}]   ;;  %s8027_s3 = inlined_call_operand.vmem [shape: f32[1,32], index: 3, kind: input, shape index: {}]   ;;  %s8028_s4 = inlined_call_operand.vmem [shape: bf16[4,64,286], index: 4, kind: input, shape index: {}]   ;;  %s8029_s5 = inlined_call_operand.vmem [shape: bf16[2,64,32], index: 5, kind: output, shape index: {}]  }
   0x1 LB: > { %s4924_s19 = sadd.s32 4294967295, %s6525_s18   ;;  %p4928_p0 = scmp.ge.s32.totalorder %s6525_s18, 1  ;;  %s6525_s18 = sphi %s6557_s18, %s15_s18  }
   0x2   : > { %p187_p1 = scmp.lt.s32.totalorder %s6525_s18, 3 }
   0x4   : > { %p188_p2 = pnand %p4928_p0, %p187_p1 }
   0x6   : > { %191 = sbr.rel (%p188_p2) target bundleno = 1141 (0x475), region = 40 }
   0xd   : > { %vm555_vm0 = vcmask 1040384   ;;  %v6568_v0 = vld [vmem:[%s8025_s1 + $0x2] sm:$0x1]  ;;  %p215_p3 = scmp.lt.s32.totalorder %s4924_s19, 1  ;;  %v5008_v2 = vld [vmem:[%s8025_s1 + $0x3] sm:$0x1] }
   0xe   : > { %6351 = vmatprep.subr.msk.bf16.mxu0 %vm555_vm0, %v6568_v0  ;;  %v6574_v1 = vsel %vm555_vm0, %v6568_v0, 0  ;;  %v4932_v3 = vld [vmem:[%s8025_s1 + $0x1] sm:$0x1]  ;;  %vm500_vm1 = vcmask 15360   ;;  %vm962_vm2 = vcmask 1046528   ;;  %v1486_v14 = vsel %vm555_vm0, %v5008_v2, 0 }
   0xf   : > { %5746 = vmatpush3.bf16.msra.mxu0 %v6574_v1  ;;  %s8054_s19 = smov (!%p215_p3, %s4924_s19), 1  ;;  %6349 = vmatprep.subr.msk.bf16.mxu1 %vm555_vm0, %v4932_v3  ;;  %v557_v4 = vsel %vm555_vm0, %v4932_v3, 0  ;;  %v5045_v20 = vld [vmem:[%s8025_s1 + $0x4] sm:$0x1]  ;;  %v5083_v31 = vld [vmem:[%s8025_s1 + $0x5] sm:$0x1] }
  0x10   : > { %6353 = vmatprep.subr.msk.bf16.mxu0 %vm555_vm0, %v5008_v2  ;;  %s6363_s26 = smul.u32 164, %s8054_s19  ;;  %5670 = vmatpush3.bf16.msra.mxu1 %v557_v4  ;;  %v2055_v29 = vsel %vm555_vm0, %v5045_v20, 0  ;;  %vm356_vm3 = vsmask.f32 7424  ;;  %vm1833_vm4 = vsmask.f32 6400 }
  0x11   : > { %vm2276_vm5 = vcmask 1045504   ;;  %vm3029_vm6 = vsmask.f32 5376  ;;  %vm3476_vm7 = vcmask 1044480   ;;  %vm4000_vm8 = vcmask 244736   ;;  %s5305_s27 = sshll.u32 %s8054_s19, 5 }
  0x12   : > { %s6592_s29 = scalar_lea.vmem %s8024_s0, %s6363_s26  ;;  %s8003_s30 = scalar_lea.vmem %s8029_s5, %s5305_s27  ;;  %vm4860_vm9 = vcmask 257024  }
  0x13   : > { %v227_v5 = vld [vmem:[%s6592_s29 + $0x4] sm:$0xf]  ;;  %v6596_v6 = vld [vmem:[%s6592_s29 + $0x8] sm:$0xff]   ;;  %v956_v7 = vld [vmem:[%s6592_s29] sm:$0xe] }
  0x14   : > { %v4989_v8 = vcombine.low %v956_v7, %v227_v5  ;;  %v6600_v9 = vld [vmem:[%s6592_s29 + $0x10] sm:$0xff]   ;;  %v964_v10 = vrot.slane %v6596_v6, 1  ;;  %v6376_v15 = vld [vmem:[%s6592_s29 + $0x8] sm:$0xfe]   ;;  %v6378_v22 = vld [vmem:[%s6592_s29 + $0x18] sm:$0xff]   ;;  %v365_v45 = vshll.u32 %v6596_v6, 16 }
  0x15   : > { %8033 = vst [vmem:[#allocation2_spill] sm:$0xff] %v6600_v9  ;;  %v6377_v11 = vld [vmem:[%s6592_s29 + $0x10] sm:$0xff]   ;;  %v8030_v13 = vrot.slane %v6600_v9, 1  ;;  %v1396_v19 = vrot.slane %v6376_v15, 1  ;;  %v6379_v23 = vld [vmem:[%s6592_s29 + $0x20] sm:$0xff]   ;;  %v1399_v24 = vrot.slane %v6378_v22, 1 }
  0x16   : > { %v963_v12 = vrot.slane %v4989_v8, 1  ;;  %v1397_v16 = vrot.slane %v6377_v11, 1  ;;  %v1401_v25 = vrot.slane %v6379_v23, 1  ;;  %v6380_v27 = vld [vmem:[%s6592_s29 + $0x28] sm:$0xff]   ;;  %v6381_v28 = vld [vmem:[%s6592_s29 + $0x30] sm:$0xff]   ;;  %v6382_v36 = vld [vmem:[%s6592_s29 + $0x38] sm:$0xff]  }
  0x17   : > { %v967_v18 = vsel %vm962_vm2, %v964_v10, %v8030_v13  ;;  %v1403_v32 = vrot.slane %v6380_v27, 1  ;;  %v1405_v33 = vrot.slane %v6381_v28, 1  ;;  %v226_v34 = vld [vmem:[%s6592_s29] sm:$0xf]  ;;  %v1407_v40 = vrot.slane %v6382_v36, 1  ;;  %v6384_v44 = vld [vmem:[%s6592_s29 + $0x48] sm:$0xff]  }
  0x18   : > { %v965_v17 = vsel %vm962_vm2, %v963_v12, %v964_v10  ;;  %v1398_v21 = vsel %vm962_vm2, %v1396_v19, %v1397_v16  ;;  %v1400_v26 = vsel %vm962_vm2, %v1397_v16, %v1399_v24  ;;  %v1402_v30 = vsel %vm962_vm2, %v1399_v24, %v1401_v25  ;;  %v6383_v39 = vld [vmem:[%s6592_s29 + $0x40] sm:$0xff]   ;;  %v6649_v50 = vld [vmem:[%s6592_s29 + $0x50] sm:$0xff]   ;;  %v6652_v52 = vld [vmem:[%s6592_s29 + $0x18] sm:$0xff]  }
  0x19   : > { %5747 = vmatprep.mubr.msk.bf16.mxu0 %vm500_vm1, %v965_v17  ;;  %v1404_v35 = vsel %vm962_vm2, %v1401_v25, %v1403_v32  ;;  %v6635_v37 = vcombine.low %v226_v34, %v227_v5  ;;  %v1406_v38 = vsel %vm962_vm2, %v1403_v32, %v1405_v33  ;;  %v1409_v41 = vrot.slane %v6383_v39, 1  ;;  %v6656_v56 = vld [vmem:[%s6592_s29 + $0x20] sm:$0xff]   ;;  %v6386_v61 = vld [vmem:[%s6592_s29 + $0x58] sm:$0xff]   ;;  %v6674_v8 = vld [vmem:[%s6592_s29 + $0x30] sm:$0xff]  }
  0x1a   : > { %5748 = vmatmul.mubr.msk.bf16.vlgmr.msra.gmra.mrb[0].mxu0 %vm500_vm1, %v967_v18  ;;  %v369_v46 = vshrl.u32 %v6596_v6, 16  ;;  %v373_v48 = vshll.u32 %v6600_v9, 16  ;;  %v1408_v49 = vsel %vm962_vm2, %v1405_v33, %v1407_v40  ;;  %v367_v51 = vrot.slane %v365_v45, 1  ;;  %v6671_v6 = vld [vmem:[%s6592_s29 + $0x28] sm:$0xff]   ;;  %v6677_v10 = vld [vmem:[%s6592_s29 + $0x60] sm:$0xff]   ;;  %v6687_v17 = vld [vmem:[%s6592_s29 + $0x70] sm:$0xff]  }
  0x1b   : > { %5784 = vmatpush3.bf16.msra.mxu0 %v1486_v14  ;;  %5785 = vmatprep.mubr.msk.bf16.mxu0 %vm500_vm1, %v1398_v21  ;;  %v358_v42 = vshrl.u32 %v6635_v37, 16  ;;  %v360_v43 = vshll.u32 %v6635_v37, 16  ;;  %v1410_v53 = vsel %vm962_vm2, %v1407_v40, %v1409_v41  ;;  %v377_v59 = vshrl.u32 %v6600_v9, 16  ;;  %v6680_v11 = vld [vmem:[%s6592_s29 + $0x68] sm:$0xff]   ;;  %v6692_v21 = vld [vmem:[%s6592_s29 + $0x78] sm:$0xff]   ;;  %v6695_v22 = vld [vmem:[%s6592_s29 + $0x80] sm:$0xff]  }
  0x1c   : > { %6354 = vmatprep.subr.msk.bf16.mxu0 %vm555_vm0, %v5045_v20  ;;  %v375_v55 = vrot.slane %v373_v48, 1  ;;  %v371_v57 = vor.u32 %v369_v46, %v367_v51  ;;  %v1411_v60 = vrot.slane %v6384_v44, 1  ;;  %v381_v63 = vshll.u32 %v6652_v52, 16  ;;  %v1701_v23 = vld [vmem:[%s6592_s29 + $0x8] sm:$0xe]  ;;  %v6712_v33 = vld [vmem:[%s6592_s29 + $0x38] sm:$0xff]  }
  0x1d   : > { %v362_v47 = vrot.slane %v360_v43, 1  ;;  %v385_v2 = vshrl.u32 %v6652_v52, 16  ;;  %v1413_v3 = vrot.slane %v6649_v50, 1  ;;  %v389_v5 = vshll.u32 %v6656_v56, 16  ;;  %v6699_v24 = vld [vmem:[%s6592_s29 + $0xc] sm:$0xf] }
  0x1e   : > { %v376_v62 = vsel %vm356_vm3, %v371_v57, %v375_v55  ;;  %v379_v4 = vor.u32 %v377_v59, %v375_v55  ;;  %v383_v7 = vrot.slane %v381_v63, 1  ;;  %v6683_v14 = vsel %vm555_vm0, %v5083_v31, 0  ;;  %v6705_v27 = vld [vmem:[%s6592_s29 + $0x88] sm:$0xff]   ;;  %v6718_v36 = vld [vmem:[%s6592_s29 + $0x90] sm:$0xff]   ;;  %v6735_v48 = vld [vmem:[%s6592_s29 + $0x18] sm:$0xff]  }
  0x1f   : > { %v363_v54 = vor.u32 %v362_v47, %v358_v42  ;;  %v391_v12 = vrot.slane %v389_v5, 1  ;;  %v1412_v15 = vsel %vm962_vm2, %v1409_v41, %v1411_v60  ;;  %v1415_v16 = vrot.slane %v6386_v61, 1  ;;  %v6727_v41 = vld [vmem:[%s6592_s29 + $0x40] sm:$0xff]   ;;  %v6742_v55 = vld [vmem:[%s6592_s29 + $0x48] sm:$0xff]  }
  0x20   : > { %v384_v18 = vsel %vm356_vm3, %v379_v4, %v383_v7  ;;  %v387_v19 = vor.u32 %v385_v2, %v383_v7  ;;  %v1414_v20 = vsel %vm962_vm2, %v1411_v60, %v1413_v3  ;;  %v393_v25 = vshrl.u32 %v6656_v56, 16  ;;  %v6755_v7 = vld [vmem:[%s6592_s29 + $0x20] sm:$0xff]  }
  0x21   : > { %v368_v58 = vsel %vm356_vm3, %v363_v54, %v367_v51  ;;  %v1417_v34 = vrot.slane %v6677_v10, 1  ;;  %v1421_v39 = vrot.slane %v6687_v17, 1  ;;  %v5046_v42 = vcombine.low %v1701_v23, %v6699_v24  ;;  %v6758_v10 = vld [vmem:[%s6592_s29 + $0x28] sm:$0xff]   ;;  %v6772_v23 = vld [vmem:[%s6592_s29 + $0x30] sm:$0xff]   ;;  %v6964_v9 = vld [vmem:[%s6592_s29 + $0x80] sm:$0xff]  }
  0x22   : > { %5671 = vmatprep.mubr.msk.bf16.mxu1 %vm500_vm1, %v368_v58  ;;  %v392_v28 = vsel %vm356_vm3, %v387_v19, %v391_v12  ;;  %v409_v45 = vshrl.u32 %v6674_v8, 16  ;;  %v1423_v46 = vrot.slane %v6692_v21, 1  ;;  %v1425_v47 = vrot.slane %v6695_v22, 1 }
  0x23   : > { %5672 = vmatmul.mubr.msk.bf16.vlgmr.msra.gmra.mrb[0].mxu1 %vm500_vm1, %v376_v62  ;;  %v1416_v50 = vsel %vm962_vm2, %v1413_v3, %v1415_v16  ;;  %v1418_v51 = vsel %vm962_vm2, %v1415_v16, %v1417_v34  ;;  %v8031_v57 = vrot.slane %v6718_v36, 1  ;;  %v421_v60 = vshll.u32 %v6727_v41, 16  ;;  %v6764_v16 = vld [vmem:[%s6592_s29 + $0x50] sm:$0xff]  }
  0x24   : > { %5675 = vmatprep.mubr.msk.bf16.mxu1 %vm500_vm1, %v384_v18  ;;  %v1835_v61 = vshrl.u32 %v5046_v42, 16  ;;  %v417_v2 = vshrl.u32 %v6712_v33, 16  ;;  %v1838_v3 = vshll.u32 %v5046_v42, 16  ;;  %v1852_v4 = vshrl.u32 %v6735_v48, 16 }
  0x25   : > { %v1861_v42 = vshrl.u32 %v6755_v7, 16 }
  0x26   : > { %5786 = vmatmul.mubr.msk.bf16.vlgmr.msra.gmra.mrb[0].mxu0 %vm500_vm1, %v1400_v26  ;;  %v397_v26 = vshll.u32 %v6671_v6, 16 }
  0x27   : > { %5789 = vmatprep.mubr.msk.bf16.mxu0 %vm500_vm1, %v1402_v30  ;;  %5822 = vmatpush3.bf16.msra.mxu0 %v2055_v29  ;;  %v401_v29 = vshrl.u32 %v6671_v6, 16  ;;  %v405_v30 = vshll.u32 %v6674_v8, 16 }
  0x28   : > { %6355 = vmatprep.subr.msk.bf16.mxu0 %vm555_vm0, %v5083_v31  ;;  %v395_v31 = vor.u32 %v393_v25, %v391_v12  ;;  %v399_v32 = vrot.slane %v397_v26, 1  ;;  %v429_v12 = vshll.u32 %v6742_v55, 16  ;;  %v6775_v26 = vrot.slane %v1835_v61, 1 }
  0x29   : > { %v407_v44 = vrot.slane %v405_v30, 1 }
  0x2a   : > { %v400_v40 = vsel %vm356_vm3, %v395_v31, %v399_v32  ;;  %v403_v43 = vor.u32 %v401_v29, %v399_v32  ;;  %v431_v30 = vrot.slane %v429_v12, 1  ;;  %v6780_v31 = vld [vmem:[%s6592_s29 + $0x58] sm:$0xff]   ;;  %v6820_v12 = vld [vmem:[%s6592_s29 + $0x70] sm:$0xff]  }
  0x2b   : > { %5676 = vmatmul.mubr.msk.bf16.gmra.mrb[4].mxu1 %vm500_vm1, %v392_v28  ;;  %v411_v54 = vor.u32 %v409_v45, %v407_v44  ;;  %v6777_v28 = vrot.slane %v1838_v3, 2  ;;  %v1870_v45 = vshrl.u32 %v6758_v10, 16  ;;  %v445_v61 = vshll.u32 %v6780_v31, 16  ;;  %v6813_v3 = vld [vmem:[%s6592_s29 + $0x68] sm:$0xff]  }
  0x2c   : > { %5679 = vmatprep.mubr.msk.bf16.mxu1 %vm500_vm1, %v400_v40  ;;  %v408_v63 = vsel %vm356_vm3, %v403_v43, %v407_v44  ;;  %v6783_v40 = vrot.slane %v1852_v4, 1  ;;  %v1864_v44 = vshll.u32 %v6755_v7, 16  ;;  %v449_v17 = vshrl.u32 %v6780_v31, 16 }
  0x2d   : > { %v465_v13 = vshrl.u32 %v6813_v3, 16 }
  0x2e   : > { %5790 = vmatmul.mubr.msk.bf16.gmra.mrb[4].mxu0 %vm500_vm1, %v1404_v35  ;;  %v1419_v35 = vrot.slane %v6680_v11, 1  ;;  %v425_v11 = vshrl.u32 %v6727_v41, 16  ;;  %v6815_v4 = vrot.slane %v1864_v44, 2 }
  0x2f   : > { %5793 = vmatprep.mubr.msk.bf16.mxu0 %vm500_vm1, %v1406_v38  ;;  %v6721_v38 = vld [vmem:[%s6592_s29 + $0x10] sm:$0xff]  }
  0x30   : > { %v1843_v58 = vshrl.u32 %v6721_v38, 16  ;;  %v1846_v62 = vshll.u32 %v6721_v38, 16  ;;  %v1420_v32 = vsel %vm962_vm2, %v1417_v34, %v1419_v35  ;;  %v1422_v43 = vsel %vm962_vm2, %v1419_v35, %v1421_v39 }
  0x31   : > { %v1879_v34 = vshrl.u32 %v6772_v23, 16  ;;  %v2278_v22 = vrot.slane %v6721_v38, 2  ;;  %v6901_v38 = vld [vmem:[%s6592_s29 + $0x48] sm:$0xff]  }
  0x32   : > { %v6766_v18 = vrot.slane %v1843_v58, 1  ;;  %v6768_v19 = vrot.slane %v1846_v62, 2  ;;  %v433_v58 = vshrl.u32 %v6742_v55, 16 }
  0x33   : > { %5680 = vmatmul.mubr.msk.bf16.gmra.mrb[8].mxu1 %vm500_vm1, %v408_v63  ;;  %v6809_v63 = vrot.slane %v1861_v42, 1 }
  0x36   : > { %5794 = vmatmul.mubr.msk.bf16.gmra.mrb[8].mxu0 %vm500_vm1, %v1408_v49  ;;  %v413_v49 = vshll.u32 %v6712_v33, 16 }
  0x37   : > { %5797 = vmatprep.mubr.msk.bf16.mxu0 %vm500_vm1, %v1410_v53  ;;  %v1427_v53 = vrot.slane %v6705_v27, 1 }
  0x38   : > { %v415_v59 = vrot.slane %v413_v49, 1  ;;  %v6792_v49 = vld [vmem:[%s6592_s29 + $0x38] sm:$0xff]  }
  0x3a   : > { %v416_v5 = vsel %vm356_vm3, %v411_v54, %v415_v59  ;;  %v419_v25 = vor.u32 %v417_v2, %v415_v59  ;;  %v6800_v59 = vld [vmem:[%s6592_s29 + $0x60] sm:$0xff]   ;;  %v1882_v2 = vshll.u32 %v6772_v23, 16 }
  0x3b   : > { %5683 = vmatprep.mubr.msk.bf16.mxu1 %vm500_vm1, %v416_v5  ;;  %v1888_v5 = vshrl.u32 %v6792_v49, 16  ;;  %v453_v44 = vshll.u32 %v6800_v59, 16 }
  0x3d   : > { %v455_v21 = vrot.slane %v453_v44, 1  ;;  %v1428_v44 = vsel %vm962_vm2, %v1425_v47, %v1427_v53 }
  0x3e   : > { %5798 = vmatmul.mubr.msk.bf16.gmra.mrb[12].mxu0 %vm500_vm1, %v1412_v15  ;;  %v423_v15 = vrot.slane %v421_v60, 1  ;;  %v441_v60 = vshrl.u32 %v6764_v16, 16 }
  0x3f   : > { %5801 = vmatprep.mubr.msk.bf16.mxu0 %vm500_vm1, %v1414_v20  ;;  %v1855_v20 = vshll.u32 %v6735_v48, 16 }
  0x40   : > { %v427_v29 = vor.u32 %v425_v11, %v423_v15  ;;  %v424_v54 = vsel %vm356_vm3, %v419_v25, %v423_v15  ;;  %v1424_v15 = vsel %vm962_vm2, %v1421_v39, %v1423_v46  ;;  %v461_v39 = vshll.u32 %v6813_v3, 16 }
  0x41   : > { %v6807_v62 = vrot.slane %v1855_v20, 2  ;;  %5684 = vmatmul.mubr.msk.bf16.gmra.mrb[12].mxu1 %vm500_vm1, %v424_v54  ;;  %v6827_v20 = vrot.slane %v1870_v45, 1  ;;  %v469_v45 = vshll.u32 %v6820_v12, 16 }
  0x42   : > { %v432_v35 = vsel %vm356_vm3, %v427_v29, %v431_v30  ;;  %v435_v29 = vor.u32 %v433_v58, %v431_v30  ;;  %v1426_v30 = vsel %vm962_vm2, %v1423_v46, %v1425_v47  ;;  %v2280_v47 = vrot.slane %v6735_v48, 2  ;;  %v6904_v48 = vld [vmem:[%s6592_s29 + $0x50] sm:$0xff]  }
  0x43   : > { %5687 = vmatprep.mubr.msk.bf16.mxu1 %vm500_vm1, %v432_v35  ;;  %v457_v35 = vshrl.u32 %v6800_v59, 16  ;;  %v6861_v54 = vrot.slane %v469_v45, 1 }
  0x46   : > { %5802 = vmatmul.mubr.msk.bf16.gmra.mrb[16].mxu0 %vm500_vm1, %v1416_v50  ;;  %v437_v50 = vshll.u32 %v6764_v16, 16 }
  0x47   : > { %5805 = vmatprep.mubr.msk.bf16.mxu0 %vm500_vm1, %v1418_v51  ;;  %v1873_v51 = vshll.u32 %v6758_v10, 16 }
  0x48   : > { %v439_v11 = vrot.slane %v437_v50, 1  ;;  %v6835_v50 = vrot.slane %v1882_v2, 2  ;;  %v2270_v2 = vld [vmem:[%s6592_s29 + $0x8] sm:$0xc] }
  0x49   : > { %v6829_v25 = vrot.slane %v1873_v51, 2  ;;  %v6845_v51 = vrot.slane %v1888_v5, 1  ;;  %v463_v5 = vrot.slane %v461_v39, 1  ;;  %v263_v39 = vld [vmem:[%s6592_s29 + $0x8c] sm:$0xf] }
  0x4a   : > { %v443_v42 = vor.u32 %v441_v60, %v439_v11  ;;  %v440_v58 = vsel %vm356_vm3, %v435_v29, %v439_v11  ;;  %v6854_v60 = vld [vmem:[%s6592_s29 + $0x80] sm:$0xff]   ;;  %v473_v11 = vshrl.u32 %v6820_v12, 16 }
  0x4b   : > { %5688 = vmatmul.mubr.msk.bf16.gmra.mrb[16].mxu1 %vm500_vm1, %v440_v58  ;;  %v485_v45 = vshll.u32 %v6854_v60, 16  ;;  %v1430_v58 = vsel %vm962_vm2, %v1427_v53, %v8031_v57  ;;  %v6910_v53 = vsel %vm2276_vm5, %v2278_v22, %v2280_v47  ;;  %v6927_v57 = vld [vmem:[%s6592_s29 + $0x60] sm:$0xff]  }
  0x4e   : > { %5806 = vmatmul.mubr.msk.bf16.gmra.mrb[20].mxu0 %vm500_vm1, %v1420_v32  ;;  %v6832_v32 = vrot.slane %v1879_v34, 1  ;;  %v6848_v34 = vld [vmem:[%s6592_s29 + $0x78] sm:$0xff]  }
  0x4f   : > { %5809 = vmatprep.mubr.msk.bf16.mxu0 %vm500_vm1, %v1422_v43  ;;  %v447_v43 = vrot.slane %v445_v61, 1  ;;  %v477_v29 = vshll.u32 %v6848_v34, 16 }
  0x51   : > { %v448_v61 = vsel %vm356_vm3, %v443_v42, %v447_v43  ;;  %v451_v46 = vor.u32 %v449_v17, %v447_v43  ;;  %v6868_v42 = vld [vmem:[%s6592_s29 + $0x88] sm:$0xf]  ;;  %v262_v43 = vld [vmem:[%s8025_s1] sm:$0x1]  ;;  %v459_v17 = vor.u32 %v457_v35, %v455_v21  ;;  %v1841_v35 = vor.u32 %v6777_v28, %v6775_v26 }
  0x52   : > { %5691 = vmatprep.mubr.msk.bf16.mxu1 %vm500_vm1, %v448_v61  ;;  %6350 = vmatprep.subr.msk.bf16.mxu1 %vm555_vm0, %v262_v43  ;;  %v6894_v61 = vor.u32 %v6768_v19, %v6766_v18  ;;  %v6913_v18 = vcombine.low %v6868_v42, %v263_v39  ;;  %v6916_v19 = vld [vmem:[%s6592_s29 + $0x58] sm:$0xff]   ;;  %v2282_v28 = vrot.slane %v6755_v7, 2  ;;  %v2286_v39 = vrot.slane %v6772_v23, 2  ;;  %v6933_v7 = vld [vmem:[%s6592_s29 + $0x70] sm:$0xff]  }
  0x53   : > { %v464_v26 = vsel %vm356_vm3, %v459_v17, %v463_v5  ;;  %v6930_v17 = vld [vmem:[%s6592_s29 + $0x68] sm:$0xff]   ;;  %v6946_v23 = vld [vmem:[%s6592_s29 + $0x78] sm:$0xff]  }
  0x56   : > { %5810 = vmatmul.mubr.msk.bf16.gmra.mrb[24].mxu0 %vm500_vm1, %v1424_v15  ;;  %v5084_v15 = vcombine.low %v2270_v2, %v6699_v24  ;;  %v6897_v2 = vld [vmem:[%s6592_s29 + $0x40] sm:$0xff]   ;;  %v479_v24 = vrot.slane %v477_v29, 1  ;;  %v467_v29 = vor.u32 %v465_v13, %v463_v5  ;;  %v2288_v5 = vrot.slane %v6792_v49, 2 }
  0x57   : > { %5813 = vmatprep.mubr.msk.bf16.mxu0 %vm500_vm1, %v1426_v30 }
  0x58   : > { %v2277_v30 = vrot.slane %v5084_v15, 2  ;;  %v456_v15 = vsel %vm356_vm3, %v451_v46, %v455_v21  ;;  %v2284_v21 = vrot.slane %v6758_v10, 2  ;;  %v777_v46 = vsel %vm555_vm0, %v262_v43, 0 }
  0x59   : > { %5708 = vmatpush3.bf16.msra.mxu1 %v777_v46  ;;  %v6936_v10 = vsel %vm2276_vm5, %v2280_v47, %v2282_v28  ;;  %v2290_v43 = vrot.slane %v6897_v2, 2  ;;  %v2292_v47 = vrot.slane %v6901_v38, 2  ;;  %v6957_v46 = vsel %vm2276_vm5, %v2286_v39, %v2288_v5 }
  0x5a   : > { %v6907_v27 = vsel %vm2276_vm5, %v2277_v30, %v2278_v22  ;;  %v487_v30 = vrot.slane %v485_v45, 1  ;;  %v493_v22 = vshll.u32 %v6913_v18, 16  ;;  %v6939_v13 = vsel %vm2276_vm5, %v2282_v28, %v2284_v21  ;;  %6352 = vmatprep.subr.msk.bf16.mxu1 %vm555_vm0, %v6568_v0  ;;  %5692 = vmatmul.mubr.msk.bf16.gmra.mrb[20].mxu1 %vm500_vm1, %v456_v15  ;;  %8036 = vst [vmem:[#allocation5_spill] sm:$0xff] %v6957_v46 }
  0x5b   : > { %8034 = vst [vmem:[#allocation3_spill] sm:$0xff] %v6939_v13  ;;  %v6951_v45 = vsel %vm2276_vm5, %v2284_v21, %v2286_v39  ;;  %5695 = vmatprep.mubr.msk.bf16.mxu1 %vm500_vm1, %v464_v26  ;;  %v6960_v0 = vsel %vm2276_vm5, %v2288_v5, %v2290_v43  ;;  %v2296_v15 = vrot.slane %v6916_v19, 2  ;;  %v475_v21 = vor.u32 %v473_v11, %v6861_v54  ;;  %v6974_v26 = vld [vmem:[%s6592_s29 + $0x88] sm:$0xff]  }
  0x5c   : > { %8035 = vst [vmem:[#allocation4_spill] sm:$0xff] %v6951_v45  ;;  %v495_v28 = vrot.slane %v493_v22, 1  ;;  %8037 = vst [vmem:[#allocation6_spill] sm:$0xff] %v6960_v0  ;;  %v6968_v45 = vsel %vm2276_vm5, %v2290_v43, %v2292_v47  ;;  %v2298_v39 = vrot.slane %v6927_v57, 2  ;;  %v2300_v5 = vrot.slane %v6930_v17, 2 }
  0x5d   : > { %8038 = vst [vmem:[#allocation7_spill] sm:$0xff] %v6968_v45  ;;  %v2302_v0 = vrot.slane %v6933_v7, 2  ;;  %v1850_v11 = vsel %vm1833_vm4, %v1841_v35, %v6894_v61  ;;  %v2304_v43 = vrot.slane %v6946_v23, 2  ;;  %v8041_v45 = vrot.slane %v6718_v36, 1 }
  0x5e   : > { %5814 = vmatmul.mubr.msk.bf16.gmra.mrb[28].mxu0 %vm500_vm1, %v1428_v44  ;;  %v489_v44 = vshrl.u32 %v6854_v60, 16  ;;  %v480_v35 = vsel %vm356_vm3, %v475_v21, %v479_v24  ;;  %v1867_v36 = vor.u32 %v6815_v4, %v6809_v63  ;;  %v7026_v63 = vld [vmem:[%s6592_s29 + $0x98] ss:$0 sps:$4 sm:$0x11]   ;;  %v7031_v4 = vld [vmem:[%s8025_s1 + $0x6] sm:$0x1] }
  0x5f   : > { %5817 = vmatprep.mubr.msk.bf16.mxu0 %vm500_vm1, %v1430_v58  ;;  %v2294_v58 = vrot.slane %v6904_v48, 2  ;;  %v7001_v46 = vsel %vm2276_vm5, %v2302_v0, %v2304_v43 }
  0x61   : > { %v6971_v13 = vsel %vm2276_vm5, %v2292_v47, %v2294_v58  ;;  %v6977_v22 = vsel %vm2276_vm5, %v2294_v58, %v2296_v15  ;;  %v472_v47 = vsel %vm356_vm3, %v467_v29, %v6861_v54  ;;  %v6991_v58 = vsel %vm2276_vm5, %v2298_v39, %v2300_v5 }
  0x62   : > { %8039 = vst [vmem:[#allocation8_spill] sm:$0xff] %v6971_v13  ;;  %8040 = vst [vmem:[#allocation9_spill] sm:$0xff] %v6977_v22  ;;  %v6988_v13 = vsel %vm2276_vm5, %v2296_v15, %v2298_v39  ;;  %v6994_v22 = vsel %vm2276_vm5, %v2300_v5, %v2302_v0  ;;  %v2306_v54 = vrot.slane %v6964_v9, 2  ;;  %v1858_v29 = vor.u32 %v6807_v62, %v6783_v40  ;;  %v7021_v5 = vld [vmem:[%s6592_s29 + $0x90] sm:$0xff]  }
  0x63   : > { %v2308_v15 = vrot.slane %v6974_v26, 2  ;;  %5696 = vmatmul.mubr.msk.bf16.gmra.mrb[24].mxu1 %vm500_vm1, %v472_v47  ;;  %v8042_v0 = vshrl.u32 %v6848_v34, 16  ;;  %v491_v40 = vor.u32 %v489_v44, %v487_v30  ;;  %v2310_v44 = vrot.slane %v7021_v5, 2 }
  0x64   : > { %5699 = vmatprep.mubr.msk.bf16.mxu1 %vm500_vm1, %v480_v35  ;;  %v1859_v62 = vsel %vm1833_vm4, %v6894_v61, %v1858_v29  ;;  %v1876_v61 = vor.u32 %v6829_v25, %v6827_v20  ;;  %v1885_v47 = vor.u32 %v6835_v50, %v6832_v32  ;;  %v2312_v35 = vrot.slane %v7026_v63, 2 }
  0x65   : > { %v483_v21 = vor.u32 %v8042_v0, %v479_v24  ;;  %v7018_v39 = vsel %vm2276_vm5, %v2306_v54, %v2308_v15  ;;  %v7052_v20 = vsel %vm2276_vm5, %v2308_v15, %v2310_v44  ;;  %v8043_v25 = vshll.u32 %v6792_v49, 16 }
  0x66   : > { %5818 = vmatmul.mubr.msk.bf16.gmra.mrb[32].mxu0 %vm500_vm1, %v8041_v45  ;;  %v7012_v45 = vsel %vm2276_vm5, %v2304_v43, %v2306_v54  ;;  %v496_v43 = vsel %vm356_vm3, %v491_v40, %v495_v28  ;;  %v1900_v54 = vshll.u32 %v6897_v2, 16  ;;  %v1877_v50 = vsel %vm1833_vm4, %v1867_v36, %v1876_v61 }
  0x67   : > { %5823 = vmatprep.mubr.msk.bf16.mxu0 %vm500_vm1, %v1850_v11  ;;  %v1868_v11 = vsel %vm1833_vm4, %v1858_v29, %v1867_v36  ;;  %v488_v24 = vsel %vm356_vm3, %v483_v21, %v487_v30  ;;  %v1897_v30 = vshrl.u32 %v6897_v2, 16  ;;  %v497_v29 = vshrl.u32 %v6913_v18, 16 }
  0x68   : > { %v1893_v32 = vrot.slane %v8043_v25, 2  ;;  %v1886_v2 = vsel %vm1833_vm4, %v1876_v61, %v1885_v47  ;;  %v1902_v21 = vrot.slane %v1900_v54, 2  ;;  %v1906_v49 = vshrl.u32 %v6901_v38, 16  ;;  %v6516_v25 = vld [vmem:[%s6592_s29 + $0x10] sm:$0xff]  }
  0x69   : > { %v1899_v0 = vrot.slane %v1897_v30, 1  ;;  %v499_v40 = vor.u32 %v497_v29, %v495_v28  ;;  %v1918_v36 = vshll.u32 %v6904_v48, 16  ;;  %v1927_v30 = vshll.u32 %v6916_v19, 16  ;;  %v6515_v29 = vld [vmem:[%s6592_s29 + $0x8] sm:$0xff]  }
  0x6a   : > { %v1894_v15 = vor.u32 %v1893_v32, %v6845_v51 }
  0x6b   : > { %5700 = vmatmul.mubr.msk.bf16.gmra.mrb[28].mxu1 %vm500_vm1, %v488_v24  ;;  %v1915_v24 = vshrl.u32 %v6904_v48, 16 }
  0x6c   : > { %5703 = vmatprep.mubr.msk.bf16.mxu1 %vm500_vm1, %v496_v43  ;;  %v1895_v28 = vsel %vm1833_vm4, %v1885_v47, %v1894_v15  ;;  %v1908_v43 = vrot.slane %v1906_v49, 1  ;;  %v1936_v47 = vshll.u32 %v6927_v57, 16 }
  0x6d   : > { %v1917_v61 = vrot.slane %v1915_v24, 1 }
  0x6e   : > { %5824 = vmatmul.mubr.msk.bf16.vlgmr.msra.gmra.mrb[0].mxu0 %vm500_vm1, %v1859_v62  ;;  %v1909_v62 = vshll.u32 %v6901_v38, 16  ;;  %v1920_v38 = vrot.slane %v1918_v36, 2 }
  0x6f   : > { %5827 = vmatprep.mubr.msk.bf16.mxu0 %vm500_vm1, %v1868_v11  ;;  %5860 = vmatpush3.bf16.msra.mxu0 %v6683_v14  ;;  %v7058_v14 = vsel %vm2276_vm5, %v2310_v44, %v2312_v35  ;;  %v1903_v11 = vor.u32 %v1902_v21, %v1899_v0  ;;  %v1924_v35 = vshrl.u32 %v6916_v19, 16  ;;  %v1938_v21 = vrot.slane %v1936_v47, 2 }
  0x70   : > { %6356 = vmatprep.subr.msk.bf16.mxu0 %vm555_vm0, %v7031_v4  ;;  %v1911_v51 = vrot.slane %v1909_v62, 2  ;;  %v1921_v54 = vor.u32 %v1920_v38, %v1917_v61  ;;  %v1954_v62 = vshll.u32 %v6933_v7, 16  ;;  %v1972_v61 = vshll.u32 %v6964_v9, 16 }
  0x71   : > { %v1904_v44 = vsel %vm1833_vm4, %v1894_v15, %v1903_v11  ;;  %v1945_v15 = vshll.u32 %v6930_v17, 16  ;;  %v1981_v47 = vshll.u32 %v6974_v26, 16 }
  0x72   : > { %v1912_v48 = vor.u32 %v1911_v51, %v1908_v43  ;;  %v1956_v51 = vrot.slane %v1954_v62, 2 }
  0x73   : > { %5704 = vmatmul.mubr.msk.bf16.gmra.mrb[32].mxu1 %vm500_vm1, %v499_v40  ;;  %v1942_v40 = vshrl.u32 %v6930_v17, 16  ;;  %v1947_v36 = vrot.slane %v1945_v15, 2  ;;  %v1996_v15 = vshll.u32 %v7026_v63, 16  ;;  %v2808_v63 = vsel %vm555_vm0, %v7031_v4, 0  ;;  %v6517_v4 = vld [vmem:[%s6592_s29 + $0x18] sm:$0xff]  }
  0x74   : > { %5709 = vmatprep.mubr.msk.bf16.mxu1 %vm500_vm1, %v6635_v37  ;;  %v1933_v37 = vshrl.u32 %v6927_v57, 16  ;;  %v1913_v32 = vsel %vm1833_vm4, %v1903_v11, %v1912_v48  ;;  %v1922_v0 = vsel %vm1833_vm4, %v1912_v48, %v1921_v54 }
  0x75   : > { %v1944_v24 = vrot.slane %v1942_v40, 1 }
  0x76   : > { %5828 = vmatmul.mubr.msk.bf16.gmra.mrb[4].mxu0 %vm500_vm1, %v1877_v50  ;;  %v1926_v50 = vrot.slane %v1924_v35, 1  ;;  %v1935_v19 = vrot.slane %v1933_v37, 1  ;;  %v1974_v37 = vrot.slane %v1972_v61, 2  ;;  %v8049_v61 = vld [vmem:[#allocation6_spill] sm:$0xff] }
  0x77   : > { %5831 = vmatprep.mubr.msk.bf16.mxu0 %vm500_vm1, %v1886_v2  ;;  %v1929_v2 = vrot.slane %v1927_v30, 2  ;;  %v1948_v17 = vor.u32 %v1947_v36, %v1944_v24  ;;  %v968_v24 = vrot.slane %v6517_v4, 1  ;;  %v7293_v4 = vld [vmem:[%s6592_s29 + $0x48] sm:$0xff]  }
  0x78   : > { %v1939_v49 = vor.u32 %v1938_v21, %v1935_v19 }
  0x79   : > { %v1930_v57 = vor.u32 %v1929_v2, %v1926_v50 }
  0x7a   : > { %v1949_v38 = vsel %vm1833_vm4, %v1939_v49, %v1948_v17 }
  0x7b   : > { %5710 = vmatmul.mubr.msk.bf16.vlgmr.msra.gmra.mrb[0].mxu1 %vm500_vm1, %v6515_v29  ;;  %v1931_v11 = vsel %vm1833_vm4, %v1921_v54, %v1930_v57 }
  0x7c   : > { %5713 = vmatprep.mubr.msk.bf16.mxu1 %vm500_vm1, %v6516_v25  ;;  %6060 = vmatpush3.bf16.msra.mxu1 %v6574_v1  ;;  %v1951_v1 = vshrl.u32 %v6933_v7, 16  ;;  %v1960_v7 = vshrl.u32 %v6946_v23, 16  ;;  %v1987_v25 = vshrl.u32 %v7021_v5, 16 }
  0x7e   : > { %5832 = vmatmul.mubr.msk.bf16.gmra.mrb[8].mxu0 %vm500_vm1, %v1895_v28  ;;  %v1940_v28 = vsel %vm1833_vm4, %v1930_v57, %v1939_v49  ;;  %v1953_v43 = vrot.slane %v1951_v1, 1  ;;  %v1962_v48 = vrot.slane %v1960_v7, 1  ;;  %v1989_v21 = vrot.slane %v1987_v25, 1  ;;  %v7226_v25 = vld [vmem:[%s6592_s29 + $0x14] sm:$0xf] }
  0x7f   : > { %5835 = vmatprep.mubr.msk.bf16.mxu0 %vm500_vm1, %v1904_v44  ;;  %v1998_v1 = vrot.slane %v1996_v15, 2 }
  0x80   : > { %v1957_v44 = vor.u32 %v1956_v51, %v1953_v43  ;;  %v8047_v51 = vld [vmem:[#allocation4_spill] sm:$0xff] }
  0x82   : > { %v1958_v30 = vsel %vm1833_vm4, %v1948_v17, %v1957_v44  ;;  %v6518_v17 = vld [vmem:[%s6592_s29 + $0x20] sm:$0xff]  }
  0x83   : > { %5714 = vmatmul.mubr.msk.bf16.gmra.mrb[4].mxu1 %vm500_vm1, %v6652_v52  ;;  %v1963_v52 = vshll.u32 %v6946_v23, 16  ;;  %v970_v7 = vrot.slane %v6518_v17, 1 }
  0x84   : > { %5717 = vmatprep.mubr.msk.bf16.mxu1 %vm500_vm1, %v6656_v56  ;;  %v1969_v56 = vshrl.u32 %v6964_v9, 16  ;;  %v1978_v9 = vshrl.u32 %v6974_v26, 16 }
  0x85   : > { %v1965_v35 = vrot.slane %v1963_v52, 2  ;;  %v972_v52 = vrot.slane %v6671_v6, 1 }
  0x86   : > { %5836 = vmatmul.mubr.msk.bf16.gmra.mrb[12].mxu0 %vm500_vm1, %v1913_v32  ;;  %v1971_v54 = vrot.slane %v1969_v56, 1  ;;  %v1990_v32 = vshll.u32 %v7021_v5, 16  ;;  %v1980_v2 = vrot.slane %v1978_v9, 1 }
  0x87   : > { %5839 = vmatprep.mubr.msk.bf16.mxu0 %vm500_vm1, %v1922_v0  ;;  %v1966_v23 = vor.u32 %v1965_v35, %v1962_v48  ;;  %v1983_v0 = vrot.slane %v1981_v47, 2  ;;  %v973_v56 = vsel %vm962_vm2, %v970_v7, %v972_v52  ;;  %v976_v48 = vrot.slane %v6712_v33, 1  ;;  %v8050_v35 = vld [vmem:[#allocation7_spill] sm:$0xff] }
  0x88   : > { %v1975_v29 = vor.u32 %v1974_v37, %v1971_v54  ;;  %v1992_v57 = vrot.slane %v1990_v32, 2  ;;  %v8051_v54 = vld [vmem:[#allocation8_spill] sm:$0xff]  ;;  %v978_v37 = vrot.slane %v6727_v41, 1  ;;  %v982_v47 = vrot.slane %v6764_v16, 1  ;;  %v7235_v32 = vld [vmem:[%s6592_s29 + $0x18] sm:$0xff]  }
  0x89   : > { %v1967_v50 = vsel %vm1833_vm4, %v1957_v44, %v1966_v23  ;;  %v1984_v26 = vor.u32 %v1983_v0, %v1980_v2  ;;  %v8048_v44 = vld [vmem:[#allocation5_spill] sm:$0xff]  ;;  %v2717_v2 = vrot.slane %v7235_v32, 2  ;;  %v996_v0 = vrot.slane %v6913_v18, 1 }
  0x8a   : > { %v1976_v19 = vsel %vm1833_vm4, %v1966_v23, %v1975_v29  ;;  %v1993_v5 = vor.u32 %v1992_v57, %v1989_v21  ;;  %v8052_v23 = vld [vmem:[#allocation9_spill] sm:$0xff]  ;;  %v7254_v21 = vld [vmem:[%s6592_s29 + $0x28] sm:$0xff]  }
  0x8b   : > { %5718 = vmatmul.mubr.msk.bf16.gmra.mrb[8].mxu1 %vm500_vm1, %v6671_v6  ;;  %v1985_v40 = vsel %vm1833_vm4, %v1975_v29, %v1984_v26 }
  0x8c   : > { %5721 = vmatprep.mubr.msk.bf16.mxu1 %vm500_vm1, %v6674_v8  ;;  %v1994_v49 = vsel %vm1833_vm4, %v1984_v26, %v1993_v5  ;;  %v1999_v62 = vsel %vm1833_vm4, %v1993_v5, %v1998_v1  ;;  %v2721_v26 = vrot.slane %v7254_v21, 2  ;;  %v7267_v5 = vld [vmem:[%s6592_s29 + $0x30] sm:$0xff]  }
  0x8d   : > { %v2723_v1 = vrot.slane %v7267_v5, 2 }
  0x8e   : > { %5840 = vmatmul.mubr.msk.bf16.gmra.mrb[16].mxu0 %vm500_vm1, %v1931_v11  ;;  %v7151_v11 = vld [vmem:[%s8025_s1 + $0x7] sm:$0x1] }
  0x8f   : > { %5843 = vmatprep.mubr.msk.bf16.mxu0 %vm500_vm1, %v1940_v28  ;;  %v8044_v28 = vld [vmem:[#allocation3_spill] sm:$0xff]  ;;  %v3255_v15 = vsel %vm555_vm0, %v7151_v11, 0 }
  0x93   : > { %5722 = vmatmul.mubr.msk.bf16.gmra.mrb[12].mxu1 %vm500_vm1, %v6712_v33  ;;  %v979_v33 = vsel %vm962_vm2, %v976_v48, %v978_v37 }
  0x94   : > { %5725 = vmatprep.mubr.msk.bf16.mxu1 %vm500_vm1, %v6727_v41  ;;  %v984_v41 = vrot.slane %v6780_v31, 1 }
  0x96   : > { %5844 = vmatmul.mubr.msk.bf16.gmra.mrb[20].mxu0 %vm500_vm1, %v1949_v38  ;;  %v974_v38 = vrot.slane %v6674_v8, 1  ;;  %v980_v8 = vrot.slane %v6742_v55, 1  ;;  %v985_v29 = vsel %vm962_vm2, %v982_v47, %v984_v41 }
  0x97   : > { %5847 = vmatprep.mubr.msk.bf16.mxu0 %vm500_vm1, %v1958_v30 }
  0x98   : > { %v975_v6 = vsel %vm962_vm2, %v972_v52, %v974_v38  ;;  %v977_v30 = vsel %vm962_vm2, %v974_v38, %v976_v48  ;;  %v981_v9 = vsel %vm962_vm2, %v978_v37, %v980_v8  ;;  %v7313_v52 = vld [vmem:[%s6592_s29 + $0x60] sm:$0xff]   ;;  %v7325_v48 = vld [vmem:[%s6592_s29 + $0x70] sm:$0xff]  }
  0x9b   : > { %5726 = vmatmul.mubr.msk.bf16.gmra.mrb[16].mxu1 %vm500_vm1, %v6742_v55  ;;  %v983_v55 = vsel %vm962_vm2, %v980_v8, %v982_v47  ;;  %v7337_v8 = vld [vmem:[%s6592_s29 + $0x80] sm:$0xff]  }
  0x9c   : > { %5729 = vmatprep.mubr.msk.bf16.mxu1 %vm500_vm1, %v6764_v16  ;;  %v986_v16 = vrot.slane %v6800_v59, 1 }
  0x9e   : > { %5848 = vmatmul.mubr.msk.bf16.gmra.mrb[24].mxu0 %vm500_vm1, %v1967_v50 }
  0x9f   : > { %5851 = vmatprep.mubr.msk.bf16.mxu0 %vm500_vm1, %v1976_v19 }
  0xa3   : > { %5730 = vmatmul.mubr.msk.bf16.gmra.mrb[20].mxu1 %vm500_vm1, %v6780_v31  ;;  %v987_v31 = vsel %vm962_vm2, %v984_v41, %v986_v16 }
  0xa4   : > { %5733 = vmatprep.mubr.msk.bf16.mxu1 %vm500_vm1, %v6800_v59  ;;  %v990_v59 = vrot.slane %v6820_v12, 1 }
  0xa6   : > { %5852 = vmatmul.mubr.msk.bf16.gmra.mrb[28].mxu0 %vm500_vm1, %v1985_v40  ;;  %v7271_v40 = vld [vmem:[%s6592_s29 + $0x38] sm:$0xff]  }
  0xa7   : > { %5855 = vmatprep.mubr.msk.bf16.mxu0 %vm500_vm1, %v1994_v49  ;;  %v7278_v49 = vld [vmem:[%s8025_s1 + $0x8] sm:$0x1] }
  0xab   : > { %5734 = vmatmul.mubr.msk.bf16.gmra.mrb[24].mxu1 %vm500_vm1, %v6813_v3 }
  0xac   : > { %5737 = vmatprep.mubr.msk.bf16.mxu1 %vm500_vm1, %v6820_v12 }
  0xae   : > { %5856 = vmatmul.mubr.msk.bf16.gmra.mrb[32].mxu0 %vm500_vm1, %v1999_v62  ;;  %v2725_v62 = vrot.slane %v7271_v40, 2 }
  0xaf   : > { %5861 = vmatprep.mubr.msk.bf16.mxu0 %vm500_vm1, %v6907_v27  ;;  %v261_v27 = vld [vmem:[%s6592_s29 + $0x8c] sm:$0x7] }
  0xb0   : > { %v4969_v36 = vcombine.low %v6868_v42, %v261_v27  ;;  %v971_v42 = vsel %vm962_vm2, %v968_v24, %v970_v7  ;;  %v2726_v27 = vsel %vm2276_vm5, %v2723_v1, %v2725_v62 }
  0xb3   : > { %5738 = vmatmul.mubr.msk.bf16.gmra.mrb[28].mxu1 %vm500_vm1, %v6848_v34 }
  0xb4   : > { %5741 = vmatprep.mubr.msk.bf16.mxu1 %vm500_vm1, %v6854_v60 }
  0xb6   : > { %5862 = vmatmul.mubr.msk.bf16.vlgmr.msra.gmra.mrb[0].mxu0 %vm500_vm1, %v6910_v53  ;;  %v8045_v53 = vld [vmem:[#allocation2_spill] sm:$0xff] }
  0xb7   : > { %5865 = vmatprep.mubr.msk.bf16.mxu0 %vm500_vm1, %v6936_v10  ;;  %5898 = vmatpush3.bf16.msra.mxu0 %v2808_v63  ;;  %v8046_v10 = vrot.slane %v8045_v53, 1  ;;  %v2724_v63 = vsel %vm2276_vm5, %v2721_v26, %v2723_v1  ;;  %v7301_v53 = vld [vmem:[%s6592_s29 + $0x50] sm:$0xff]  }
  0xb8   : > { %6357 = vmatprep.subr.msk.bf16.mxu0 %vm555_vm0, %v7151_v11  ;;  %v7289_v11 = vld [vmem:[%s6592_s29 + $0x40] sm:$0xff]  }
  0xb9   : > { %v969_v43 = vsel %vm962_vm2, %v8046_v10, %v968_v24  ;;  %v2727_v24 = vrot.slane %v7289_v11, 2 }
  0xbb   : > { %5742 = vmatmul.mubr.msk.bf16.gmra.mrb[32].mxu1 %vm500_vm1, %v4969_v36  ;;  %v2729_v36 = vrot.slane %v7293_v4, 2 }
  0xbc   : > { %5751 = vmatprep.mubr.msk.bf16.mxu1 %vm500_vm1, %v969_v43  ;;  %v7305_v43 = vld [vmem:[%s6592_s29 + $0x58] sm:$0xff]  }
  0xbd   : > { %v2730_v10 = vsel %vm2276_vm5, %v2727_v24, %v2729_v36  ;;  %v2733_v17 = vrot.slane %v7305_v43, 2 }
  0xbe   : > { %5866 = vmatmul.mubr.msk.bf16.gmra.mrb[4].mxu0 %vm500_vm1, %v8044_v28  ;;  %v2728_v28 = vsel %vm2276_vm5, %v2725_v62, %v2727_v24 }
  0xbf   : > { %5869 = vmatprep.mubr.msk.bf16.mxu0 %vm500_vm1, %v8047_v51  ;;  %v2731_v51 = vrot.slane %v7301_v53, 2 }
  0xc1   : > { %v2732_v7 = vsel %vm2276_vm5, %v2729_v36, %v2731_v51 }
  0xc3   : > { %5752 = vmatmul.mubr.msk.bf16.vlgmr.msra.gmra.mrb[4].mxu1 %vm500_vm1, %v971_v42  ;;  %v2734_v42 = vsel %vm2276_vm5, %v2731_v51, %v2733_v17 }
  0xc4   : > { %5755 = vmatprep.mubr.msk.bf16.mxu1 %vm500_vm1, %v973_v56  ;;  %v2735_v56 = vrot.slane %v7313_v52, 2 }
  0xc6   : > { %5870 = vmatmul.mubr.msk.bf16.gmra.mrb[8].mxu0 %vm500_vm1, %v8048_v44  ;;  %v7317_v44 = vld [vmem:[%s6592_s29 + $0x68] sm:$0xff]   ;;  %v2736_v38 = vsel %vm2276_vm5, %v2733_v17, %v2735_v56  ;;  %v3075_v17 = vshrl.u32 %v7271_v40, 16 }
  0xc7   : > { %5873 = vmatprep.mubr.msk.bf16.mxu0 %vm500_vm1, %v8049_v61  ;;  %v2737_v61 = vrot.slane %v7317_v44, 2 }
  0xcb   : > { %5756 = vmatmul.mubr.msk.bf16.gmra.mrb[8].mxu1 %vm500_vm1, %v975_v6  ;;  %v2738_v6 = vsel %vm2276_vm5, %v2735_v56, %v2737_v61 }
  0xcc   : > { %5759 = vmatprep.mubr.msk.bf16.mxu1 %vm500_vm1, %v977_v30  ;;  %v2739_v30 = vrot.slane %v7325_v48, 2 }
  0xce   : > { %5874 = vmatmul.mubr.msk.bf16.gmra.mrb[12].mxu0 %vm500_vm1, %v8050_v35  ;;  %v7329_v35 = vld [vmem:[%s6592_s29 + $0x78] sm:$0xff]   ;;  %v2740_v37 = vsel %vm2276_vm5, %v2737_v61, %v2739_v30 }
  0xcf   : > { %5877 = vmatprep.mubr.msk.bf16.mxu0 %vm500_vm1, %v8051_v54  ;;  %v2741_v54 = vrot.slane %v7329_v35, 2 }
  0xd3   : > { %5760 = vmatmul.mubr.msk.bf16.gmra.mrb[12].mxu1 %vm500_vm1, %v979_v33  ;;  %v2742_v33 = vsel %vm2276_vm5, %v2739_v30, %v2741_v54 }
  0xd4   : > { %5763 = vmatprep.mubr.msk.bf16.mxu1 %vm500_vm1, %v981_v9  ;;  %v2743_v9 = vrot.slane %v7337_v8, 2 }
  0xd6   : > { %5878 = vmatmul.mubr.msk.bf16.gmra.mrb[16].mxu0 %vm500_vm1, %v8052_v23  ;;  %v7341_v23 = vld [vmem:[%s6592_s29 + $0x88] sm:$0xff]   ;;  %v2744_v41 = vsel %vm2276_vm5, %v2741_v54, %v2743_v9  ;;  %v3569_v54 = vsel %vm555_vm0, %v7278_v49, 0 }
  0xd7   : > { %5881 = vmatprep.mubr.msk.bf16.mxu0 %vm500_vm1, %v6988_v13  ;;  %v988_v13 = vrot.slane %v6813_v3, 1  ;;  %v992_v3 = vrot.slane %v6848_v34, 1  ;;  %v994_v34 = vrot.slane %v6854_v60, 1  ;;  %v2745_v47 = vrot.slane %v7341_v23, 2 }
  0xd9   : > { %v993_v50 = vsel %vm962_vm2, %v990_v59, %v992_v3  ;;  %v997_v57 = vsel %vm962_vm2, %v994_v34, %v996_v0 }
  0xdb   : > { %5764 = vmatmul.mubr.msk.bf16.gmra.mrb[16].mxu1 %vm500_vm1, %v983_v55  ;;  %v7349_v55 = vld [vmem:[%s6592_s29 + $0x90] sm:$0xff]  }
  0xdc   : > { %5767 = vmatprep.mubr.msk.bf16.mxu1 %vm500_vm1, %v985_v29  ;;  %v7352_v29 = vld [vmem:[%s6592_s29 + $0x98] sm:$0xff]  }
  0xde   : > { %5882 = vmatmul.mubr.msk.bf16.gmra.mrb[20].mxu0 %vm500_vm1, %v6991_v58  ;;  %v989_v58 = vsel %vm962_vm2, %v986_v16, %v988_v13  ;;  %v2746_v16 = vsel %vm2276_vm5, %v2743_v9, %v2745_v47  ;;  %v3087_v9 = vshll.u32 %v7289_v11, 16 }
  0xdf   : > { %5885 = vmatprep.mubr.msk.bf16.mxu0 %vm500_vm1, %v6994_v22  ;;  %v2584_v22 = vld [vmem:[%s6592_s29 + $0x10] sm:$0xc] }
  0xe3   : > { %5768 = vmatmul.mubr.msk.bf16.gmra.mrb[20].mxu1 %vm500_vm1, %v987_v31  ;;  %v2749_v31 = vrot.slane %v7352_v29, 2 }
  0xe4   : > { %5771 = vmatprep.mubr.msk.bf16.mxu1 %vm500_vm1, %v989_v58 }
  0xe6   : > { %5886 = vmatmul.mubr.msk.bf16.gmra.mrb[24].mxu0 %vm500_vm1, %v7001_v46  ;;  %v7232_v46 = vcombine.low %v2584_v22, %v7226_v25 }
  0xe7   : > { %5889 = vmatprep.mubr.msk.bf16.mxu0 %vm500_vm1, %v7012_v45  ;;  %v991_v45 = vsel %vm962_vm2, %v988_v13, %v990_v59  ;;  %v2747_v13 = vrot.slane %v7349_v55, 2  ;;  %v3039_v59 = vshrl.u32 %v7235_v32, 16 }
  0xe8   : > { %v2716_v12 = vrot.slane %v7232_v46, 2  ;;  %v3031_v58 = vshrl.u32 %v7232_v46, 16  ;;  %v3034_v22 = vshll.u32 %v7232_v46, 16 }
  0xea   : > { %v2718_v19 = vsel %vm2276_vm5, %v2716_v12, %v2717_v2  ;;  %v6448_v12 = vld [vmem:[%s6592_s29 + $0xa0] ss:$0 sps:$4 sm:$0x11]  }
  0xeb   : > { %5772 = vmatmul.mubr.msk.bf16.gmra.mrb[24].mxu1 %vm500_vm1, %v991_v45  ;;  %v2748_v45 = vsel %vm2276_vm5, %v2745_v47, %v2747_v13 }
  0xec   : > { %5775 = vmatprep.mubr.msk.bf16.mxu1 %vm500_vm1, %v993_v50  ;;  %v2750_v50 = vsel %vm2276_vm5, %v2747_v13, %v2749_v31 }
  0xee   : > { %5890 = vmatmul.mubr.msk.bf16.gmra.mrb[28].mxu0 %vm500_vm1, %v7018_v39  ;;  %v7250_v39 = vld [vmem:[%s6592_s29 + $0x20] sm:$0xff]  }
  0xef   : > { %5893 = vmatprep.mubr.msk.bf16.mxu0 %vm500_vm1, %v7052_v20  ;;  %v995_v20 = vsel %vm962_vm2, %v992_v3, %v994_v34  ;;  %v2719_v60 = vrot.slane %v7250_v39, 2  ;;  %v3042_v3 = vshll.u32 %v7235_v32, 16  ;;  %v3036_v34 = vrot.slane %v3034_v22, 3 }
  0xf0   : > { %v3048_v46 = vshrl.u32 %v7250_v39, 16 }
  0xf1   : > { %v2720_v18 = vsel %vm2276_vm5, %v2717_v2, %v2719_v60  ;;  %v3033_v2 = vrot.slane %v3031_v58, 2  ;;  %v3089_v58 = vrot.slane %v3087_v9, 3 }
  0xf2   : > { %v3050_v1 = vrot.slane %v3048_v46, 2 }
  0xf3   : > { %5776 = vmatmul.mubr.msk.bf16.gmra.mrb[28].mxu1 %vm500_vm1, %v995_v20  ;;  %v2751_v20 = vrot.slane %v6448_v12, 2 }
  0xf4   : > { %5779 = vmatprep.mubr.msk.bf16.mxu1 %vm500_vm1, %v997_v57  ;;  %v3051_v57 = vshll.u32 %v7250_v39, 16 }
  0xf6   : > { %5894 = vmatmul.mubr.msk.bf16.gmra.mrb[32].mxu0 %vm500_vm1, %v7058_v14  ;;  %v2722_v14 = vsel %vm2276_vm5, %v2719_v60, %v2721_v26  ;;  %v3037_v60 = vor.u32 %v3036_v34, %v3033_v2  ;;  %v3053_v62 = vrot.slane %v3051_v57, 3  ;;  %v3111_v2 = vshrl.u32 %v7305_v43, 16 }
  0xf7   : > { %5899 = vmatprep.mubr.msk.bf16.mxu0 %vm500_vm1, %v2718_v19  ;;  %v3044_v19 = vrot.slane %v3042_v3, 3  ;;  %v3114_v34 = vshll.u32 %v7305_v43, 16 }
  0xf8   : > { %v3054_v36 = vor.u32 %v3053_v62, %v3050_v1  ;;  %v3120_v62 = vshrl.u32 %v7313_v52, 16 }
  0xfb   : > { %5780 = vmatmul.mubr.msk.bf16.gmra.mrb[32].mxu1 %vm500_vm1, %v996_v0  ;;  %v3041_v0 = vrot.slane %v3039_v59, 2 }
  0xfd   : > { %v3045_v26 = vor.u32 %v3044_v19, %v3041_v0 }
  0xfe   : > { %5900 = vmatmul.mubr.msk.bf16.vlgmr.msra.gmra.mrb[0].mxu0 %vm500_vm1, %v2720_v18  ;;  %v3057_v18 = vshrl.u32 %v7254_v21, 16 }
  0xff   : > { %5903 = vmatprep.mubr.msk.bf16.mxu0 %vm500_vm1, %v2722_v14  ;;  %5936 = vmatpush3.bf16.msra.mxu0 %v3255_v15  ;;  %v3060_v14 = vshll.u32 %v7254_v21, 16  ;;  %v2752_v15 = vsel %vm2276_vm5, %v2749_v31, %v2751_v20 }
 0x100   : > { %6358 = vmatprep.subr.msk.bf16.mxu0 %vm555_vm0, %v7278_v49 }
 0x101   : > { %v3062_v24 = vrot.slane %v3060_v14, 3 }
 0x106   : > { %5904 = vmatmul.mubr.msk.bf16.gmra.mrb[4].mxu0 %vm500_vm1, %v2724_v63  ;;  %v3046_v63 = vsel %vm3029_vm6, %v3037_v60, %v3045_v26  ;;  %v3113_v60 = vrot.slane %v3111_v2, 2 }
 0x107   : > { %5907 = vmatprep.mubr.msk.bf16.mxu0 %vm500_vm1, %v2726_v27  ;;  %v3059_v27 = vrot.slane %v3057_v18, 2 }
 0x109   : > { %v3063_v51 = vor.u32 %v3062_v24, %v3059_v27  ;;  %v3129_v24 = vshrl.u32 %v7317_v44, 16 }
 0x10e   : > { %5908 = vmatmul.mubr.msk.bf16.gmra.mrb[8].mxu0 %vm500_vm1, %v2728_v28  ;;  %v3066_v28 = vshrl.u32 %v7267_v5, 16 }
 0x10f   : > { %5911 = vmatprep.mubr.msk.bf16.mxu0 %vm500_vm1, %v2730_v10  ;;  %v3069_v10 = vshll.u32 %v7267_v5, 16 }
 0x110   : > { %v3068_v56 = vrot.slane %v3066_v28, 2 }
 0x111   : > { %v3071_v61 = vrot.slane %v3069_v10, 3  ;;  %v3122_v10 = vrot.slane %v3120_v62, 2 }
 0x116   : > { %5912 = vmatmul.mubr.msk.bf16.gmra.mrb[12].mxu0 %vm500_vm1, %v2732_v7  ;;  %v3078_v7 = vshll.u32 %v7271_v40, 16 }
 0x117   : > { %5915 = vmatprep.mubr.msk.bf16.mxu0 %vm500_vm1, %v2734_v42  ;;  %v3055_v42 = vsel %vm3029_vm6, %v3045_v26, %v3054_v36  ;;  %v3116_v26 = vrot.slane %v3114_v34, 3 }
 0x118   : > { %v3080_v30 = vrot.slane %v3078_v7, 3  ;;  %v3131_v7 = vrot.slane %v3129_v24, 2 }
 0x119   : > { %v3117_v27 = vor.u32 %v3116_v26, %v3113_v60  ;;  %v3183_v60 = vshrl.u32 %v7352_v29, 16  ;;  %v3186_v26 = vshll.u32 %v7352_v29, 16 }
 0x11e   : > { %5916 = vmatmul.mubr.msk.bf16.gmra.mrb[16].mxu0 %vm500_vm1, %v2736_v38  ;;  %v3064_v38 = vsel %vm3029_vm6, %v3054_v36, %v3063_v51  ;;  %v3132_v36 = vshll.u32 %v7317_v44, 16 }
 0x11f   : > { %5919 = vmatprep.mubr.msk.bf16.mxu0 %vm500_vm1, %v2738_v6  ;;  %v3077_v6 = vrot.slane %v3075_v17, 2 }
 0x121   : > { %v3081_v47 = vor.u32 %v3080_v30, %v3077_v6  ;;  %v3147_v30 = vshrl.u32 %v7329_v35, 16 }
 0x126   : > { %5920 = vmatmul.mubr.msk.bf16.gmra.mrb[20].mxu0 %vm500_vm1, %v2740_v37  ;;  %v3072_v37 = vor.u32 %v3071_v61, %v3068_v56  ;;  %v3138_v61 = vshrl.u32 %v7325_v48, 16 }
 0x127   : > { %5923 = vmatprep.mubr.msk.bf16.mxu0 %vm500_vm1, %v2742_v33  ;;  %v3084_v33 = vshrl.u32 %v7289_v11, 16 }
 0x128   : > { %v3073_v13 = vsel %vm3029_vm6, %v3063_v51, %v3072_v37  ;;  %v3082_v49 = vsel %vm3029_vm6, %v3072_v37, %v3081_v47 }
 0x129   : > { %v3086_v31 = vrot.slane %v3084_v33, 2  ;;  %v3140_v33 = vrot.slane %v3138_v61, 2 }
 0x12b   : > { %v3090_v3 = vor.u32 %v3089_v58, %v3086_v31  ;;  %v3156_v31 = vshrl.u32 %v7337_v8, 16  ;;  %v3159_v58 = vshll.u32 %v7337_v8, 16 }
 0x12d   : > { %v3091_v0 = vsel %vm3029_vm6, %v3081_v47, %v3090_v3 }
 0x12e   : > { %5924 = vmatmul.mubr.msk.bf16.gmra.mrb[24].mxu0 %vm500_vm1, %v2744_v41  ;;  %v3093_v41 = vshrl.u32 %v7293_v4, 16 }
 0x12f   : > { %5927 = vmatprep.mubr.msk.bf16.mxu0 %vm500_vm1, %v2746_v16  ;;  %v3096_v16 = vshll.u32 %v7293_v4, 16 }
 0x130   : > { %v3095_v22 = vrot.slane %v3093_v41, 2  ;;  %v3149_v41 = vrot.slane %v3147_v30, 2 }
 0x131   : > { %v3098_v59 = vrot.slane %v3096_v16, 3 }
 0x133   : > { %v3099_v12 = vor.u32 %v3098_v59, %v3095_v22  ;;  %v3165_v22 = vshrl.u32 %v7341_v23, 16  ;;  %v3168_v59 = vshll.u32 %v7341_v23, 16 }
 0x135   : > { %v3100_v57 = vsel %vm3029_vm6, %v3090_v3, %v3099_v12  ;;  %v3167_v2 = vrot.slane %v3165_v22, 2  ;;  %v3170_v34 = vrot.slane %v3168_v59, 3 }
 0x136   : > { %5928 = vmatmul.mubr.msk.bf16.gmra.mrb[28].mxu0 %vm500_vm1, %v2748_v45  ;;  %v3102_v45 = vshrl.u32 %v7301_v53, 16 }
 0x137   : > { %5931 = vmatprep.mubr.msk.bf16.mxu0 %vm500_vm1, %v2750_v50  ;;  %v3105_v50 = vshll.u32 %v7301_v53, 16 }
 0x138   : > { %v3104_v19 = vrot.slane %v3102_v45, 2  ;;  %v3158_v45 = vrot.slane %v3156_v31, 2  ;;  %v3486_v31 = vrot.slane %v7271_v40, 3 }
 0x139   : > { %v3107_v20 = vrot.slane %v3105_v50, 3  ;;  %v3161_v50 = vrot.slane %v3159_v58, 3 }
 0x13b   : > { %v3108_v1 = vor.u32 %v3107_v20, %v3104_v19  ;;  %v3174_v19 = vshrl.u32 %v7349_v55, 16  ;;  %v3177_v20 = vshll.u32 %v7349_v55, 16 }
 0x13d   : > { %v3109_v28 = vsel %vm3029_vm6, %v3099_v12, %v3108_v1  ;;  %v3118_v17 = vsel %vm3029_vm6, %v3108_v1, %v3117_v27  ;;  %v3176_v62 = vrot.slane %v3174_v19, 2 }
 0x13e   : > { %5932 = vmatmul.mubr.msk.bf16.gmra.mrb[32].mxu0 %vm500_vm1, %v2752_v15 }
 0x13f   : > { %5937 = vmatprep.mubr.msk.bf16.mxu0 %vm500_vm1, %v3046_v63  ;;  %v3123_v63 = vshll.u32 %v7313_v52, 16 }
 0x141   : > { %v3125_v51 = vrot.slane %v3123_v63, 3  ;;  %v3179_v63 = vrot.slane %v3177_v20, 3 }
 0x143   : > { %v3126_v56 = vor.u32 %v3125_v51, %v3122_v10  ;;  %v3180_v10 = vor.u32 %v3179_v63, %v3176_v62 }
 0x145   : > { %v3127_v37 = vsel %vm3029_vm6, %v3117_v27, %v3126_v56  ;;  %v7440_v27 = vld [vmem:[%s6592_s29 + $0xa0] ss:$0 sps:$4 sm:$0x33]  }
 0x146   : > { %5938 = vmatmul.mubr.msk.bf16.vlgmr.msra.gmra.mrb[0].mxu0 %vm500_vm1, %v3055_v42  ;;  %v3134_v42 = vrot.slane %v3132_v36, 3  ;;  %v3185_v36 = vrot.slane %v3183_v60, 2  ;;  %v3192_v51 = vshrl.u32 %v7440_v27, 16 }
 0x147   : > { %5941 = vmatprep.mubr.msk.bf16.mxu0 %vm500_vm1, %v3064_v38  ;;  %5974 = vmatpush3.bf16.msra.mxu0 %v3569_v54  ;;  %v3141_v38 = vshll.u32 %v7325_v48, 16  ;;  %v3150_v54 = vshll.u32 %v7329_v35, 16 }
 0x148   : > { %v3135_v6 = vor.u32 %v3134_v42, %v3131_v7  ;;  %v3470_v42 = vld [vmem:[%s6592_s29 + $0x10] sm:$0x8]  ;;  %v3194_v61 = vrot.slane %v3192_v51, 2 }
 0x149   : > { %v3143_v9 = vrot.slane %v3141_v38, 3  ;;  %v3152_v16 = vrot.slane %v3150_v54, 3  ;;  %v5162_v30 = vcombine.low %v3470_v42, %v7226_v25  ;;  %v3482_v25 = vrot.slane %v7254_v21, 3 }
 0x14a   : > { %v3136_v47 = vsel %vm3029_vm6, %v3126_v56, %v3135_v6  ;;  %v3490_v21 = vrot.slane %v7293_v4, 3  ;;  %v3494_v4 = vrot.slane %v7305_v43, 3  ;;  %v3498_v43 = vrot.slane %v7317_v44, 3 }
 0x14b   : > { %v3502_v44 = vrot.slane %v7329_v35, 3  ;;  %v3506_v35 = vrot.slane %v7341_v23, 3  ;;  %v3510_v23 = vrot.slane %v7352_v29, 3 }
 0x14e   : > { %5942 = vmatmul.mubr.msk.bf16.gmra.mrb[4].mxu0 %vm500_vm1, %v3073_v13  ;;  %v7399_v46 = vpop.f32.mrb[0].mxu1  ;;  %v3144_v13 = vor.u32 %v3143_v9, %v3140_v33  ;;  %v3478_v33 = vrot.slane %v7235_v32, 3  ;;  %v3484_v32 = vrot.slane %v7267_v5, 3 }
 0x14f   : > { %5945 = vmatprep.mubr.msk.bf16.mxu0 %vm500_vm1, %v3082_v49  ;;  %v7402_v18 = vpop.f32.mrb[1].mxu1  ;;  %v3153_v49 = vor.u32 %v3152_v16, %v3149_v41  ;;  %v3480_v41 = vrot.slane %v7250_v39, 3  ;;  %v3488_v39 = vrot.slane %v7289_v11, 3  ;;  %v3492_v11 = vrot.slane %v7301_v53, 3 }
 0x150   : > { %v7404_v14 = vpop.f32.mrb[2].mxu1  ;;  %v3145_v3 = vsel %vm3029_vm6, %v3135_v6, %v3144_v13  ;;  %v3485_v58 = vsel %vm3476_vm7, %v3482_v25, %v3484_v32  ;;  %v3496_v53 = vrot.slane %v7313_v52, 3  ;;  %v3500_v52 = vrot.slane %v7325_v48, 3 }
 0x151   : > { %v7407_v15 = vpop.f32.mrb[3].mxu1  ;;  %v3154_v12 = vsel %vm3029_vm6, %v3144_v13, %v3153_v49  ;;  %v3481_v16 = vsel %vm3476_vm7, %v3478_v33, %v3480_v41  ;;  %v3483_v13 = vsel %vm3476_vm7, %v3480_v41, %v3482_v25  ;;  %v3489_v22 = vsel %vm3476_vm7, %v3486_v31, %v3488_v39 }
 0x152   : > { %v3491_v5 = vsel %vm3476_vm7, %v3488_v39, %v3490_v21  ;;  %v3497_v20 = vsel %vm3476_vm7, %v3494_v4, %v3496_v53  ;;  %v3499_v60 = vsel %vm3476_vm7, %v3496_v53, %v3498_v43  ;;  %v3501_v63 = vsel %vm3476_vm7, %v3498_v43, %v3500_v52  ;;  %v7579_v39 = vld [vmem:[%s8026_s2] ss:$0 sm:$0xff] }
 0x153   : > { %v3504_v48 = vrot.slane %v7337_v8, 3  ;;  %v3508_v8 = vrot.slane %v7349_v55, 3  ;;  %v3512_v55 = vrot.slane %v7440_v27, 3 }
 0x155   : > { %v3507_v42 = vsel %vm3476_vm7, %v3504_v48, %v3506_v35  ;;  %v3513_v29 = vsel %vm3476_vm7, %v3510_v23, %v3512_v55 }
 0x156   : > { %5946 = vmatmul.mubr.msk.bf16.gmra.mrb[8].mxu0 %vm500_vm1, %v3091_v0  ;;  %v3162_v0 = vor.u32 %v3161_v50, %v3158_v45  ;;  %v3493_v50 = vsel %vm3476_vm7, %v3490_v21, %v3492_v11 }
 0x157   : > { %5949 = vmatprep.mubr.msk.bf16.mxu0 %vm500_vm1, %v3100_v57  ;;  %v3171_v57 = vor.u32 %v3170_v34, %v3167_v2  ;;  %v3495_v2 = vsel %vm3476_vm7, %v3492_v11, %v3494_v4 }
 0x158   : > { %v3163_v1 = vsel %vm3029_vm6, %v3153_v49, %v3162_v0  ;;  %v3487_v49 = vsel %vm3476_vm7, %v3484_v32, %v3486_v31 }
 0x159   : > { %v3172_v24 = vsel %vm3029_vm6, %v3162_v0, %v3171_v57  ;;  %v3181_v56 = vsel %vm3029_vm6, %v3171_v57, %v3180_v10 }
 0x15e   : > { %5950 = vmatmul.mubr.msk.bf16.gmra.mrb[12].mxu0 %vm500_vm1, %v3109_v28  ;;  %v3188_v28 = vrot.slane %v3186_v26, 3 }
 0x15f   : > { %5953 = vmatprep.mubr.msk.bf16.mxu0 %vm500_vm1, %v3118_v17  ;;  %v3195_v17 = vshll.u32 %v7440_v27, 16  ;;  %v6453_v27 = vld [vmem:[%s8028_s4 + $0x4] ss:$12 sps:$4 sm:$0xff]  }
 0x160   : > { %v3189_v7 = vor.u32 %v3188_v28, %v3185_v36  ;;  %v3503_v36 = vsel %vm3476_vm7, %v3500_v52, %v3502_v44  ;;  %4049 = vmatprep.mubr.bf16.mxu1 %v6453_v27 }
 0x161   : > { %v3197_v38 = vrot.slane %v3195_v17, 3  ;;  %v3505_v17 = vsel %vm3476_vm7, %v3502_v44, %v3504_v48 }
 0x162   : > { %v3190_v6 = vsel %vm3029_vm6, %v3180_v10, %v3189_v7 }
 0x163   : > { %v3198_v54 = vor.u32 %v3197_v38, %v3194_v61 }
 0x165   : > { %v3199_v9 = vsel %vm3029_vm6, %v3189_v7, %v3198_v54  ;;  %v3511_v54 = vsel %vm3476_vm7, %v3508_v8, %v3510_v23 }
 0x166   : > { %5954 = vmatmul.mubr.msk.bf16.gmra.mrb[16].mxu0 %vm500_vm1, %v3127_v37  ;;  %v3477_v37 = vrot.slane %v5162_v30, 3 }
 0x167   : > { %5957 = vmatprep.mubr.msk.bf16.mxu0 %vm500_vm1, %v3136_v47 }
 0x168   : > { %v3479_v47 = vsel %vm3476_vm7, %v3477_v37, %v3478_v33 }
 0x16e   : > { %5958 = vmatmul.mubr.msk.bf16.gmra.mrb[20].mxu0 %vm500_vm1, %v3145_v3 }
 0x16f   : > { %5961 = vmatprep.mubr.msk.bf16.mxu0 %vm500_vm1, %v3154_v12 }
 0x176   : > { %5962 = vmatmul.mubr.msk.bf16.gmra.mrb[24].mxu0 %vm500_vm1, %v3163_v1 }
 0x177   : > { %5965 = vmatprep.mubr.msk.bf16.mxu0 %vm500_vm1, %v3172_v24 }
 0x17e   : > { %5966 = vmatmul.mubr.msk.bf16.gmra.mrb[28].mxu0 %vm500_vm1, %v3181_v56 }
 0x17f   : > { %5969 = vmatprep.mubr.msk.bf16.mxu0 %vm500_vm1, %v3190_v6  ;;  %v3509_v6 = vsel %vm3476_vm7, %v3506_v35, %v3508_v8 }
 0x186   : > { %5970 = vmatmul.mubr.msk.bf16.gmra.mrb[32].mxu0 %vm500_vm1, %v3199_v9 }
 0x187   : > { %5975 = vmatprep.mubr.msk.bf16.mxu0 %vm500_vm1, %v3479_v47 }
 0x18e   : > { %5976 = vmatmul.mubr.msk.bf16.vlgmr.msra.gmra.mrb[0].mxu0 %vm500_vm1, %v3481_v16 }
 0x18f   : > { %5979 = vmatprep.mubr.msk.bf16.mxu0 %vm500_vm1, %v3483_v13 }
 0x196   : > { %5980 = vmatmul.mubr.msk.bf16.gmra.mrb[4].mxu0 %vm500_vm1, %v3485_v58  ;;  %v7473_v59 = vpop.f32.mrb[4].mxu1 }
 0x197   : > { %5983 = vmatprep.mubr.msk.bf16.mxu0 %vm500_vm1, %v3487_v49  ;;  %v7476_v3 = vpop.f32.mrb[5].mxu1 }
 0x198   : > { %v7478_v40 = vpop.f32.mrb[6].mxu1 }
 0x199   : > { %v7481_v45 = vpop.f32.mrb[7].mxu1 }
 0x19e   : > { %5984 = vmatmul.mubr.msk.bf16.gmra.mrb[8].mxu0 %vm500_vm1, %v3489_v22  ;;  %v7487_v12 = vpop.f32.mrb[8].mxu1 }
 0x19f   : > { %5987 = vmatprep.mubr.msk.bf16.mxu0 %vm500_vm1, %v3491_v5  ;;  %v7490_v34 = vpop.f32.mrb[9].mxu1  ;;  %v7585_v5 = vld [vmem:[%s8027_s3] ss:$0 sm:$0xff] }
 0x1a0   : > { %v7492_v0 = vpop.f32.mrb[10].mxu1 }
 0x1a1   : > { %v7495_v19 = vpop.f32.mrb[11].mxu1 }
 0x1a6   : > { %5988 = vmatmul.mubr.msk.bf16.gmra.mrb[12].mxu0 %vm500_vm1, %v3493_v50  ;;  %v7501_v57 = vpop.f32.mrb[12].mxu1 }
 0x1a7   : > { %5991 = vmatprep.mubr.msk.bf16.mxu0 %vm500_vm1, %v3495_v2  ;;  %v7504_v26 = vpop.f32.mrb[13].mxu1 }
 0x1a8   : > { %v7506_v1 = vpop.f32.mrb[14].mxu1 }
 0x1a9   : > { %v7509_v62 = vpop.f32.mrb[15].mxu1 }
 0x1ae   : > { %5992 = vmatmul.mubr.msk.bf16.gmra.mrb[16].mxu0 %vm500_vm1, %v3497_v20  ;;  %v7515_v24 = vpop.f32.mrb[16].mxu1 }
 0x1af   : > { %5995 = vmatprep.mubr.msk.bf16.mxu0 %vm500_vm1, %v3499_v60  ;;  %v7518_v28 = vpop.f32.mrb[17].mxu1 }
 0x1b0   : > { %v7520_v10 = vpop.f32.mrb[18].mxu1 }
 0x1b1   : > { %v7523_v51 = vpop.f32.mrb[19].mxu1 }
 0x1b6   : > { %5996 = vmatmul.mubr.msk.bf16.gmra.mrb[20].mxu0 %vm500_vm1, %v3501_v63  ;;  %v7529_v7 = vpop.f32.mrb[20].mxu1 }
 0x1b7   : > { %5999 = vmatprep.mubr.msk.bf16.mxu0 %vm500_vm1, %v3503_v36  ;;  %v7532_v56 = vpop.f32.mrb[21].mxu1 }
 0x1b8   : > { %v7534_v61 = vpop.f32.mrb[22].mxu1 }
 0x1b9   : > { %v7537_v38 = vpop.f32.mrb[23].mxu1 }
 0x1be   : > { %6000 = vmatmul.mubr.msk.bf16.gmra.mrb[24].mxu0 %vm500_vm1, %v3505_v17  ;;  %v7543_v30 = vpop.f32.mrb[24].mxu1 }
 0x1bf   : > { %6003 = vmatprep.mubr.msk.bf16.mxu0 %vm500_vm1, %v3507_v42  ;;  %v7546_v37 = vpop.f32.mrb[25].mxu1 }
 0x1c0   : > { %v7548_v33 = vpop.f32.mrb[26].mxu1 }
 0x1c1   : > { %v7551_v9 = vpop.f32.mrb[27].mxu1 }
 0x1c6   : > { %6004 = vmatmul.mubr.msk.bf16.gmra.mrb[28].mxu0 %vm500_vm1, %v3509_v6  ;;  %v7556_v47 = vpop.f32.mrb[28].mxu1 }
 0x1c7   : > { %6007 = vmatprep.mubr.msk.bf16.mxu0 %vm500_vm1, %v3511_v54  ;;  %v7558_v41 = vpop.f32.mrb[29].mxu1 }
 0x1c8   : > { %v7560_v25 = vpop.f32.mrb[30].mxu1 }
 0x1c9   : > { %v7563_v16 = vpop.f32.mrb[31].mxu1 }
 0x1ce   : > { %6008 = vmatmul.mubr.msk.bf16.gmra.mrb[32].mxu0 %vm500_vm1, %v3513_v29  ;;  %v7565_v13 = vpop.f32.mrb[32].mxu1 }
 0x1cf   : > { %v7567_v32 = vpop.f32.mrb[33].mxu1 }
 0x1d0   : > { %v7569_v31 = vpop.f32.mrb[34].mxu1 }
 0x1d1   : > { %v7571_v58 = vpop.f32.mrb[35].mxu1 }
 0x261   : > { %v5977_v49 = vpop.f32.mrb[0].mxu0 }
 0x262   : > { %v6061_v21 = vadd.f32 %v5977_v49, %v7399_v46  ;;  %v3605_v22 = vpop.f32.mrb[1].mxu0 }
 0x263   : > { %v6062_v11 = vadd.f32 %v3605_v22, %v7402_v18  ;;  %v5978_v4 = vpop.f32.mrb[2].mxu0 }
 0x264   : > { %v3793_v50 = vmul.f32 %v6061_v21, %v7579_v39  ;;  %v6063_v2 = vadd.f32 %v5978_v4, %v7404_v14  ;;  %v3608_v53 = vpop.f32.mrb[3].mxu0 }
 0x265   : > { %v3791_v43 = vmul.f32 %v6062_v11, %v7579_v39  ;;  %v6064_v20 = vadd.f32 %v3608_v53, %v7407_v15 }
 0x266   : > { %v3836_v46 = vadd.f32 %v7585_v5, %v3793_v50  ;;  %v3794_v60 = vmul.f32 %v6063_v2, %v7579_v39 }
 0x267   : > { %v3834_v52 = vadd.f32 %v7585_v5, %v3791_v43  ;;  %v3792_v44 = vmul.f32 %v6064_v20, %v7579_v39 }
 0x268   : > { %v3837_v18 = vadd.f32 %v7585_v5, %v3794_v60  ;;  %v3872_v48 = vmax.f32 %v3836_v46, 0.0 }
 0x269   : > { %v3835_v63 = vadd.f32 %v7585_v5, %v3792_v44  ;;  %v5981_v36 = vpop.f32.mrb[4].mxu0  ;;  %v3870_v42 = vmax.f32 %v3834_v52, 0.0 }
 0x26a   : > { %v3873_v14 = vmax.f32 %v3837_v18, 0.0  ;;  %v6065_v35 = vadd.f32 %v5981_v36, %v7473_v59  ;;  %v3621_v17 = vpop.f32.mrb[5].mxu0 }
 0x26b   : > { %v3871_v15 = vmax.f32 %v3835_v63, 0.0  ;;  %v6066_v8 = vadd.f32 %v3621_v17, %v7476_v3  ;;  %v5982_v23 = vpop.f32.mrb[6].mxu0 }
 0x26c   : > { %v7600_v6 = vpack.c.bf16 %v3873_v14, %v3872_v48  ;;  %v3797_v54 = vmul.f32 %v6065_v35, %v7579_v39  ;;  %v6067_v55 = vadd.f32 %v5982_v23, %v7478_v40  ;;  %v3624_v29 = vpop.f32.mrb[7].mxu0 }
 0x26d   : > { %v7604_v27 = vpack.c.bf16 %v3871_v15, %v3870_v42  ;;  %v3795_v49 = vmul.f32 %v6066_v8, %v7579_v39  ;;  %v6068_v21 = vadd.f32 %v3624_v29, %v7481_v45 }
 0x26e   : > { %v3840_v59 = vadd.f32 %v7585_v5, %v3797_v54  ;;  %v3798_v22 = vmul.f32 %v6067_v55, %v7579_v39 }
 0x26f   : > { %v3838_v3 = vadd.f32 %v7585_v5, %v3795_v49  ;;  %v3796_v11 = vmul.f32 %v6068_v21, %v7579_v39 }
 0x270   : > { %v3841_v4 = vadd.f32 %v7585_v5, %v3798_v22  ;;  %v3876_v2 = vmax.f32 %v3840_v59, 0.0 }
 0x271   : > { %v3839_v50 = vadd.f32 %v7585_v5, %v3796_v11  ;;  %v5985_v40 = vpop.f32.mrb[8].mxu0  ;;  %v3874_v46 = vmax.f32 %v3838_v3, 0.0 }
 0x272   : > { %v3877_v53 = vmax.f32 %v3841_v4, 0.0  ;;  %v6069_v43 = vadd.f32 %v5985_v40, %v7487_v12  ;;  %v3637_v20 = vpop.f32.mrb[9].mxu0 }
 0x273   : > { %v3875_v45 = vmax.f32 %v3839_v50, 0.0  ;;  %v6070_v60 = vadd.f32 %v3637_v20, %v7490_v34  ;;  %v5986_v52 = vpop.f32.mrb[10].mxu0 }
 0x274   : > { %v7616_v44 = vpack.c.bf16 %v3877_v53, %v3876_v2  ;;  %v3801_v18 = vmul.f32 %v6069_v43, %v7579_v39  ;;  %v6071_v63 = vadd.f32 %v5986_v52, %v7492_v0  ;;  %v3640_v36 = vpop.f32.mrb[11].mxu0 }
 0x275   : > { %v7620_v48 = vpack.c.bf16 %v3875_v45, %v3874_v46  ;;  %v3799_v14 = vmul.f32 %v6070_v60, %v7579_v39  ;;  %v6072_v35 = vadd.f32 %v3640_v36, %v7495_v19 }
 0x276   : > { %v3844_v12 = vadd.f32 %v7585_v5, %v3801_v18  ;;  %v3802_v17 = vmul.f32 %v6071_v63, %v7579_v39 }
 0x277   : > { %v3842_v34 = vadd.f32 %v7585_v5, %v3799_v14  ;;  %v3800_v42 = vmul.f32 %v6072_v35, %v7579_v39 }
 0x278   : > { %v3845_v15 = vadd.f32 %v7585_v5, %v3802_v17  ;;  %v3880_v23 = vmax.f32 %v3844_v12, 0.0 }
 0x279   : > { %v3843_v8 = vadd.f32 %v7585_v5, %v3800_v42  ;;  %v5989_v0 = vpop.f32.mrb[12].mxu0  ;;  %v3878_v49 = vmax.f32 %v3842_v34, 0.0 }
 0x27a   : > { %v3881_v54 = vmax.f32 %v3845_v15, 0.0  ;;  %v6073_v55 = vadd.f32 %v5989_v0, %v7501_v57  ;;  %v3653_v29 = vpop.f32.mrb[13].mxu0 }
 0x27b   : > { %v3879_v19 = vmax.f32 %v3843_v8, 0.0  ;;  %v6074_v21 = vadd.f32 %v3653_v29, %v7504_v26  ;;  %v5990_v59 = vpop.f32.mrb[14].mxu0 }
 0x27c   : > { %v7632_v22 = vpack.c.bf16 %v3881_v54, %v3880_v23  ;;  %v3805_v3 = vmul.f32 %v6073_v55, %v7579_v39  ;;  %v6075_v11 = vadd.f32 %v5990_v59, %v7506_v1  ;;  %v3656_v4 = vpop.f32.mrb[15].mxu0 }
 0x27d   : > { %v7636_v50 = vpack.c.bf16 %v3879_v19, %v3878_v49  ;;  %v3803_v40 = vmul.f32 %v6074_v21, %v7579_v39  ;;  %v6076_v2 = vadd.f32 %v3656_v4, %v7509_v62 }
 0x27e   : > { %v3848_v57 = vadd.f32 %v7585_v5, %v3805_v3  ;;  %v3806_v53 = vmul.f32 %v6075_v11, %v7579_v39 }
 0x27f   : > { %v3846_v26 = vadd.f32 %v7585_v5, %v3803_v40  ;;  %v3804_v43 = vmul.f32 %v6076_v2, %v7579_v39 }
 0x280   : > { %v3849_v20 = vadd.f32 %v7585_v5, %v3806_v53  ;;  %v3884_v45 = vmax.f32 %v3848_v57, 0.0 }
 0x281   : > { %v3847_v46 = vadd.f32 %v7585_v5, %v3804_v43  ;;  %v5993_v1 = vpop.f32.mrb[16].mxu0  ;;  %v3882_v63 = vmax.f32 %v3846_v26, 0.0 }
 0x282   : > { %v3885_v60 = vmax.f32 %v3849_v20, 0.0  ;;  %v6077_v52 = vadd.f32 %v5993_v1, %v7515_v24  ;;  %v3669_v18 = vpop.f32.mrb[17].mxu0 }
 0x283   : > { %v3883_v62 = vmax.f32 %v3847_v46, 0.0  ;;  %v6078_v36 = vadd.f32 %v3669_v18, %v7518_v28  ;;  %v5994_v14 = vpop.f32.mrb[18].mxu0 }
 0x284   : > { %v7648_v35 = vpack.c.bf16 %v3885_v60, %v3884_v45  ;;  %v3809_v12 = vmul.f32 %v6077_v52, %v7579_v39  ;;  %v6079_v17 = vadd.f32 %v5994_v14, %v7520_v10  ;;  %v3672_v34 = vpop.f32.mrb[19].mxu0 }
 0x285   : > { %v7652_v42 = vpack.c.bf16 %v3883_v62, %v3882_v63  ;;  %v3807_v15 = vmul.f32 %v6078_v36, %v7579_v39  ;;  %v6080_v8 = vadd.f32 %v3672_v34, %v7523_v51 }
 0x286   : > { %v3852_v24 = vadd.f32 %v7585_v5, %v3809_v12  ;;  %v3810_v0 = vmul.f32 %v6079_v17, %v7579_v39 }
 0x287   : > { %v3850_v28 = vadd.f32 %v7585_v5, %v3807_v15  ;;  %v3808_v23 = vmul.f32 %v6080_v8, %v7579_v39 }
 0x288   : > { %v3853_v54 = vadd.f32 %v7585_v5, %v3810_v0  ;;  %v3888_v29 = vmax.f32 %v3852_v24, 0.0 }
 0x289   : > { %v3851_v55 = vadd.f32 %v7585_v5, %v3808_v23  ;;  %v5997_v10 = vpop.f32.mrb[20].mxu0  ;;  %v3886_v59 = vmax.f32 %v3850_v28, 0.0 }
 0x28a   : > { %v3889_v49 = vmax.f32 %v3853_v54, 0.0  ;;  %v6081_v19 = vadd.f32 %v5997_v10, %v7529_v7  ;;  %v3685_v21 = vpop.f32.mrb[21].mxu0 }
 0x28b   : > { %v3887_v51 = vmax.f32 %v3851_v55, 0.0  ;;  %v6082_v3 = vadd.f32 %v3685_v21, %v7532_v56  ;;  %v5998_v11 = vpop.f32.mrb[22].mxu0 }
 0x28c   : > { %v7664_v4 = vpack.c.bf16 %v3889_v49, %v3888_v29  ;;  %v3813_v40 = vmul.f32 %v6081_v19, %v7579_v39  ;;  %v6083_v2 = vadd.f32 %v5998_v11, %v7534_v61  ;;  %v3688_v57 = vpop.f32.mrb[23].mxu0 }
 0x28d   : > { %v7668_v53 = vpack.c.bf16 %v3887_v51, %v3886_v59  ;;  %v3811_v26 = vmul.f32 %v6082_v3, %v7579_v39  ;;  %v6084_v43 = vadd.f32 %v3688_v57, %v7537_v38 }
 0x28e   : > { %v3856_v7 = vadd.f32 %v7585_v5, %v3813_v40  ;;  %v3814_v20 = vmul.f32 %v6083_v2, %v7579_v39 }
 0x28f   : > { %v3854_v56 = vadd.f32 %v7585_v5, %v3811_v26  ;;  %v3812_v46 = vmul.f32 %v6084_v43, %v7579_v39  ;;  %5485 = vmatprep.subr.bf16.mxu1 %v7668_v53 }
 0x290   : > { %v3857_v1 = vadd.f32 %v7585_v5, %v3814_v20  ;;  %5486 = vmatpush3.bf16.msra.mxu1 %v7604_v27  ;;  %v3892_v38 = vmax.f32 %v3856_v7, 0.0 }
 0x291   : > { %v3855_v61 = vadd.f32 %v7585_v5, %v3812_v46  ;;  %v6001_v45 = vpop.f32.mrb[24].mxu0  ;;  %5487 = vmatprep.subr.bf16.mxu1 %v7664_v4  ;;  %v3890_v63 = vmax.f32 %v3854_v56, 0.0 }
 0x292   : > { %v3893_v60 = vmax.f32 %v3857_v1, 0.0  ;;  %v6085_v52 = vadd.f32 %v6001_v45, %v7543_v30  ;;  %v3701_v18 = vpop.f32.mrb[25].mxu0 }
 0x293   : > { %v3891_v62 = vmax.f32 %v3855_v61, 0.0  ;;  %v6086_v36 = vadd.f32 %v3701_v18, %v7546_v37  ;;  %v6002_v14 = vpop.f32.mrb[26].mxu0 }
 0x294   : > { %v7683_v12 = vpack.c.bf16 %v3893_v60, %v3892_v38  ;;  %v3817_v17 = vmul.f32 %v6085_v52, %v7579_v39  ;;  %v6087_v34 = vadd.f32 %v6002_v14, %v7548_v33  ;;  %v3704_v15 = vpop.f32.mrb[27].mxu0  ;;  %5488 = vmatpush3.bf16.msra.mxu1 %v7600_v6 }
 0x295   : > { %v7688_v8 = vpack.c.bf16 %v3891_v62, %v3890_v63  ;;  %v3815_v24 = vmul.f32 %v6086_v36, %v7579_v39  ;;  %v6088_v30 = vadd.f32 %v3704_v15, %v7551_v9 }
 0x296   : > { %v3860_v0 = vadd.f32 %v7585_v5, %v3817_v17  ;;  %v3818_v37 = vmul.f32 %v6087_v34, %v7579_v39 }
 0x297   : > { %v3858_v28 = vadd.f32 %v7585_v5, %v3815_v24  ;;  %v3816_v23 = vmul.f32 %v6088_v30, %v7579_v39  ;;  %5489 = vmatprep.subr.bf16.mxu1 %v7688_v8 }
 0x298   : > { %v3861_v33 = vadd.f32 %v7585_v5, %v3818_v37  ;;  %5490 = vmatpush3.bf16.msra.mxu1 %v7620_v48  ;;  %v3896_v9 = vmax.f32 %v3860_v0, 0.0 }
 0x299   : > { %v3859_v54 = vadd.f32 %v7585_v5, %v3816_v23  ;;  %v6005_v55 = vpop.f32.mrb[28].mxu0  ;;  %5491 = vmatprep.subr.bf16.mxu1 %v7683_v12  ;;  %v3894_v19 = vmax.f32 %v3858_v28, 0.0 }
 0x29a   : > { %v3897_v10 = vmax.f32 %v3861_v33, 0.0  ;;  %v6089_v29 = vadd.f32 %v6005_v55, %v7556_v47  ;;  %v3717_v49 = vpop.f32.mrb[29].mxu0  ;;  %v6451_v33 = vld [vmem:[%s8028_s4] ss:$12 sps:$4 sm:$0xff]  }
 0x29b   : > { %v3895_v21 = vmax.f32 %v3859_v54, 0.0  ;;  %v6090_v59 = vadd.f32 %v3717_v49, %v7558_v41  ;;  %v6006_v51 = vpop.f32.mrb[30].mxu0  ;;  %v6460_v49 = vld [vmem:[%s8028_s4 + $0x4c] ss:$12 sps:$4 sm:$0xff]  }
 0x29c   : > { %v7703_v3 = vpack.c.bf16 %v3897_v10, %v3896_v9  ;;  %v3821_v11 = vmul.f32 %v6089_v29, %v7579_v39  ;;  %v6091_v40 = vadd.f32 %v6006_v51, %v7560_v25  ;;  %v3720_v2 = vpop.f32.mrb[31].mxu0  ;;  %5492 = vmatpush3.bf16.msra.mxu1 %v7616_v44  ;;  %v6456_v9 = vld [vmem:[%s8028_s4 + $0x18] ss:$12 sps:$4 sm:$0xff]   ;;  %v6457_v10 = vld [vmem:[%s8028_s4 + $0x34] ss:$12 sps:$4 sm:$0xff]  }
 0x29d   : > { %v7708_v57 = vpack.c.bf16 %v3895_v21, %v3894_v19  ;;  %v3819_v26 = vmul.f32 %v6090_v59, %v7579_v39  ;;  %v6092_v47 = vadd.f32 %v3720_v2, %v7563_v16  ;;  %v6459_v29 = vld [vmem:[%s8028_s4 + $0x30] ss:$12 sps:$4 sm:$0xff]   ;;  %v6462_v19 = vld [vmem:[%s8028_s4 + $0x48] ss:$12 sps:$4 sm:$0xff]   ;;  %v6464_v59 = vld [vmem:[%s8028_s4 + $0x20] ss:$12 sps:$4 sm:$0xff]  }
 0x29e   : > { %v3864_v43 = vadd.f32 %v7585_v5, %v3821_v11  ;;  %v3822_v41 = vmul.f32 %v6091_v40, %v7579_v39  ;;  %v6463_v21 = vld [vmem:[%s8028_s4 + $0x8] ss:$12 sps:$4 sm:$0xff]   ;;  %v6465_v51 = vld [vmem:[%s8028_s4 + $0x38] ss:$12 sps:$4 sm:$0xff]   ;;  %v6466_v11 = vld [vmem:[%s8028_s4 + $0x50] ss:$12 sps:$4 sm:$0xff]  }
 0x29f   : > { %v3862_v7 = vadd.f32 %v7585_v5, %v3819_v26  ;;  %v3820_v20 = vmul.f32 %v6092_v47, %v7579_v39  ;;  %5493 = vmatprep.subr.bf16.mxu1 %v7708_v57  ;;  %v6469_v40 = vld [vmem:[%s8028_s4 + $0x64] ss:$12 sps:$4 sm:$0xff]   ;;  %v6467_v2 = vld [vmem:[%s8028_s4 + $0x60] ss:$12 sps:$4 sm:$0xff]   ;;  %v6470_v26 = vld [vmem:[%s8028_s4 + $0x7c] ss:$12 sps:$4 sm:$0xff]  }
 0x2a0   : > { %v3865_v25 = vadd.f32 %v7585_v5, %v3822_v41  ;;  %5494 = vmatpush3.bf16.msra.mxu1 %v7636_v50  ;;  %v3900_v16 = vmax.f32 %v3864_v43, 0.0  ;;  %v6472_v47 = vld [vmem:[%s8028_s4 + $0x78] ss:$12 sps:$4 sm:$0xff]   ;;  %v6473_v43 = vld [vmem:[%s8028_s4 + $0x94] ss:$12 sps:$4 sm:$0xff]  }
 0x2a1   : > { %v3863_v56 = vadd.f32 %v7585_v5, %v3820_v20  ;;  %v6009_v46 = vpop.f32.mrb[32].mxu0  ;;  %5495 = vmatprep.subr.bf16.mxu1 %v7703_v3  ;;  %v3898_v38 = vmax.f32 %v3862_v7, 0.0  ;;  %v6475_v41 = vld [vmem:[%s8028_s4 + $0x90] ss:$12 sps:$4 sm:$0xff]   ;;  %v6476_v7 = vld [vmem:[%s8028_s4 + $0xac] ss:$12 sps:$4 sm:$0xff]  }
 0x2a2   : > { %v3901_v1 = vmax.f32 %v3865_v25, 0.0  ;;  %v6093_v61 = vadd.f32 %v6009_v46, %v7565_v13  ;;  %v3733_v45 = vpop.f32.mrb[33].mxu0  ;;  %v6478_v20 = vld [vmem:[%s8028_s4 + $0xa8] ss:$12 sps:$4 sm:$0xff]   ;;  %v6481_v46 = vld [vmem:[%s8028_s4 + $0x98] ss:$12 sps:$4 sm:$0xff]  }
 0x2a3   : > { %v3899_v60 = vmax.f32 %v3863_v56, 0.0  ;;  %v6094_v52 = vadd.f32 %v3733_v45, %v7567_v32  ;;  %v6010_v18 = vpop.f32.mrb[34].mxu0  ;;  %v6479_v25 = vld [vmem:[%s8028_s4 + $0x68] ss:$12 sps:$4 sm:$0xff]   ;;  %v6480_v56 = vld [vmem:[%s8028_s4 + $0x80] ss:$12 sps:$4 sm:$0xff]  }
 0x2a4   : > { %v7723_v63 = vpack.c.bf16 %v3901_v1, %v3900_v16  ;;  %v3825_v62 = vmul.f32 %v6093_v61, %v7579_v39  ;;  %v6095_v36 = vadd.f32 %v6010_v18, %v7569_v31  ;;  %v3736_v14 = vpop.f32.mrb[35].mxu0  ;;  %5496 = vmatpush3.bf16.msra.mxu1 %v7632_v22  ;;  %v6482_v16 = vld [vmem:[%s8028_s4 + $0xb0] ss:$12 sps:$4 sm:$0xff]   ;;  %v6483_v61 = vld [vmem:[%s8028_s4 + $0xc0] ss:$12 sps:$4 sm:$0xff]  }
 0x2a5   : > { %v7728_v17 = vpack.c.bf16 %v3899_v60, %v3898_v38  ;;  %v3823_v34 = vmul.f32 %v6094_v52, %v7579_v39  ;;  %v6096_v13 = vadd.f32 %v3736_v14, %v7571_v58  ;;  %v6485_v1 = vld [vmem:[%s8028_s4 + $0xc4] ss:$12 sps:$4 sm:$0xff]   ;;  %v6486_v45 = vld [vmem:[%s8028_s4 + $0xdc] ss:$12 sps:$4 sm:$0xff]   ;;  %v6489_v60 = vld [vmem:[%s8028_s4 + $0xf4] ss:$12 sps:$4 sm:$0xff]  }
 0x2a6   : > { %v3868_v15 = vadd.f32 %v7585_v5, %v3825_v62  ;;  %v3826_v32 = vmul.f32 %v6095_v36, %v7579_v39  ;;  %v6488_v38 = vld [vmem:[%s8028_s4 + $0xd8] ss:$12 sps:$4 sm:$0xff]   ;;  %v6491_v52 = vld [vmem:[%s8028_s4 + $0xf0] ss:$12 sps:$4 sm:$0xff]   ;;  %v6494_v62 = vld [vmem:[%s8028_s4 + $0x108] ss:$12 sps:$4 sm:$0xff]  }
 0x2a7   : > { %v3866_v24 = vadd.f32 %v7585_v5, %v3823_v34  ;;  %v3824_v30 = vmul.f32 %v6096_v13, %v7579_v39  ;;  %5497 = vmatprep.subr.bf16.mxu1 %v7728_v17  ;;  %v6454_v39 = vld [vmem:[%s8028_s4 + $0x1c] ss:$12 sps:$4 sm:$0xff]   ;;  %v6492_v18 = vld [vmem:[%s8028_s4 + $0x10c] ss:$12 sps:$4 sm:$0xff]   ;;  %v6501_v13 = vld [vmem:[%s8028_s4 + $0x124] ss:$12 sps:$4 sm:$0xff]  }
 0x2a8   : > { %v3869_v31 = vadd.f32 %v7585_v5, %v3826_v32  ;;  %5498 = vmatpush3.bf16.msra.mxu1 %v7652_v42  ;;  %v3904_v37 = vmax.f32 %v3868_v15, 0.0  ;;  %v6496_v36 = vld [vmem:[%s8028_s4 + $0xe0] ss:$12 sps:$4 sm:$0xff]   ;;  %v6497_v14 = vld [vmem:[%s8028_s4 + $0xf8] ss:$12 sps:$4 sm:$0xff]  }
 0x2a9   : > { %v3867_v0 = vadd.f32 %v7585_v5, %v3824_v30  ;;  %5499 = vmatprep.subr.bf16.mxu1 %v7723_v63  ;;  %v3902_v28 = vmax.f32 %v3866_v24, 0.0  ;;  %v6498_v34 = vld [vmem:[%s8028_s4 + $0x110] ss:$12 sps:$4 sm:$0xff]   ;;  %v6512_v15 = vld [vmem:[%s8028_s4 + $0x140] ss:$12 sps:$4 sm:$0xff]  }
 0x2aa   : > { %v3905_v58 = vmax.f32 %v3869_v31, 0.0  ;;  %v6513_v24 = vld [vmem:[%s8028_s4 + $0x158] ss:$12 sps:$4 sm:$0xff]  }
 0x2ab   : > { %v3903_v23 = vmax.f32 %v3867_v0, 0.0 }
 0x2ac   : > { %v7744_v54 = vpack.c.bf16 %v3905_v58, %v3904_v37  ;;  %5500 = vmatpush3.bf16.msra.mxu1 %v7648_v35 }
 0x2ad   : > { %v7750_v55 = vpack.c.bf16 %v3903_v23, %v3902_v28  ;;  %v6514_v28 = vld [vmem:[%s8028_s4 + $0x170] ss:$12 sps:$4 sm:$0xff]  }
 0x2ae   : > { %v7758_v5 = vsel %vm962_vm2, %v7744_v54, 0 }
 0x2af   : > { %4050 = vmatmul.mubr.bf16.vlgmr.msra.gmra.mrb[36].mxu1 %v6451_v33  ;;  %6011 = vmatprep.subr.bf16.mxu1 %v7750_v55 }
 0x2b0   : > { %6012 = vmatpush3.bf16.msra.mxu1 %v7750_v55  ;;  %4057 = vmatprep.mubr.bf16.mxu1 %v6454_v39 }
 0x2b1   : > { %6359 = vmatprep.subr.msk.bf16.mxu1 %vm962_vm2, %v7744_v54 }
 0x2b4   : > { %6014 = vmatpush3.bf16.msra.mxu1 %v7758_v5 }
 0x2b5   : > { %5531 = vmatprep.subr.bf16.mxu1 %v7668_v53 }
 0x2b7   : > { %4058 = vmatmul.mubr.bf16.gmra.mrb[40].mxu1 %v6456_v9 }
 0x2b8   : > { %4065 = vmatprep.mubr.bf16.mxu1 %v6457_v10 }
 0x2bf   : > { %4066 = vmatmul.mubr.bf16.gmra.mrb[44].mxu1 %v6459_v29 }
 0x2c0   : > { %4073 = vmatprep.mubr.bf16.mxu1 %v6460_v49 }
 0x2c7   : > { %4074 = vmatmul.mubr.bf16.gmra.mrb[48].mxu1 %v6462_v19 }
 0x2c8   : > { %6015 = vmatprep.mubr.msk.bf16.mxu1 %vm4000_vm8, %v6463_v21 }
 0x2cf   : > { %6016 = vmatmul.mubr.msk.bf16.vlgmr.msra.gmra.mrb[52].mxu1 %vm4000_vm8, %v6464_v59 }
 0x2d0   : > { %5532 = vmatpush3.bf16.msra.mxu1 %v7604_v27  ;;  %6019 = vmatprep.mubr.msk.bf16.mxu1 %vm4000_vm8, %v6465_v51 }
 0x2d1   : > { %5533 = vmatprep.subr.bf16.mxu1 %v7664_v4 }
 0x2d4   : > { %5534 = vmatpush3.bf16.msra.mxu1 %v7600_v6 }
 0x2d5   : > { %5535 = vmatprep.subr.bf16.mxu1 %v7688_v8 }
 0x2d7   : > { %6020 = vmatmul.mubr.msk.bf16.gmra.mrb[56].mxu1 %vm4000_vm8, %v6466_v11 }
 0x2d8   : > { %5536 = vmatpush3.bf16.msra.mxu1 %v7620_v48  ;;  %4268 = vmatprep.mubr.bf16.mxu1 %v6469_v40 }
 0x2d9   : > { %5537 = vmatprep.subr.bf16.mxu1 %v7683_v12 }
 0x2dc   : > { %5538 = vmatpush3.bf16.msra.mxu1 %v7616_v44 }
 0x2dd   : > { %5539 = vmatprep.subr.bf16.mxu1 %v7708_v57 }
 0x2e0   : > { %5540 = vmatpush3.bf16.msra.mxu1 %v7636_v50 }
 0x2e1   : > { %5541 = vmatprep.subr.bf16.mxu1 %v7703_v3 }
 0x2e4   : > { %5542 = vmatpush3.bf16.msra.mxu1 %v7632_v22 }
 0x2e5   : > { %5543 = vmatprep.subr.bf16.mxu1 %v7728_v17 }
 0x2e8   : > { %5544 = vmatpush3.bf16.msra.mxu1 %v7652_v42 }
 0x2e9   : > { %5545 = vmatprep.subr.bf16.mxu1 %v7723_v63 }
 0x2ec   : > { %5546 = vmatpush3.bf16.msra.mxu1 %v7648_v35 }
 0x2ed   : > { %6023 = vmatprep.subr.bf16.mxu1 %v7750_v55 }
 0x2ef   : > { %4269 = vmatmul.mubr.bf16.vlgmr.msra.gmra.mrb[60].mxu1 %v6467_v2 }
 0x2f0   : > { %6024 = vmatpush3.bf16.msra.mxu1 %v7750_v55  ;;  %4276 = vmatprep.mubr.bf16.mxu1 %v6470_v26 }
 0x2f1   : > { %6360 = vmatprep.subr.msk.bf16.mxu1 %vm962_vm2, %v7744_v54 }
 0x2f4   : > { %6026 = vmatpush3.bf16.msra.mxu1 %v7758_v5 }
 0x2f5   : > { %5577 = vmatprep.subr.bf16.mxu1 %v7668_v53 }
 0x2f7   : > { %4277 = vmatmul.mubr.bf16.gmra.mrb[64].mxu1 %v6472_v47 }
 0x2f8   : > { %4284 = vmatprep.mubr.bf16.mxu1 %v6473_v43 }
 0x2ff   : > { %4285 = vmatmul.mubr.bf16.gmra.mrb[68].mxu1 %v6475_v41 }
 0x300   : > { %4292 = vmatprep.mubr.bf16.mxu1 %v6476_v7 }
 0x307   : > { %4293 = vmatmul.mubr.bf16.gmra.mrb[72].mxu1 %v6478_v20 }
 0x308   : > { %6027 = vmatprep.mubr.msk.bf16.mxu1 %vm4000_vm8, %v6479_v25 }
 0x30f   : > { %6028 = vmatmul.mubr.msk.bf16.vlgmr.msra.gmra.mrb[76].mxu1 %vm4000_vm8, %v6480_v56 }
 0x310   : > { %5578 = vmatpush3.bf16.msra.mxu1 %v7604_v27  ;;  %6031 = vmatprep.mubr.msk.bf16.mxu1 %vm4000_vm8, %v6481_v46 }
 0x311   : > { %5579 = vmatprep.subr.bf16.mxu1 %v7664_v4 }
 0x314   : > { %5580 = vmatpush3.bf16.msra.mxu1 %v7600_v6 }
 0x315   : > { %5581 = vmatprep.subr.bf16.mxu1 %v7688_v8 }
 0x317   : > { %6032 = vmatmul.mubr.msk.bf16.gmra.mrb[80].mxu1 %vm4000_vm8, %v6482_v16 }
 0x318   : > { %5582 = vmatpush3.bf16.msra.mxu1 %v7620_v48  ;;  %4495 = vmatprep.mubr.bf16.mxu1 %v6485_v1 }
 0x319   : > { %5583 = vmatprep.subr.bf16.mxu1 %v7683_v12 }
 0x31c   : > { %5584 = vmatpush3.bf16.msra.mxu1 %v7616_v44 }
 0x31d   : > { %5585 = vmatprep.subr.bf16.mxu1 %v7708_v57 }
 0x320   : > { %5586 = vmatpush3.bf16.msra.mxu1 %v7636_v50 }
 0x321   : > { %5587 = vmatprep.subr.bf16.mxu1 %v7703_v3 }
 0x324   : > { %5588 = vmatpush3.bf16.msra.mxu1 %v7632_v22 }
 0x325   : > { %5589 = vmatprep.subr.bf16.mxu1 %v7728_v17 }
 0x328   : > { %5590 = vmatpush3.bf16.msra.mxu1 %v7652_v42 }
 0x329   : > { %5591 = vmatprep.subr.bf16.mxu1 %v7723_v63 }
 0x32c   : > { %5592 = vmatpush3.bf16.msra.mxu1 %v7648_v35 }
 0x32d   : > { %6035 = vmatprep.subr.bf16.mxu1 %v7750_v55 }
 0x32f   : > { %4496 = vmatmul.mubr.bf16.vlgmr.msra.gmra.mrb[84].mxu1 %v6483_v61 }
 0x330   : > { %6036 = vmatpush3.bf16.msra.mxu1 %v7750_v55  ;;  %4503 = vmatprep.mubr.bf16.mxu1 %v6486_v45 }
 0x331   : > { %6361 = vmatprep.subr.msk.bf16.mxu1 %vm962_vm2, %v7744_v54 }
 0x334   : > { %6038 = vmatpush3.bf16.msra.mxu1 %v7758_v5 }
 0x335   : > { %5623 = vmatprep.subr.bf16.mxu1 %v7668_v53  ;;  %v6495_v53 = vld [vmem:[%s8028_s4 + $0xc8] ss:$12 sps:$4 sm:$0xff]  }
 0x337   : > { %4504 = vmatmul.mubr.bf16.gmra.mrb[88].mxu1 %v6488_v38 }
 0x338   : > { %4511 = vmatprep.mubr.bf16.mxu1 %v6489_v60 }
 0x33f   : > { %4512 = vmatmul.mubr.bf16.gmra.mrb[92].mxu1 %v6491_v52 }
 0x340   : > { %4519 = vmatprep.mubr.bf16.mxu1 %v6492_v18 }
 0x347   : > { %4520 = vmatmul.mubr.bf16.gmra.mrb[96].mxu1 %v6494_v62 }
 0x348   : > { %6039 = vmatprep.mubr.msk.bf16.mxu1 %vm4000_vm8, %v6495_v53 }
 0x34f   : > { %6040 = vmatmul.mubr.msk.bf16.vlgmr.msra.gmra.mrb[100].mxu1 %vm4000_vm8, %v6496_v36 }
 0x350   : > { %5624 = vmatpush3.bf16.msra.mxu1 %v7604_v27  ;;  %6043 = vmatprep.mubr.msk.bf16.mxu1 %vm4000_vm8, %v6497_v14  ;;  %v6502_v27 = vld [vmem:[%s8028_s4 + $0x13c] ss:$12 sps:$4 sm:$0xff]  }
 0x351   : > { %5625 = vmatprep.subr.bf16.mxu1 %v7664_v4 }
 0x354   : > { %5626 = vmatpush3.bf16.msra.mxu1 %v7600_v6  ;;  %v6499_v6 = vld [vmem:[%s8028_s4 + $0x120] ss:$12 sps:$4 sm:$0xff]  }
 0x355   : > { %5627 = vmatprep.subr.bf16.mxu1 %v7688_v8 }
 0x357   : > { %6044 = vmatmul.mubr.msk.bf16.gmra.mrb[104].mxu1 %vm4000_vm8, %v6498_v34 }
 0x358   : > { %5628 = vmatpush3.bf16.msra.mxu1 %v7620_v48  ;;  %4722 = vmatprep.mubr.bf16.mxu1 %v6501_v13  ;;  %v6505_v48 = vld [vmem:[%s8028_s4 + $0x154] ss:$12 sps:$4 sm:$0xff]  }
 0x359   : > { %5629 = vmatprep.subr.bf16.mxu1 %v7683_v12  ;;  %v6511_v12 = vld [vmem:[%s8028_s4 + $0x128] ss:$12 sps:$4 sm:$0xff]  }
 0x35c   : > { %5630 = vmatpush3.bf16.msra.mxu1 %v7616_v44  ;;  %v6504_v44 = vld [vmem:[%s8028_s4 + $0x138] ss:$12 sps:$4 sm:$0xff]  }
 0x35d   : > { %5631 = vmatprep.subr.bf16.mxu1 %v7708_v57 }
 0x360   : > { %5632 = vmatpush3.bf16.msra.mxu1 %v7636_v50  ;;  %v6508_v50 = vld [vmem:[%s8028_s4 + $0x16c] ss:$12 sps:$4 sm:$0xff]  }
 0x361   : > { %5633 = vmatprep.subr.bf16.mxu1 %v7703_v3 }
 0x364   : > { %5634 = vmatpush3.bf16.msra.mxu1 %v7632_v22  ;;  %v6507_v22 = vld [vmem:[%s8028_s4 + $0x150] ss:$12 sps:$4 sm:$0xff]  }
 0x365   : > { %5635 = vmatprep.subr.bf16.mxu1 %v7728_v17 }
 0x368   : > { %5636 = vmatpush3.bf16.msra.mxu1 %v7652_v42  ;;  %v6510_v42 = vld [vmem:[%s8028_s4 + $0x168] ss:$12 sps:$4 sm:$0xff]  }
 0x369   : > { %5637 = vmatprep.subr.bf16.mxu1 %v7723_v63 }
 0x36c   : > { %5638 = vmatpush3.bf16.msra.mxu1 %v7648_v35 }
 0x36d   : > { %6047 = vmatprep.subr.bf16.mxu1 %v7750_v55 }
 0x36f   : > { %4723 = vmatmul.mubr.bf16.vlgmr.msra.gmra.mrb[108].mxu1 %v6499_v6 }
 0x370   : > { %6048 = vmatpush3.bf16.msra.mxu1 %v7750_v55  ;;  %4730 = vmatprep.mubr.bf16.mxu1 %v6502_v27 }
 0x371   : > { %6362 = vmatprep.subr.msk.bf16.mxu1 %vm962_vm2, %v7744_v54 }
 0x374   : > { %6050 = vmatpush3.bf16.msra.mxu1 %v7758_v5 }
 0x377   : > { %4731 = vmatmul.mubr.bf16.gmra.mrb[112].mxu1 %v6504_v44 }
 0x378   : > { %4738 = vmatprep.mubr.bf16.mxu1 %v6505_v48 }
 0x37f   : > { %4739 = vmatmul.mubr.bf16.gmra.mrb[116].mxu1 %v6507_v22 }
 0x380   : > { %4746 = vmatprep.mubr.bf16.mxu1 %v6508_v50 }
 0x382   : > { %v5501_v35 = vpop.f32.mrb[36].mxu1 }
 0x383   : > { %v5502_v4 = vpop.f32.mrb[37].mxu1 }
 0x384   : > { %v5503_v8 = vadd.f32 %v5502_v4, %v5501_v35  ;;  %v5504_v3 = vpop.f32.mrb[38].mxu1 }
 0x385   : > { %v5505_v57 = vpop.f32.mrb[39].mxu1 }
 0x386   : > { %v5506_v63 = vadd.f32 %v5505_v57, %v5504_v3 }
 0x387   : > { %4747 = vmatmul.mubr.bf16.gmra.mrb[120].mxu1 %v6510_v42 }
 0x388   : > { %6051 = vmatprep.mubr.msk.bf16.mxu1 %vm4000_vm8, %v6511_v12 }
 0x38a   : > { %v5507_v17 = vpop.f32.mrb[40].mxu1 }
 0x38b   : > { %v5508_v32 = vpop.f32.mrb[41].mxu1 }
 0x38c   : > { %v5509_v30 = vadd.f32 %v5508_v32, %v5507_v17  ;;  %v5510_v31 = vpop.f32.mrb[42].mxu1 }
 0x38d   : > { %v5511_v0 = vpop.f32.mrb[43].mxu1 }
 0x38e   : > { %v5512_v37 = vadd.f32 %v5511_v0, %v5510_v31 }
 0x38f   : > { %6052 = vmatmul.mubr.msk.bf16.vlgmr.msra.gmra.mrb[124].mxu1 %vm4000_vm8, %v6512_v15 }
 0x390   : > { %6055 = vmatprep.mubr.msk.bf16.mxu1 %vm4000_vm8, %v6513_v24 }
 0x392   : > { %v5513_v58 = vpop.f32.mrb[44].mxu1 }
 0x393   : > { %v5514_v23 = vpop.f32.mrb[45].mxu1 }
 0x394   : > { %v5515_v33 = vadd.f32 %v5514_v23, %v5513_v58  ;;  %v5516_v54 = vpop.f32.mrb[46].mxu1 }
 0x395   : > { %v5517_v39 = vpop.f32.mrb[47].mxu1 }
 0x396   : > { %v5518_v55 = vadd.f32 %v5517_v39, %v5516_v54 }
 0x397   : > { %6056 = vmatmul.mubr.msk.bf16.gmra.mrb[128].mxu1 %vm4000_vm8, %v6514_v28 }
 0x39a   : > { %v5519_v5 = vpop.f32.mrb[48].mxu1 }
 0x39b   : > { %v5520_v9 = vpop.f32.mrb[49].mxu1 }
 0x39c   : > { %v5521_v10 = vadd.f32 %v5520_v9, %v5519_v5  ;;  %v5522_v29 = vpop.f32.mrb[50].mxu1 }
 0x39d   : > { %v5523_v49 = vpop.f32.mrb[51].mxu1 }
 0x39e   : > { %v5524_v19 = vadd.f32 %v5523_v49, %v5522_v29 }
 0x3a2   : > { %v6017_v21 = vpop.f32.mrb[52].mxu1 }
 0x3a3   : > { %v7975_v59 = vadd.f32 %v6017_v21, %v5509_v30  ;;  %v4116_v51 = vpop.f32.mrb[53].mxu1 }
 0x3a4   : > { %v7977_v11 = vadd.f32 %v5503_v8, %v4116_v51  ;;  %v6018_v40 = vpop.f32.mrb[54].mxu1 }
 0x3a5   : > { %v7979_v2 = vadd.f32 %v6018_v40, %v5512_v37  ;;  %v4119_v26 = vpop.f32.mrb[55].mxu1 }
 0x3a6   : > { %v7981_v47 = vadd.f32 %v5506_v63, %v4119_v26 }
 0x3aa   : > { %v6021_v43 = vpop.f32.mrb[56].mxu1 }
 0x3ab   : > { %v7983_v41 = vadd.f32 %v6021_v43, %v5521_v10  ;;  %v4132_v7 = vpop.f32.mrb[57].mxu1 }
 0x3ac   : > { %v7985_v20 = vadd.f32 %v5515_v33, %v4132_v7  ;;  %v6022_v25 = vpop.f32.mrb[58].mxu1 }
 0x3ad   : > { %v7987_v56 = vadd.f32 %v6022_v25, %v5524_v19  ;;  %v4135_v46 = vpop.f32.mrb[59].mxu1 }
 0x3ae   : > { %v7989_v16 = vadd.f32 %v5518_v55, %v4135_v46 }
 0x3c2   : > { %v5547_v1 = vpop.f32.mrb[60].mxu1 }
 0x3c3   : > { %v5548_v61 = vpop.f32.mrb[61].mxu1 }
 0x3c4   : > { %v5549_v45 = vadd.f32 %v5548_v61, %v5547_v1  ;;  %v5550_v38 = vpop.f32.mrb[62].mxu1 }
 0x3c5   : > { %v5551_v60 = vpop.f32.mrb[63].mxu1 }
 0x3c6   : > { %v5552_v52 = vadd.f32 %v5551_v60, %v5550_v38 }
 0x3ca   : > { %v5553_v18 = vpop.f32.mrb[64].mxu1 }
 0x3cb   : > { %v5554_v62 = vpop.f32.mrb[65].mxu1 }
 0x3cc   : > { %v5555_v53 = vadd.f32 %v5554_v62, %v5553_v18  ;;  %v5556_v36 = vpop.f32.mrb[66].mxu1 }
 0x3cd   : > { %v5557_v14 = vpop.f32.mrb[67].mxu1 }
 0x3ce   : > { %v5558_v34 = vadd.f32 %v5557_v14, %v5556_v36 }
 0x3d2   : > { %v5559_v13 = vpop.f32.mrb[68].mxu1 }
 0x3d3   : > { %v5560_v6 = vpop.f32.mrb[69].mxu1 }
 0x3d4   : > { %v5561_v27 = vadd.f32 %v5560_v6, %v5559_v13  ;;  %v5562_v44 = vpop.f32.mrb[70].mxu1 }
 0x3d5   : > { %v5563_v48 = vpop.f32.mrb[71].mxu1 }
 0x3d6   : > { %v5564_v22 = vadd.f32 %v5563_v48, %v5562_v44 }
 0x3da   : > { %v5565_v50 = vpop.f32.mrb[72].mxu1 }
 0x3db   : > { %v5566_v35 = vpop.f32.mrb[73].mxu1 }
 0x3dc   : > { %v5567_v42 = vadd.f32 %v5566_v35, %v5565_v50  ;;  %v5568_v4 = vpop.f32.mrb[74].mxu1 }
 0x3dd   : > { %v5569_v12 = vpop.f32.mrb[75].mxu1 }
 0x3de   : > { %v5570_v8 = vadd.f32 %v5569_v12, %v5568_v4 }
 0x3e2   : > { %v6029_v3 = vpop.f32.mrb[76].mxu1 }
 0x3e3   : > { %v4344_v57 = vadd.f32 %v6029_v3, %v5555_v53  ;;  %v4335_v63 = vpop.f32.mrb[77].mxu1 }
 0x3e4   : > { %v4336_v17 = vadd.f32 %v5549_v45, %v4335_v63  ;;  %v6030_v15 = vpop.f32.mrb[78].mxu1 }
 0x3e5   : > { %v4368_v32 = vmax.f32 %v7975_v59, %v4344_v57  ;;  %v4347_v24 = vadd.f32 %v6030_v15, %v5558_v34  ;;  %v4338_v30 = vpop.f32.mrb[79].mxu1 }
 0x3e6   : > { %v4366_v31 = vmax.f32 %v7977_v11, %v4336_v17  ;;  %v4339_v0 = vadd.f32 %v5552_v52, %v4338_v30 }
 0x3e7   : > { %v4369_v37 = vmax.f32 %v7979_v2, %v4347_v24 }
 0x3e8   : > { %v4367_v58 = vmax.f32 %v7981_v47, %v4339_v0 }
 0x3ea   : > { %v6033_v28 = vpop.f32.mrb[80].mxu1 }
 0x3eb   : > { %v4360_v23 = vadd.f32 %v6033_v28, %v5567_v42  ;;  %v4351_v33 = vpop.f32.mrb[81].mxu1 }
 0x3ec   : > { %v4352_v54 = vadd.f32 %v5561_v27, %v4351_v33  ;;  %v6034_v39 = vpop.f32.mrb[82].mxu1 }
 0x3ed   : > { %v4372_v55 = vmax.f32 %v7983_v41, %v4360_v23  ;;  %v4363_v5 = vadd.f32 %v6034_v39, %v5570_v8  ;;  %v4354_v9 = vpop.f32.mrb[83].mxu1 }
 0x3ee   : > { %v4370_v10 = vmax.f32 %v7985_v20, %v4352_v54  ;;  %v4355_v29 = vadd.f32 %v5564_v22, %v4354_v9 }
 0x3ef   : > { %v4373_v49 = vmax.f32 %v7987_v56, %v4363_v5 }
 0x3f0   : > { %v4371_v19 = vmax.f32 %v7989_v16, %v4355_v29 }
 0x402   : > { %v5593_v21 = vpop.f32.mrb[84].mxu1 }
 0x403   : > { %v5594_v59 = vpop.f32.mrb[85].mxu1 }
 0x404   : > { %v5595_v51 = vadd.f32 %v5594_v59, %v5593_v21  ;;  %v5596_v11 = vpop.f32.mrb[86].mxu1 }
 0x405   : > { %v5597_v40 = vpop.f32.mrb[87].mxu1 }
 0x406   : > { %v5598_v2 = vadd.f32 %v5597_v40, %v5596_v11 }
 0x40a   : > { %v5599_v26 = vpop.f32.mrb[88].mxu1 }
 0x40b   : > { %v5600_v47 = vpop.f32.mrb[89].mxu1 }
 0x40c   : > { %v5601_v43 = vadd.f32 %v5600_v47, %v5599_v26  ;;  %v5602_v7 = vpop.f32.mrb[90].mxu1 }
 0x40d   : > { %v5603_v41 = vpop.f32.mrb[91].mxu1 }
 0x40e   : > { %v5604_v25 = vadd.f32 %v5603_v41, %v5602_v7 }
 0x412   : > { %v5605_v46 = vpop.f32.mrb[92].mxu1 }
 0x413   : > { %v5606_v1 = vpop.f32.mrb[93].mxu1 }
 0x414   : > { %v5607_v20 = vadd.f32 %v5606_v1, %v5605_v46  ;;  %v5608_v61 = vpop.f32.mrb[94].mxu1 }
 0x415   : > { %v5609_v45 = vpop.f32.mrb[95].mxu1 }
 0x416   : > { %v5610_v56 = vadd.f32 %v5609_v45, %v5608_v61 }
 0x41a   : > { %v5611_v38 = vpop.f32.mrb[96].mxu1 }
 0x41b   : > { %v5612_v16 = vpop.f32.mrb[97].mxu1 }
 0x41c   : > { %v5613_v60 = vadd.f32 %v5612_v16, %v5611_v38  ;;  %v5614_v52 = vpop.f32.mrb[98].mxu1 }
 0x41d   : > { %v5615_v18 = vpop.f32.mrb[99].mxu1 }
 0x41e   : > { %v5616_v62 = vadd.f32 %v5615_v18, %v5614_v52 }
 0x422   : > { %v6041_v53 = vpop.f32.mrb[100].mxu1 }
 0x423   : > { %v4571_v36 = vadd.f32 %v6041_v53, %v5601_v43  ;;  %v4562_v14 = vpop.f32.mrb[101].mxu1 }
 0x424   : > { %v4563_v34 = vadd.f32 %v5595_v51, %v4562_v14  ;;  %v6042_v13 = vpop.f32.mrb[102].mxu1 }
 0x425   : > { %v4595_v6 = vmax.f32 %v4368_v32, %v4571_v36  ;;  %v4574_v27 = vadd.f32 %v6042_v13, %v5604_v25  ;;  %v4565_v44 = vpop.f32.mrb[103].mxu1 }
 0x426   : > { %v4593_v48 = vmax.f32 %v4366_v31, %v4563_v34  ;;  %v4566_v22 = vadd.f32 %v5598_v2, %v4565_v44 }
 0x427   : > { %v4596_v50 = vmax.f32 %v4369_v37, %v4574_v27 }
 0x428   : > { %v4594_v35 = vmax.f32 %v4367_v58, %v4566_v22 }
 0x42a   : > { %v6045_v42 = vpop.f32.mrb[104].mxu1 }
 0x42b   : > { %v4587_v4 = vadd.f32 %v6045_v42, %v5613_v60  ;;  %v4578_v12 = vpop.f32.mrb[105].mxu1 }
 0x42c   : > { %v4579_v8 = vadd.f32 %v5607_v20, %v4578_v12  ;;  %v6046_v3 = vpop.f32.mrb[106].mxu1 }
 0x42d   : > { %v4599_v57 = vmax.f32 %v4372_v55, %v4587_v4  ;;  %v4590_v63 = vadd.f32 %v6046_v3, %v5616_v62  ;;  %v4581_v17 = vpop.f32.mrb[107].mxu1 }
 0x42e   : > { %v4597_v15 = vmax.f32 %v4370_v10, %v4579_v8  ;;  %v4582_v24 = vadd.f32 %v5610_v56, %v4581_v17 }
 0x42f   : > { %v4600_v30 = vmax.f32 %v4373_v49, %v4590_v63 }
 0x430   : > { %v4598_v0 = vmax.f32 %v4371_v19, %v4582_v24 }
 0x442   : > { %v5639_v28 = vpop.f32.mrb[108].mxu1 }
 0x443   : > { %v5640_v32 = vpop.f32.mrb[109].mxu1 }
 0x444   : > { %v5641_v23 = vadd.f32 %v5640_v32, %v5639_v28  ;;  %v5642_v33 = vpop.f32.mrb[110].mxu1 }
 0x445   : > { %v5643_v31 = vpop.f32.mrb[111].mxu1 }
 0x446   : > { %v5644_v54 = vadd.f32 %v5643_v31, %v5642_v33 }
 0x44a   : > { %v5645_v37 = vpop.f32.mrb[112].mxu1 }
 0x44b   : > { %v5646_v58 = vpop.f32.mrb[113].mxu1 }
 0x44c   : > { %v5647_v39 = vadd.f32 %v5646_v58, %v5645_v37  ;;  %v5648_v5 = vpop.f32.mrb[114].mxu1 }
 0x44d   : > { %v5649_v9 = vpop.f32.mrb[115].mxu1 }
 0x44e   : > { %v5650_v29 = vadd.f32 %v5649_v9, %v5648_v5 }
 0x452   : > { %v5651_v55 = vpop.f32.mrb[116].mxu1 }
 0x453   : > { %v5652_v21 = vpop.f32.mrb[117].mxu1 }
 0x454   : > { %v5653_v59 = vadd.f32 %v5652_v21, %v5651_v55  ;;  %v5654_v10 = vpop.f32.mrb[118].mxu1 }
 0x455   : > { %v5655_v51 = vpop.f32.mrb[119].mxu1 }
 0x456   : > { %v5656_v49 = vadd.f32 %v5655_v51, %v5654_v10 }
 0x45a   : > { %v5657_v19 = vpop.f32.mrb[120].mxu1 }
 0x45b   : > { %v5658_v11 = vpop.f32.mrb[121].mxu1 }
 0x45c   : > { %v5659_v40 = vadd.f32 %v5658_v11, %v5657_v19  ;;  %v5660_v2 = vpop.f32.mrb[122].mxu1 }
 0x45d   : > { %v5661_v26 = vpop.f32.mrb[123].mxu1 }
 0x45e   : > { %v5662_v47 = vadd.f32 %v5661_v26, %v5660_v2 }
 0x462   : > { %v6053_v43 = vpop.f32.mrb[124].mxu1 }
 0x463   : > { %v4798_v7 = vadd.f32 %v6053_v43, %v5647_v39  ;;  %v4789_v41 = vpop.f32.mrb[125].mxu1 }
 0x464   : > { %v4790_v25 = vadd.f32 %v5641_v23, %v4789_v41  ;;  %v6054_v46 = vpop.f32.mrb[126].mxu1 }
 0x465   : > { %v4822_v1 = vmax.f32 %v4595_v6, %v4798_v7  ;;  %v4801_v20 = vadd.f32 %v6054_v46, %v5650_v29  ;;  %v4792_v61 = vpop.f32.mrb[127].mxu1 }
 0x466   : > { %v4820_v45 = vmax.f32 %v4593_v48, %v4790_v25  ;;  %v4793_v56 = vadd.f32 %v5644_v54, %v4792_v61 }
 0x467   : > { %v5308_v38 = vpack.c.bf16 %v4822_v1, %v4822_v1  ;;  %v4823_v16 = vmax.f32 %v4596_v50, %v4801_v20 }
 0x468   : > { %v5306_v60 = vpack.c.bf16 %v4820_v45, %v4820_v45  ;;  %v4821_v52 = vmax.f32 %v4594_v35, %v4793_v56 }
 0x469   : > { %4863 = vst.msk [vmem:[%s8003_s30 + $0x8] sm:$0xf] %vm4860_vm9, %v5308_v38  ;;  %v5309_v18 = vpack.c.bf16 %v4823_v16, %v4823_v16 }
 0x46a   : > { %4861 = vst.msk [vmem:[%s8003_s30] sm:$0xf] %vm4860_vm9, %v5306_v60  ;;  %v5307_v62 = vpack.c.bf16 %v4821_v52, %v4821_v52  ;;  %v6057_v53 = vpop.f32.mrb[128].mxu1 }
 0x46b   : > { %4864 = vst.msk [vmem:[%s8003_s30 + $0xc] sm:$0xf] %vm4860_vm9, %v5309_v18  ;;  %v4814_v36 = vadd.f32 %v6057_v53, %v5659_v40  ;;  %v4805_v14 = vpop.f32.mrb[129].mxu1 }
 0x46c   : > { %4862 = vst.msk [vmem:[%s8003_s30 + $0x4] sm:$0xf] %vm4860_vm9, %v5307_v62  ;;  %v4806_v34 = vadd.f32 %v5653_v59, %v4805_v14  ;;  %v6058_v13 = vpop.f32.mrb[130].mxu1 }
 0x46d   : > { %v4826_v6 = vmax.f32 %v4599_v57, %v4814_v36  ;;  %v4817_v27 = vadd.f32 %v6058_v13, %v5662_v47  ;;  %v4808_v44 = vpop.f32.mrb[131].mxu1 }
 0x46e   : > { %v4824_v48 = vmax.f32 %v4597_v15, %v4806_v34  ;;  %v4809_v22 = vadd.f32 %v5656_v49, %v4808_v44 }
 0x46f   : > { %v5312_v50 = vpack.c.bf16 %v4826_v6, %v4826_v6  ;;  %v4827_v35 = vmax.f32 %v4600_v30, %v4817_v27 }
 0x470   : > { %v5310_v42 = vpack.c.bf16 %v4824_v48, %v4824_v48  ;;  %v4825_v4 = vmax.f32 %v4598_v0, %v4809_v22 }
 0x471   : > { %4867 = vst.msk [vmem:[%s8003_s30 + $0x18] sm:$0xf] %vm4860_vm9, %v5312_v50  ;;  %v5313_v12 = vpack.c.bf16 %v4827_v35, %v4827_v35 }
 0x472   : > { %4865 = vst.msk [vmem:[%s8003_s30 + $0x10] sm:$0xf] %vm4860_vm9, %v5310_v42  ;;  %v5311_v8 = vpack.c.bf16 %v4825_v4, %v4825_v4 }
 0x473   : > { %4868 = vst.msk [vmem:[%s8003_s30 + $0x1c] sm:$0xf] %vm4860_vm9, %v5313_v12 }
 0x474   : > { %4866 = vst.msk [vmem:[%s8003_s30 + $0x14] sm:$0xf] %vm4860_vm9, %v5311_v8 }
 0x475 PF: > { %s15_s18 = sadd.s32 1, %s6525_s18  }
 0x476   : > { %p12_p4 = scmp.ge.s32.totalorder %s15_s18, 4  }
 0x478   :  { %14 = sbr.rel (!%p12_p4) target bundleno = 1 (0x1), region = 81 }

</bundles_post_ra>
